<compile_context>
chip_gen: v7x
topology: tpu7x:2x2x1
jax: 0.10.0
libtpu: 0.0.40
codegen_flags: <defaults>
</compile_context>

<pallas_src>
import functools
import math

import jax
import jax.numpy as jnp
from jax.experimental import pallas as pl
from jax.experimental.pallas import tpu as pltpu

# ----- synthetic config (SMALL shapes) -----
B, S, H = 2, 8, 32          # batch per group, seq len, hidden size
NH, DH = 4, 8               # heads, head dim
FFN = 64                    # intermediate size
LAYERS = 2                  # encoder layers
VOCAB = 64                  # vocab size
EPS = 1e-5                  # config.layer_norm_eps
PART_POOLING = "mean"       # args.part_pooling ('mean'|'sum'|'max'|'cls'|'first')
SHARED_ENCODER = True       # args.shared_encoder (q uses the same encoder)
NO_PROJ = False             # args.no_proj

MXU_DTYPE = jnp.bfloat16    # MXU operands; accumulation stays f32
OUT_PAD = 128               # lane-dense padded output width (real embedding = 3*H)

# row indices inside the coalesced small-parameter slabs
_R_BQKV, _R_BO, _R_LN1G, _R_LN1B, _R_B1, _R_B2, _R_LN2G, _R_LN2B = range(8)
_R_EMBG, _R_EMBB, _R_PROJB, _R_PLNG, _R_PLNB = range(5)


# ------------------------------------------------------------- in-kernel helpers

def _layer_norm(x, g, b, eps):
    mu = jnp.mean(x, axis=-1, keepdims=True)
    var = jnp.mean(jnp.square(x - mu), axis=-1, keepdims=True)
    return (x - mu) * jax.lax.rsqrt(var + eps) * g + b


def _matmul(x, w_bf16, bias):
    # bf16 MXU operands (weights pre-cast in the wrapper), f32 accumulation.
    return jnp.dot(x.astype(MXU_DTYPE), w_bf16,
                   preferred_element_type=jnp.float32) + bias


def _gelu_erf(x):
    # gelu(x) = x * Phi(x), Phi(x) = 0.5*(1 + erf(x/sqrt(2))).
    # Abramowitz & Stegun 7.1.26 polynomial with the 0.5 factor folded into the
    # coefficients; the rational term uses the EUP approximate reciprocal and a
    # single where-select replaces the sign-multiply (v5e VALU relief).
    h1, h2, h3, h4, h5 = (0.127414796, -0.142248368, 0.7107068705,
                          -0.7265760135, 0.5307027145)
    z = x * 0.7071067811865476
    za = jnp.abs(z)
    t = pl.reciprocal(1.0 + 0.3275911 * za, approx=True)
    q = ((((h5 * t + h4) * t + h3) * t + h2) * t + h1) * t * jnp.exp(-za * za)
    return x * jnp.where(x >= 0.0, 1.0 - q, q)


def _pool(hidden, mask, method):
    # pooling_masked_part(); hidden: (B, S, H), mask: (B, S) float32.
    if method == "mean":
        num = jnp.sum(hidden * mask[:, :, None], axis=1)
        # exact divide (once per sequence) for closer PyTorch parity
        return num / jnp.sum(mask, axis=1, keepdims=True)
    if method == "sum":
        return jnp.sum(hidden * mask[:, :, None], axis=1)
    if method == "max":
        # matches the PyTorch -100000.0 additive offset exactly
        return jnp.max(hidden + ((1.0 - mask) * -100000.0)[:, :, None], axis=1)
    if method == "first":
        s = mask.shape[1]
        pos = jax.lax.broadcasted_iota(jnp.float32, mask.shape, 1)
        tmp = mask * (jnp.float32(s) - pos)                 # mask * arange(S, 0, -1)
        idx = jnp.argmax(tmp, axis=1).astype(jnp.float32)   # (B,)
        onehot = (pos == idx[:, None]).astype(jnp.float32)  # one-hot gather of first
        return jnp.sum(hidden * onehot[:, :, None], axis=1)
    return hidden[:, 0, :]   # 'cls' / fallback


# --------------------------------------------------------------- fused kernel

def _retriever_kernel(x_ref, masks_ref, wqkv_ref, wo_ref, w1_ref, w2_ref,
                      lvec_ref, gvec_ref, projw_ref, out_ref,
                      *, eps, layers, nh, dh, pooling, no_proj, b, s):
    h = x_ref.shape[-1]
    bs = b * s
    ffn = w1_ref.shape[-1]
    scale = 1.0 / math.sqrt(dh)

    gv = gvec_ref[...]                        # (8, 128) coalesced global vectors
    mk = masks_ref[...]                       # (3, B, S): attn / part2 / part3
    amask, m2, m3 = mk[0], mk[1], mk[2]

    # ---- embedding LayerNorm (token+pos gather happens in XLA, in front) ----
    x = _layer_norm(x_ref[...], gv[_R_EMBG:_R_EMBG + 1, :h],
                    gv[_R_EMBB:_R_EMBB + 1, :h], eps)              # (B*S, H)

    # additive attention bias from the (B, S) padding mask, hoisted out of the
    # layer / head loops (JAX does not CSE broadcast_in_dim).
    # Note: a fully-masked row would yield uniform attention (same as reference).
    bias3 = ((1.0 - amask) * -1e9)[:, None, :]                     # (B, 1, S)

    # ---- transformer layers, everything resident in VMEM ----
    for l in range(layers):
        lv = lvec_ref[l]                                           # (8, 128)
        # fused QKV projection
        qkv = _matmul(x, wqkv_ref[l], lv[_R_BQKV:_R_BQKV + 1, :3 * h])   # (B*S, 3H)
        # slice q/k/v ONCE, pre-scale q, cast to bf16 once, sublane-only reshapes
        q_all = (qkv[:, :h] * scale).astype(MXU_DTYPE).reshape(b, s, h)
        k_all = qkv[:, h:2 * h].astype(MXU_DTYPE).reshape(b, s, h)
        v_all = qkv[:, 2 * h:].astype(MXU_DTYPE).reshape(b, s, h)
        wo_l = wo_ref[l]                                           # (NH, DH, H) bf16

        attn_out = jnp.zeros((bs, h), jnp.float32)
        # TODO(synk): full head batching ('bqhd,bkhd->bhqk') needs a rank-4
        # dot_general / mid-dim transpose that Mosaic does not reliably lower;
        # keep a head loop but with hoisted slices/casts, no per-head reshape,
        # and per-head Wo accumulation instead of an NH-way lane concat.
        for hh in range(nh):
            sl = slice(hh * dh, (hh + 1) * dh)
            sc = jnp.einsum("bqd,bkd->bqk", q_all[..., sl], k_all[..., sl],
                            preferred_element_type=jnp.float32)    # (B, S, S)
            sc = sc + bias3
            sc = sc - jnp.max(sc, axis=-1, keepdims=True)
            p = jnp.exp(sc)
            p = p * pl.reciprocal(jnp.sum(p, axis=-1, keepdims=True), approx=True)
            o_h = jnp.einsum("bqk,bkd->bqd", p.astype(MXU_DTYPE), v_all[..., sl],
                             preferred_element_type=jnp.float32)   # (B, S, DH)
            attn_out = attn_out + jnp.dot(
                o_h.reshape(bs, dh).astype(MXU_DTYPE), wo_l[hh],
                preferred_element_type=jnp.float32)
        attn_out = attn_out + lv[_R_BO:_R_BO + 1, :h]
        x = _layer_norm(x + attn_out, lv[_R_LN1G:_R_LN1G + 1, :h],
                        lv[_R_LN1B:_R_LN1B + 1, :h], eps)

        f = _gelu_erf(_matmul(x, w1_ref[l], lv[_R_B1:_R_B1 + 1, :ffn]))
        f = _matmul(f, w2_ref[l], lv[_R_B2:_R_B2 + 1, :h])
        x = _layer_norm(x + f, lv[_R_LN2G:_R_LN2G + 1, :h],
                        lv[_R_LN2B:_R_LN2B + 1, :h], eps)

    # ---- ThreeCatPool head: project(CLS) ++ pool(part2) ++ pool(part3) ----
    hidden = x.reshape(b, s, h)
    cls_rep = hidden[:, 0, :]
    if no_proj:
        part1 = cls_rep
    else:
        part1 = _layer_norm(_matmul(cls_rep, projw_ref[...],
                                    gv[_R_PROJB:_R_PROJB + 1, :h]),
                            gv[_R_PLNG:_R_PLNG + 1, :h],
                            gv[_R_PLNB:_R_PLNB + 1, :h], eps)
    part2 = _pool(hidden, m2, pooling)
    part3 = _pool(hidden, m3, pooling)
    # lane-padded output buffer; direct column-slice stores (no lane concat),
    # wrapper slices [:, :3H] back out.
    out_ref[:, 0:h] = part1.astype(out_ref.dtype)
    out_ref[:, h:2 * h] = part2.astype(out_ref.dtype)
    out_ref[:, 2 * h:3 * h] = part3.astype(out_ref.dtype)
    out_ref[:, 3 * h:] = jnp.zeros((b, out_ref.shape[-1] - 3 * h), out_ref.dtype)


# --------------------------------------------------------------- parameter init

def init_params(key):
    keys = iter(jax.random.split(key, 128))

    def w(shape, scale=0.02):
        return (scale * jax.random.normal(next(keys), shape)).astype(jnp.float32)

    params = {
        "word_emb": w((VOCAB, H)),
        "pos_emb": w((S, H)),
        "emb_ln_g": jnp.ones((H,), jnp.float32),
        "emb_ln_b": jnp.zeros((H,), jnp.float32),
        "layers": [],
        # self.project = Sequential(Linear(H, H), LayerNorm(H))
        "proj_w": w((H, H)),
        "proj_b": jnp.zeros((H,), jnp.float32),
        "proj_ln_g": jnp.ones((H,), jnp.float32),
        "proj_ln_b": jnp.zeros((H,), jnp.float32),
    }
    for _ in range(LAYERS):
        params["layers"].append({
            "wq": w((H, H)), "bq": jnp.zeros((H,), jnp.float32),
            "wk": w((H, H)), "bk": jnp.zeros((H,), jnp.float32),
            "wv": w((H, H)), "bv": jnp.zeros((H,), jnp.float32),
            "wo": w((H, H)), "bo": jnp.zeros((H,), jnp.float32),
            "ln1_g": jnp.ones((H,), jnp.float32), "ln1_b": jnp.zeros((H,), jnp.float32),
            "w1": w((H, FFN)), "b1": jnp.zeros((FFN,), jnp.float32),
            "w2": w((FFN, H)), "b2": jnp.zeros((H,), jnp.float32),
            "ln2_g": jnp.ones((H,), jnp.float32), "ln2_b": jnp.zeros((H,), jnp.float32),
        })
    return params


def _pad_row(v, width=128):
    return jnp.pad(v, (0, width - v.shape[0]))[None, :]


def _pack_params(params):
    """bf16 weight stacks + coalesced 128-lane-padded f32 slabs (2 DMAs for all
    small vectors instead of ~20)."""
    ls = params["layers"]
    wqkv = jnp.stack([jnp.concatenate([lp["wq"], lp["wk"], lp["wv"]], axis=1)
                      for lp in ls]).astype(MXU_DTYPE)                  # (L, H, 3H)
    # wo pre-split by head so the kernel accumulates per-head outputs through Wo
    wo = jnp.stack([lp["wo"].reshape(NH, DH, H) for lp in ls]).astype(MXU_DTYPE)
    w1 = jnp.stack([lp["w1"] for lp in ls]).astype(MXU_DTYPE)           # (L, H, FFN)
    w2 = jnp.stack([lp["w2"] for lp in ls]).astype(MXU_DTYPE)           # (L, FFN, H)
    lvec = jnp.stack([
        jnp.concatenate([
            _pad_row(jnp.concatenate([lp["bq"], lp["bk"], lp["bv"]])),  # row 0: bqkv
            _pad_row(lp["bo"]),                                         # row 1
            _pad_row(lp["ln1_g"]), _pad_row(lp["ln1_b"]),               # rows 2-3
            _pad_row(lp["b1"]), _pad_row(lp["b2"]),                     # rows 4-5
            _pad_row(lp["ln2_g"]), _pad_row(lp["ln2_b"]),               # rows 6-7
        ], axis=0) for lp in ls])                                       # (L, 8, 128)
    gvec = jnp.concatenate([
        _pad_row(params["emb_ln_g"]), _pad_row(params["emb_ln_b"]),
        _pad_row(params["proj_b"]),
        _pad_row(params["proj_ln_g"]), _pad_row(params["proj_ln_b"]),
        jnp.zeros((3, 128), jnp.float32)], axis=0)                      # (8, 128)
    proj_w = params["proj_w"].astype(MXU_DTYPE)
    return dict(wqkv=wqkv, wo=wo, w1=w1, w2=w2, lvec=lvec, gvec=gvec, proj_w=proj_w)


def _const_spec(arr):
    # full-array block with a constant index_map -> DMA'd once, VMEM-resident
    nd = arr.ndim
    return pl.BlockSpec(arr.shape, lambda gi, _nd=nd: (0,) * _nd)


# ------------------------------------------------------------------ fused forward

@jax.jit
def encode_batch(params, input_ids, attn_mask, part2_mask, part3_mask):
    """Encoder + ThreeCatPool head for a stacked (3B, S) batch as ONE fused kernel,
    gridded over the 3 sequence groups (parallel -> megacore on v7x)."""
    bt, s = input_ids.shape
    g = bt // B                                       # grid steps (= 3 groups)
    # Token-id embedding gather + flatten stay in XLA; everything else is fused.
    x = (jnp.take(params["word_emb"], input_ids, axis=0)
         + params["pos_emb"][None, :, :]).astype(jnp.float32)
    x = x.reshape(g, B * s, H)                        # (G, B*S, H), 2-D per step
    masks = jnp.stack([attn_mask.reshape(g, B, s),
                       part2_mask.reshape(g, B, s),
                       part3_mask.reshape(g, B, s)], axis=1).astype(jnp.float32)
    pk = _pack_params(params)

    kernel = functools.partial(
        _retriever_kernel, eps=EPS, layers=LAYERS, nh=NH, dh=DH,
        pooling=PART_POOLING, no_proj=NO_PROJ, b=B, s=s)

    out = pl.pallas_call(
        kernel,
        grid=(g,),
        in_specs=[
            pl.BlockSpec((None, B * s, H), lambda gi: (gi, 0, 0)),      # x
            pl.BlockSpec((None, 3, B, s), lambda gi: (gi, 0, 0, 0)),    # masks
            _const_spec(pk["wqkv"]), _const_spec(pk["wo"]),
            _const_spec(pk["w1"]), _const_spec(pk["w2"]),
            _const_spec(pk["lvec"]), _const_spec(pk["gvec"]),
            _const_spec(pk["proj_w"]),
        ],
        out_specs=pl.BlockSpec((None, B, OUT_PAD), lambda gi: (gi, 0, 0)),
        out_shape=jax.ShapeDtypeStruct((g, B, OUT_PAD), jnp.float32),
        compiler_params=pltpu.CompilerParams(
            dimension_semantics=("parallel",)),
    )(x, masks, pk["wqkv"], pk["wo"], pk["w1"], pk["w2"],
      pk["lvec"], pk["gvec"], pk["proj_w"])
    return out.reshape(g * B, OUT_PAD)[:, :3 * H]     # drop lane padding in XLA


def forward(params, batch):
    # shared_encoder=True: q / c / neg_c use the same encoder & projection head,
    # so the three encode_seq/encode_q calls are batched into ONE fused kernel.
    # TODO(synk): shared_encoder=False (a distinct encoder_q weight set) not modeled.
    ids = jnp.concatenate([batch["c_input_ids"], batch["neg_input_ids"],
                           batch["q_input_ids"]], axis=0)
    am = jnp.concatenate([batch["c_mask"], batch["neg_mask"], batch["q_mask"]], axis=0)
    m2 = jnp.concatenate([batch["c_part2_mask"], batch["neg_part2_mask"],
                          batch["q_part2_mask"]], axis=0)
    m3 = jnp.concatenate([batch["c_part3_mask"], batch["neg_part3_mask"],
                          batch["q_part3_mask"]], axis=0)
    emb = encode_batch(params, ids, am, m2, m3)              # (3B, 3H)
    return {"c": emb[:B], "neg_c": emb[B:2 * B], "q": emb[2 * B:]}


# ---------------------------------------------------------------- pure-JAX reference

def reference_forward(params, input_ids, attn_mask, m2, m3):
    x = jnp.take(params["word_emb"], input_ids, axis=0) + params["pos_emb"][None, :, :]

    def ln(v, g, b):
        mu = jnp.mean(v, axis=-1, keepdims=True)
        var = jnp.mean(jnp.square(v - mu), axis=-1, keepdims=True)
        return (v - mu) / jnp.sqrt(var + EPS) * g + b

    x = ln(x, params["emb_ln_g"], params["emb_ln_b"])
    bt, s, h = x.shape
    bias = (1.0 - attn_mask) * -1e9
    for lp in params["layers"]:
        q = (x @ lp["wq"] + lp["bq"]).reshape(bt, s, NH, DH)
        k = (x @ lp["wk"] + lp["bk"]).reshape(bt, s, NH, DH)
        v = (x @ lp["wv"] + lp["bv"]).reshape(bt, s, NH, DH)
        sc = jnp.einsum("bqhd,bkhd->bhqk", q, k) / math.sqrt(DH) + bias[:, None, None, :]
        p = jax.nn.softmax(sc, axis=-1)
        a = jnp.einsum("bhqk,bkhd->bqhd", p, v).reshape(bt, s, h)
        a = a @ lp["wo"] + lp["bo"]
        x = ln(x + a, lp["ln1_g"], lp["ln1_b"])
        f = jax.nn.gelu(x @ lp["w1"] + lp["b1"], approximate=False)
        f = f @ lp["w2"] + lp["b2"]
        x = ln(x + f, lp["ln2_g"], lp["ln2_b"])

    hidden = x
    cls_rep = hidden[:, 0, :]
    if NO_PROJ:
        part1 = cls_rep
    else:
        part1 = ln(cls_rep @ params["proj_w"] + params["proj_b"],
                   params["proj_ln_g"], params["proj_ln_b"])

    def pool(mask):
        if PART_POOLING == "mean":
            return (jnp.sum(hidden * mask[:, :, None], axis=1)
                    / jnp.sum(mask, axis=1, keepdims=True))
        if PART_POOLING == "sum":
            return jnp.sum(hidden * mask[:, :, None], axis=1)
        if PART_POOLING == "max":
            return jnp.max(hidden + ((1.0 - mask) * -100000.0)[:, :, None], axis=1)
        if PART_POOLING == "first":
            pos = jnp.arange(mask.shape[1], dtype=jnp.float32)[None, :]
            idx = jnp.argmax(mask * (mask.shape[1] - pos), axis=1)
            return jnp.take_along_axis(hidden, idx[:, None, None].repeat(hidden.shape[-1], -1),
                                       axis=1)[:, 0, :]
        return hidden[:, 0, :]

    return jnp.concatenate([part1, pool(m2), pool(m3)], axis=1)


# ------------------------------------------------------------------------- main

if __name__ == "__main__":
    key = jax.random.PRNGKey(0)
    pkey, dkey = jax.random.split(key)
    params = init_params(pkey)

    def make_inputs(k):
        k1, k2, k3 = jax.random.split(k, 3)
        ids = jax.random.randint(k1, (B, S), 0, VOCAB, dtype=jnp.int32)
        mask = jnp.ones((B, S), jnp.float32)
        m2 = (jax.random.uniform(k2, (B, S)) > 0.5).astype(jnp.float32)
        m2 = m2.at[:, 1].set(1.0)   # guarantee non-empty part2 span
        m3 = (jax.random.uniform(k3, (B, S)) > 0.5).astype(jnp.float32)
        m3 = m3.at[:, 2].set(1.0)   # guarantee non-empty part3 span
        return ids, mask, m2, m3

    kc, kn, kq = jax.random.split(dkey, 3)
    c_ids, c_mask, c_m2, c_m3 = make_inputs(kc)
    n_ids, n_mask, n_m2, n_m3 = make_inputs(kn)
    q_ids, q_mask, q_m2, q_m3 = make_inputs(kq)

    batch = {
        "c_input_ids": c_ids, "c_mask": c_mask,
        "c_part2_mask": c_m2, "c_part3_mask": c_m3,
        "neg_input_ids": n_ids, "neg_mask": n_mask,
        "neg_part2_mask": n_m2, "neg_part3_mask": n_m3,
        "q_input_ids": q_ids, "q_mask": q_mask,
        "q_part2_mask": q_m2, "q_part3_mask": q_m3,
    }

    out = jax.block_until_ready(forward(params, batch))
    assert out["q"].shape == (B, 3 * H)
    assert out["c"].shape == (B, 3 * H)
    assert out["neg_c"].shape == (B, 3 * H)
    assert all(bool(jnp.all(jnp.isfinite(v))) for v in out.values())

    # pure-JAX f32 reference (exact division / exact-erf GELU); loose tolerance
    # absorbs bf16 MXU operands + approx reciprocals at these tiny hidden sizes.
    ids = jnp.concatenate([c_ids, n_ids, q_ids], axis=0)
    am = jnp.concatenate([c_mask, n_mask, q_mask], axis=0)
    m2 = jnp.concatenate([c_m2, n_m2, q_m2], axis=0)
    m3 = jnp.concatenate([c_m3, n_m3, q_m3], axis=0)
    ref = reference_forward(params, ids, am, m2, m3)
    got = jnp.concatenate([out["c"], out["neg_c"], out["q"]], axis=0)
    max_err = float(jnp.max(jnp.abs(got - ref)))
    assert max_err < 0.1, f"max abs err vs reference = {max_err}"

    print("KERNEL_OK")
</pallas_src>

<mosaic_0001>
module attributes {stable_mosaic.version = 11 : i64} {
  func.func @_retriever_kernel(%arg0: i32, %arg1: memref<1x16x32xf32, #tpu.memory_space<vmem>>, %arg2: memref<1x3x2x8xf32, #tpu.memory_space<vmem>>, %arg3: memref<2x32x96xbf16, #tpu.memory_space<vmem>>, %arg4: memref<2x4x8x32xbf16, #tpu.memory_space<vmem>>, %arg5: memref<2x32x64xbf16, #tpu.memory_space<vmem>>, %arg6: memref<2x64x32xbf16, #tpu.memory_space<vmem>>, %arg7: memref<2x8x128xf32, #tpu.memory_space<vmem>>, %arg8: memref<8x128xf32, #tpu.memory_space<vmem>>, %arg9: memref<32x32xbf16, #tpu.memory_space<vmem>>, %arg10: memref<1x2x128xf32, #tpu.memory_space<vmem>>) attributes {dimension_semantics = [#tpu.dimension_semantics<parallel>], iteration_bounds = array<i64: 3>, scalar_prefetch = 0 : i64, scratch_operands = 0 : i64, tpu.core_type = #tpu.core_type<tc>, window_params = [{transform_indices = @transform_0, window_bounds = array<i64: 1, 16, 32>}, {transform_indices = @transform_1, window_bounds = array<i64: 1, 3, 2, 8>}, {pipeline_mode = #tpu.pipeline_mode<synchronous>, transform_indices = @transform_2, window_bounds = array<i64: 2, 32, 96>}, {pipeline_mode = #tpu.pipeline_mode<synchronous>, transform_indices = @transform_3, window_bounds = array<i64: 2, 4, 8, 32>}, {pipeline_mode = #tpu.pipeline_mode<synchronous>, transform_indices = @transform_4, window_bounds = array<i64: 2, 32, 64>}, {pipeline_mode = #tpu.pipeline_mode<synchronous>, transform_indices = @transform_5, window_bounds = array<i64: 2, 64, 32>}, {pipeline_mode = #tpu.pipeline_mode<synchronous>, transform_indices = @transform_6, window_bounds = array<i64: 2, 8, 128>}, {pipeline_mode = #tpu.pipeline_mode<synchronous>, transform_indices = @transform_7, window_bounds = array<i64: 8, 128>}, {pipeline_mode = #tpu.pipeline_mode<synchronous>, transform_indices = @transform_8, window_bounds = array<i64: 32, 32>}, {transform_indices = @transform_9, window_bounds = array<i64: 1, 2, 128>}]} {
    %c0 = arith.constant 0 : index
    %c0_0 = arith.constant 0 : index
    %0 = vector.load %arg8[%c0, %c0_0] : memref<8x128xf32, #tpu.memory_space<vmem>>, vector<8x128xf32>
    %c0_1 = arith.constant 0 : index
    %c0_2 = arith.constant 0 : index
    %c0_3 = arith.constant 0 : index
    %c0_4 = arith.constant 0 : index
    %1 = vector.load %arg2[%c0_1, %c0_2, %c0_3, %c0_4] : memref<1x3x2x8xf32, #tpu.memory_space<vmem>>, vector<1x3x2x8xf32>
    %2 = vector.shape_cast %1 : vector<1x3x2x8xf32> to vector<3x2x8xf32>
    %3 = vector.extract_strided_slice %2 {offsets = [0, 0, 0], sizes = [1, 2, 8], strides = [1, 1, 1]} : vector<3x2x8xf32> to vector<1x2x8xf32>
    %4 = vector.shape_cast %3 : vector<1x2x8xf32> to vector<2x8xf32>
    %5 = vector.extract_strided_slice %2 {offsets = [1, 0, 0], sizes = [1, 2, 8], strides = [1, 1, 1]} : vector<3x2x8xf32> to vector<1x2x8xf32>
    %6 = vector.shape_cast %5 : vector<1x2x8xf32> to vector<2x8xf32>
    %7 = vector.extract_strided_slice %2 {offsets = [2, 0, 0], sizes = [1, 2, 8], strides = [1, 1, 1]} : vector<3x2x8xf32> to vector<1x2x8xf32>
    %8 = vector.shape_cast %7 : vector<1x2x8xf32> to vector<2x8xf32>
    %c0_5 = arith.constant 0 : index
    %c0_6 = arith.constant 0 : index
    %c0_7 = arith.constant 0 : index
    %9 = vector.load %arg1[%c0_5, %c0_6, %c0_7] : memref<1x16x32xf32, #tpu.memory_space<vmem>>, vector<1x16x32xf32>
    %10 = vector.shape_cast %9 : vector<1x16x32xf32> to vector<16x32xf32>
    %11 = vector.extract_strided_slice %0 {offsets = [0, 0], sizes = [1, 32], strides = [1, 1]} : vector<8x128xf32> to vector<1x32xf32>
    %12 = vector.extract_strided_slice %0 {offsets = [1, 0], sizes = [1, 32], strides = [1, 1]} : vector<8x128xf32> to vector<1x32xf32>
    %cst = arith.constant dense<0.000000e+00> : vector<16xf32>
    %13 = vector.multi_reduction <add>, %10, %cst [1] : vector<16x32xf32> to vector<16xf32>
    %14 = vector.shape_cast %13 : vector<16xf32> to vector<16x1xf32>
    %cst_8 = arith.constant 3.200000e+01 : f32
    %15 = vector.broadcast %cst_8 : f32 to vector<16x1xf32>
    %16 = arith.divf %14, %15 : vector<16x1xf32>
    %17 = vector.broadcast %16 : vector<16x1xf32> to vector<16x32xf32>
    %18 = arith.subf %10, %17 : vector<16x32xf32>
    %19 = arith.mulf %18, %18 : vector<16x32xf32>
    %cst_9 = arith.constant dense<0.000000e+00> : vector<16xf32>
    %20 = vector.multi_reduction <add>, %19, %cst_9 [1] : vector<16x32xf32> to vector<16xf32>
    %21 = vector.shape_cast %20 : vector<16xf32> to vector<16x1xf32>
    %cst_10 = arith.constant 3.200000e+01 : f32
    %22 = vector.broadcast %cst_10 : f32 to vector<16x1xf32>
    %23 = arith.divf %21, %22 : vector<16x1xf32>
    %24 = vector.broadcast %16 : vector<16x1xf32> to vector<16x32xf32>
    %25 = arith.subf %10, %24 : vector<16x32xf32>
    %cst_11 = arith.constant 9.99999974E-6 : f32
    %26 = vector.broadcast %cst_11 : f32 to vector<16x1xf32>
    %27 = arith.addf %23, %26 : vector<16x1xf32>
    %28 = math.rsqrt %27 : vector<16x1xf32>
    %29 = vector.broadcast %28 : vector<16x1xf32> to vector<16x32xf32>
    %30 = arith.mulf %25, %29 : vector<16x32xf32>
    %31 = vector.broadcast %11 : vector<1x32xf32> to vector<16x32xf32>
    %32 = arith.mulf %30, %31 : vector<16x32xf32>
    %33 = vector.broadcast %12 : vector<1x32xf32> to vector<16x32xf32>
    %34 = arith.addf %32, %33 : vector<16x32xf32>
    %cst_12 = arith.constant 1.000000e+00 : f32
    %35 = vector.broadcast %cst_12 : f32 to vector<2x8xf32>
    %36 = arith.subf %35, %4 : vector<2x8xf32>
    %cst_13 = arith.constant -1.000000e+09 : f32
    %37 = vector.broadcast %cst_13 : f32 to vector<2x8xf32>
    %38 = arith.mulf %36, %37 : vector<2x8xf32>
    %39 = vector.shape_cast %38 : vector<2x8xf32> to vector<2x1x8xf32>
    %c0_14 = arith.constant 0 : index
    %c0_15 = arith.constant 0 : index
    %c0_16 = arith.constant 0 : index
    %40 = vector.load %arg7[%c0_14, %c0_15, %c0_16] : memref<2x8x128xf32, #tpu.memory_space<vmem>>, vector<1x8x128xf32>
    %41 = vector.shape_cast %40 : vector<1x8x128xf32> to vector<8x128xf32>
    %c0_17 = arith.constant 0 : index
    %c0_18 = arith.constant 0 : index
    %c0_19 = arith.constant 0 : index
    %42 = vector.load %arg3[%c0_17, %c0_18, %c0_19] : memref<2x32x96xbf16, #tpu.memory_space<vmem>>, vector<1x32x96xbf16>
    %43 = vector.shape_cast %42 : vector<1x32x96xbf16> to vector<32x96xbf16>
    %44 = vector.extract_strided_slice %41 {offsets = [0, 0], sizes = [1, 96], strides = [1, 1]} : vector<8x128xf32> to vector<1x96xf32>
    %45 = arith.truncf %34 : vector<16x32xf32> to vector<16x32xbf16>
    %cst_20 = arith.constant dense<0.000000e+00> : vector<16x96xf32>
    %46 = tpu.matmul %45, %43, %cst_20 {dimension_numbers = #tpu.dot_dimension_numbers<[1], [0], [0], [1], [0, 0, 1, 1], [], []>} : vector<16x32xbf16>, vector<32x96xbf16>, vector<16x96xf32> -> vector<16x96xf32>
    %47 = vector.broadcast %44 : vector<1x96xf32> to vector<16x96xf32>
    %48 = arith.addf %46, %47 : vector<16x96xf32>
    %49 = vector.extract_strided_slice %48 {offsets = [0, 0], sizes = [16, 32], strides = [1, 1]} : vector<16x96xf32> to vector<16x32xf32>
    %cst_21 = arith.constant 0.353553385 : f32
    %50 = vector.broadcast %cst_21 : f32 to vector<16x32xf32>
    %51 = arith.mulf %49, %50 : vector<16x32xf32>
    %52 = arith.truncf %51 : vector<16x32xf32> to vector<16x32xbf16>
    %53 = vector.shape_cast %52 : vector<16x32xbf16> to vector<2x8x32xbf16>
    %54 = vector.extract_strided_slice %48 {offsets = [0, 32], sizes = [16, 32], strides = [1, 1]} : vector<16x96xf32> to vector<16x32xf32>
    %55 = arith.truncf %54 : vector<16x32xf32> to vector<16x32xbf16>
    %56 = vector.shape_cast %55 : vector<16x32xbf16> to vector<2x8x32xbf16>
    %57 = vector.extract_strided_slice %48 {offsets = [0, 64], sizes = [16, 32], strides = [1, 1]} : vector<16x96xf32> to vector<16x32xf32>
    %58 = arith.truncf %57 : vector<16x32xf32> to vector<16x32xbf16>
    %59 = vector.shape_cast %58 : vector<16x32xbf16> to vector<2x8x32xbf16>
    %c0_22 = arith.constant 0 : index
    %c0_23 = arith.constant 0 : index
    %c0_24 = arith.constant 0 : index
    %c0_25 = arith.constant 0 : index
    %60 = vector.load %arg4[%c0_22, %c0_23, %c0_24, %c0_25] : memref<2x4x8x32xbf16, #tpu.memory_space<vmem>>, vector<1x4x8x32xbf16>
    %61 = vector.shape_cast %60 : vector<1x4x8x32xbf16> to vector<4x8x32xbf16>
    %cst_26 = arith.constant 0.000000e+00 : f32
    %62 = vector.broadcast %cst_26 : f32 to vector<16x32xf32>
    %63 = vector.extract_strided_slice %53 {offsets = [0, 0, 0], sizes = [2, 8, 8], strides = [1, 1, 1]} : vector<2x8x32xbf16> to vector<2x8x8xbf16>
    %64 = vector.extract_strided_slice %56 {offsets = [0, 0, 0], sizes = [2, 8, 8], strides = [1, 1, 1]} : vector<2x8x32xbf16> to vector<2x8x8xbf16>
    "tpu.trace_start"() <{level = 10 : i32, message = "bqd,bkd->bqk"}> : () -> ()
    %cst_27 = arith.constant dense<0.000000e+00> : vector<2x8x8xf32>
    %65 = tpu.matmul %63, %64, %cst_27 {dimension_numbers = #tpu.dot_dimension_numbers<[2], [2], [1], [1], [0, 0, 0, 1, 1, 1], [0], [0]>} : vector<2x8x8xbf16>, vector<2x8x8xbf16>, vector<2x8x8xf32> -> vector<2x8x8xf32>
    "tpu.trace_stop"() : () -> ()
    %66 = vector.broadcast %39 : vector<2x1x8xf32> to vector<2x8x8xf32>
    %67 = arith.addf %65, %66 : vector<2x8x8xf32>
    %cst_28 = arith.constant dense<0xFF800000> : vector<2x8xf32>
    %68 = vector.multi_reduction <maximumf>, %67, %cst_28 [2] : vector<2x8x8xf32> to vector<2x8xf32>
    %69 = vector.shape_cast %68 : vector<2x8xf32> to vector<2x8x1xf32>
    %70 = vector.broadcast %69 : vector<2x8x1xf32> to vector<2x8x8xf32>
    %71 = arith.subf %67, %70 : vector<2x8x8xf32>
    %72 = math.exp %71 : vector<2x8x8xf32>
    %cst_29 = arith.constant dense<0.000000e+00> : vector<2x8xf32>
    %73 = vector.multi_reduction <add>, %72, %cst_29 [2] : vector<2x8x8xf32> to vector<2x8xf32>
    %74 = vector.shape_cast %73 : vector<2x8xf32> to vector<2x8x1xf32>
    %75 = tpu.reciprocal %74 {approx = true} : vector<2x8x1xf32> -> vector<2x8x1xf32>
    %76 = vector.broadcast %75 : vector<2x8x1xf32> to vector<2x8x8xf32>
    %77 = arith.mulf %72, %76 : vector<2x8x8xf32>
    %78 = arith.truncf %77 : vector<2x8x8xf32> to vector<2x8x8xbf16>
    %79 = vector.extract_strided_slice %59 {offsets = [0, 0, 0], sizes = [2, 8, 8], strides = [1, 1, 1]} : vector<2x8x32xbf16> to vector<2x8x8xbf16>
    "tpu.trace_start"() <{level = 10 : i32, message = "bqk,bkd->bqd"}> : () -> ()
    %cst_30 = arith.constant dense<0.000000e+00> : vector<2x8x8xf32>
    %80 = tpu.matmul %78, %79, %cst_30 {dimension_numbers = #tpu.dot_dimension_numbers<[2], [1], [1], [2], [0, 0, 0, 1, 1, 2], [0], [0]>} : vector<2x8x8xbf16>, vector<2x8x8xbf16>, vector<2x8x8xf32> -> vector<2x8x8xf32>
    "tpu.trace_stop"() : () -> ()
    %81 = vector.shape_cast %80 : vector<2x8x8xf32> to vector<16x8xf32>
    %82 = arith.truncf %81 : vector<16x8xf32> to vector<16x8xbf16>
    %83 = vector.extract_strided_slice %61 {offsets = [0, 0, 0], sizes = [1, 8, 32], strides = [1, 1, 1]} : vector<4x8x32xbf16> to vector<1x8x32xbf16>
    %84 = vector.shape_cast %83 : vector<1x8x32xbf16> to vector<8x32xbf16>
    %cst_31 = arith.constant dense<0.000000e+00> : vector<16x32xf32>
    %85 = tpu.matmul %82, %84, %cst_31 {dimension_numbers = #tpu.dot_dimension_numbers<[1], [0], [0], [1], [0, 0, 1, 1], [], []>} : vector<16x8xbf16>, vector<8x32xbf16>, vector<16x32xf32> -> vector<16x32xf32>
    %86 = arith.addf %62, %85 : vector<16x32xf32>
    %87 = vector.extract_strided_slice %53 {offsets = [0, 0, 8], sizes = [2, 8, 8], strides = [1, 1, 1]} : vector<2x8x32xbf16> to vector<2x8x8xbf16>
    %88 = vector.extract_strided_slice %56 {offsets = [0, 0, 8], sizes = [2, 8, 8], strides = [1, 1, 1]} : vector<2x8x32xbf16> to vector<2x8x8xbf16>
    "tpu.trace_start"() <{level = 10 : i32, message = "bqd,bkd->bqk"}> : () -> ()
    %cst_32 = arith.constant dense<0.000000e+00> : vector<2x8x8xf32>
    %89 = tpu.matmul %87, %88, %cst_32 {dimension_numbers = #tpu.dot_dimension_numbers<[2], [2], [1], [1], [0, 0, 0, 1, 1, 1], [0], [0]>} : vector<2x8x8xbf16>, vector<2x8x8xbf16>, vector<2x8x8xf32> -> vector<2x8x8xf32>
    "tpu.trace_stop"() : () -> ()
    %90 = vector.broadcast %39 : vector<2x1x8xf32> to vector<2x8x8xf32>
    %91 = arith.addf %89, %90 : vector<2x8x8xf32>
    %cst_33 = arith.constant dense<0xFF800000> : vector<2x8xf32>
    %92 = vector.multi_reduction <maximumf>, %91, %cst_33 [2] : vector<2x8x8xf32> to vector<2x8xf32>
    %93 = vector.shape_cast %92 : vector<2x8xf32> to vector<2x8x1xf32>
    %94 = vector.broadcast %93 : vector<2x8x1xf32> to vector<2x8x8xf32>
    %95 = arith.subf %91, %94 : vector<2x8x8xf32>
    %96 = math.exp %95 : vector<2x8x8xf32>
    %cst_34 = arith.constant dense<0.000000e+00> : vector<2x8xf32>
    %97 = vector.multi_reduction <add>, %96, %cst_34 [2] : vector<2x8x8xf32> to vector<2x8xf32>
    %98 = vector.shape_cast %97 : vector<2x8xf32> to vector<2x8x1xf32>
    %99 = tpu.reciprocal %98 {approx = true} : vector<2x8x1xf32> -> vector<2x8x1xf32>
    %100 = vector.broadcast %99 : vector<2x8x1xf32> to vector<2x8x8xf32>
    %101 = arith.mulf %96, %100 : vector<2x8x8xf32>
    %102 = arith.truncf %101 : vector<2x8x8xf32> to vector<2x8x8xbf16>
    %103 = vector.extract_strided_slice %59 {offsets = [0, 0, 8], sizes = [2, 8, 8], strides = [1, 1, 1]} : vector<2x8x32xbf16> to vector<2x8x8xbf16>
    "tpu.trace_start"() <{level = 10 : i32, message = "bqk,bkd->bqd"}> : () -> ()
    %cst_35 = arith.constant dense<0.000000e+00> : vector<2x8x8xf32>
    %104 = tpu.matmul %102, %103, %cst_35 {dimension_numbers = #tpu.dot_dimension_numbers<[2], [1], [1], [2], [0, 0, 0, 1, 1, 2], [0], [0]>} : vector<2x8x8xbf16>, vector<2x8x8xbf16>, vector<2x8x8xf32> -> vector<2x8x8xf32>
    "tpu.trace_stop"() : () -> ()
    %105 = vector.shape_cast %104 : vector<2x8x8xf32> to vector<16x8xf32>
    %106 = arith.truncf %105 : vector<16x8xf32> to vector<16x8xbf16>
    %107 = vector.extract_strided_slice %61 {offsets = [1, 0, 0], sizes = [1, 8, 32], strides = [1, 1, 1]} : vector<4x8x32xbf16> to vector<1x8x32xbf16>
    %108 = vector.shape_cast %107 : vector<1x8x32xbf16> to vector<8x32xbf16>
    %cst_36 = arith.constant dense<0.000000e+00> : vector<16x32xf32>
    %109 = tpu.matmul %106, %108, %cst_36 {dimension_numbers = #tpu.dot_dimension_numbers<[1], [0], [0], [1], [0, 0, 1, 1], [], []>} : vector<16x8xbf16>, vector<8x32xbf16>, vector<16x32xf32> -> vector<16x32xf32>
    %110 = arith.addf %86, %109 : vector<16x32xf32>
    %111 = vector.extract_strided_slice %53 {offsets = [0, 0, 16], sizes = [2, 8, 8], strides = [1, 1, 1]} : vector<2x8x32xbf16> to vector<2x8x8xbf16>
    %112 = vector.extract_strided_slice %56 {offsets = [0, 0, 16], sizes = [2, 8, 8], strides = [1, 1, 1]} : vector<2x8x32xbf16> to vector<2x8x8xbf16>
    "tpu.trace_start"() <{level = 10 : i32, message = "bqd,bkd->bqk"}> : () -> ()
    %cst_37 = arith.constant dense<0.000000e+00> : vector<2x8x8xf32>
    %113 = tpu.matmul %111, %112, %cst_37 {dimension_numbers = #tpu.dot_dimension_numbers<[2], [2], [1], [1], [0, 0, 0, 1, 1, 1], [0], [0]>} : vector<2x8x8xbf16>, vector<2x8x8xbf16>, vector<2x8x8xf32> -> vector<2x8x8xf32>
    "tpu.trace_stop"() : () -> ()
    %114 = vector.broadcast %39 : vector<2x1x8xf32> to vector<2x8x8xf32>
    %115 = arith.addf %113, %114 : vector<2x8x8xf32>
    %cst_38 = arith.constant dense<0xFF800000> : vector<2x8xf32>
    %116 = vector.multi_reduction <maximumf>, %115, %cst_38 [2] : vector<2x8x8xf32> to vector<2x8xf32>
    %117 = vector.shape_cast %116 : vector<2x8xf32> to vector<2x8x1xf32>
    %118 = vector.broadcast %117 : vector<2x8x1xf32> to vector<2x8x8xf32>
    %119 = arith.subf %115, %118 : vector<2x8x8xf32>
    %120 = math.exp %119 : vector<2x8x8xf32>
    %cst_39 = arith.constant dense<0.000000e+00> : vector<2x8xf32>
    %121 = vector.multi_reduction <add>, %120, %cst_39 [2] : vector<2x8x8xf32> to vector<2x8xf32>
    %122 = vector.shape_cast %121 : vector<2x8xf32> to vector<2x8x1xf32>
    %123 = tpu.reciprocal %122 {approx = true} : vector<2x8x1xf32> -> vector<2x8x1xf32>
    %124 = vector.broadcast %123 : vector<2x8x1xf32> to vector<2x8x8xf32>
    %125 = arith.mulf %120, %124 : vector<2x8x8xf32>
    %126 = arith.truncf %125 : vector<2x8x8xf32> to vector<2x8x8xbf16>
    %127 = vector.extract_strided_slice %59 {offsets = [0, 0, 16], sizes = [2, 8, 8], strides = [1, 1, 1]} : vector<2x8x32xbf16> to vector<2x8x8xbf16>
    "tpu.trace_start"() <{level = 10 : i32, message = "bqk,bkd->bqd"}> : () -> ()
    %cst_40 = arith.constant dense<0.000000e+00> : vector<2x8x8xf32>
    %128 = tpu.matmul %126, %127, %cst_40 {dimension_numbers = #tpu.dot_dimension_numbers<[2], [1], [1], [2], [0, 0, 0, 1, 1, 2], [0], [0]>} : vector<2x8x8xbf16>, vector<2x8x8xbf16>, vector<2x8x8xf32> -> vector<2x8x8xf32>
    "tpu.trace_stop"() : () -> ()
    %129 = vector.shape_cast %128 : vector<2x8x8xf32> to vector<16x8xf32>
    %130 = arith.truncf %129 : vector<16x8xf32> to vector<16x8xbf16>
    %131 = vector.extract_strided_slice %61 {offsets = [2, 0, 0], sizes = [1, 8, 32], strides = [1, 1, 1]} : vector<4x8x32xbf16> to vector<1x8x32xbf16>
    %132 = vector.shape_cast %131 : vector<1x8x32xbf16> to vector<8x32xbf16>
    %cst_41 = arith.constant dense<0.000000e+00> : vector<16x32xf32>
    %133 = tpu.matmul %130, %132, %cst_41 {dimension_numbers = #tpu.dot_dimension_numbers<[1], [0], [0], [1], [0, 0, 1, 1], [], []>} : vector<16x8xbf16>, vector<8x32xbf16>, vector<16x32xf32> -> vector<16x32xf32>
    %134 = arith.addf %110, %133 : vector<16x32xf32>
    %135 = vector.extract_strided_slice %53 {offsets = [0, 0, 24], sizes = [2, 8, 8], strides = [1, 1, 1]} : vector<2x8x32xbf16> to vector<2x8x8xbf16>
    %136 = vector.extract_strided_slice %56 {offsets = [0, 0, 24], sizes = [2, 8, 8], strides = [1, 1, 1]} : vector<2x8x32xbf16> to vector<2x8x8xbf16>
    "tpu.trace_start"() <{level = 10 : i32, message = "bqd,bkd->bqk"}> : () -> ()
    %cst_42 = arith.constant dense<0.000000e+00> : vector<2x8x8xf32>
    %137 = tpu.matmul %135, %136, %cst_42 {dimension_numbers = #tpu.dot_dimension_numbers<[2], [2], [1], [1], [0, 0, 0, 1, 1, 1], [0], [0]>} : vector<2x8x8xbf16>, vector<2x8x8xbf16>, vector<2x8x8xf32> -> vector<2x8x8xf32>
    "tpu.trace_stop"() : () -> ()
    %138 = vector.broadcast %39 : vector<2x1x8xf32> to vector<2x8x8xf32>
    %139 = arith.addf %137, %138 : vector<2x8x8xf32>
    %cst_43 = arith.constant dense<0xFF800000> : vector<2x8xf32>
    %140 = vector.multi_reduction <maximumf>, %139, %cst_43 [2] : vector<2x8x8xf32> to vector<2x8xf32>
    %141 = vector.shape_cast %140 : vector<2x8xf32> to vector<2x8x1xf32>
    %142 = vector.broadcast %141 : vector<2x8x1xf32> to vector<2x8x8xf32>
    %143 = arith.subf %139, %142 : vector<2x8x8xf32>
    %144 = math.exp %143 : vector<2x8x8xf32>
    %cst_44 = arith.constant dense<0.000000e+00> : vector<2x8xf32>
    %145 = vector.multi_reduction <add>, %144, %cst_44 [2] : vector<2x8x8xf32> to vector<2x8xf32>
    %146 = vector.shape_cast %145 : vector<2x8xf32> to vector<2x8x1xf32>
    %147 = tpu.reciprocal %146 {approx = true} : vector<2x8x1xf32> -> vector<2x8x1xf32>
    %148 = vector.broadcast %147 : vector<2x8x1xf32> to vector<2x8x8xf32>
    %149 = arith.mulf %144, %148 : vector<2x8x8xf32>
    %150 = arith.truncf %149 : vector<2x8x8xf32> to vector<2x8x8xbf16>
    %151 = vector.extract_strided_slice %59 {offsets = [0, 0, 24], sizes = [2, 8, 8], strides = [1, 1, 1]} : vector<2x8x32xbf16> to vector<2x8x8xbf16>
    "tpu.trace_start"() <{level = 10 : i32, message = "bqk,bkd->bqd"}> : () -> ()
    %cst_45 = arith.constant dense<0.000000e+00> : vector<2x8x8xf32>
    %152 = tpu.matmul %150, %151, %cst_45 {dimension_numbers = #tpu.dot_dimension_numbers<[2], [1], [1], [2], [0, 0, 0, 1, 1, 2], [0], [0]>} : vector<2x8x8xbf16>, vector<2x8x8xbf16>, vector<2x8x8xf32> -> vector<2x8x8xf32>
    "tpu.trace_stop"() : () -> ()
    %153 = vector.shape_cast %152 : vector<2x8x8xf32> to vector<16x8xf32>
    %154 = arith.truncf %153 : vector<16x8xf32> to vector<16x8xbf16>
    %155 = vector.extract_strided_slice %61 {offsets = [3, 0, 0], sizes = [1, 8, 32], strides = [1, 1, 1]} : vector<4x8x32xbf16> to vector<1x8x32xbf16>
    %156 = vector.shape_cast %155 : vector<1x8x32xbf16> to vector<8x32xbf16>
    %cst_46 = arith.constant dense<0.000000e+00> : vector<16x32xf32>
    %157 = tpu.matmul %154, %156, %cst_46 {dimension_numbers = #tpu.dot_dimension_numbers<[1], [0], [0], [1], [0, 0, 1, 1], [], []>} : vector<16x8xbf16>, vector<8x32xbf16>, vector<16x32xf32> -> vector<16x32xf32>
    %158 = arith.addf %134, %157 : vector<16x32xf32>
    %159 = vector.extract_strided_slice %41 {offsets = [1, 0], sizes = [1, 32], strides = [1, 1]} : vector<8x128xf32> to vector<1x32xf32>
    %160 = vector.broadcast %159 : vector<1x32xf32> to vector<16x32xf32>
    %161 = arith.addf %158, %160 : vector<16x32xf32>
    %162 = arith.addf %34, %161 : vector<16x32xf32>
    %163 = vector.extract_strided_slice %41 {offsets = [2, 0], sizes = [1, 32], strides = [1, 1]} : vector<8x128xf32> to vector<1x32xf32>
    %164 = vector.extract_strided_slice %41 {offsets = [3, 0], sizes = [1, 32], strides = [1, 1]} : vector<8x128xf32> to vector<1x32xf32>
    %cst_47 = arith.constant dense<0.000000e+00> : vector<16xf32>
    %165 = vector.multi_reduction <add>, %162, %cst_47 [1] : vector<16x32xf32> to vector<16xf32>
    %166 = vector.shape_cast %165 : vector<16xf32> to vector<16x1xf32>
    %cst_48 = arith.constant 3.200000e+01 : f32
    %167 = vector.broadcast %cst_48 : f32 to vector<16x1xf32>
    %168 = arith.divf %166, %167 : vector<16x1xf32>
    %169 = vector.broadcast %168 : vector<16x1xf32> to vector<16x32xf32>
    %170 = arith.subf %162, %169 : vector<16x32xf32>
    %171 = arith.mulf %170, %170 : vector<16x32xf32>
    %cst_49 = arith.constant dense<0.000000e+00> : vector<16xf32>
    %172 = vector.multi_reduction <add>, %171, %cst_49 [1] : vector<16x32xf32> to vector<16xf32>
    %173 = vector.shape_cast %172 : vector<16xf32> to vector<16x1xf32>
    %cst_50 = arith.constant 3.200000e+01 : f32
    %174 = vector.broadcast %cst_50 : f32 to vector<16x1xf32>
    %175 = arith.divf %173, %174 : vector<16x1xf32>
    %176 = vector.broadcast %168 : vector<16x1xf32> to vector<16x32xf32>
    %177 = arith.subf %162, %176 : vector<16x32xf32>
    %cst_51 = arith.constant 9.99999974E-6 : f32
    %178 = vector.broadcast %cst_51 : f32 to vector<16x1xf32>
    %179 = arith.addf %175, %178 : vector<16x1xf32>
    %180 = math.rsqrt %179 : vector<16x1xf32>
    %181 = vector.broadcast %180 : vector<16x1xf32> to vector<16x32xf32>
    %182 = arith.mulf %177, %181 : vector<16x32xf32>
    %183 = vector.broadcast %163 : vector<1x32xf32> to vector<16x32xf32>
    %184 = arith.mulf %182, %183 : vector<16x32xf32>
    %185 = vector.broadcast %164 : vector<1x32xf32> to vector<16x32xf32>
    %186 = arith.addf %184, %185 : vector<16x32xf32>
    %c0_52 = arith.constant 0 : index
    %c0_53 = arith.constant 0 : index
    %c0_54 = arith.constant 0 : index
    %187 = vector.load %arg5[%c0_52, %c0_53, %c0_54] : memref<2x32x64xbf16, #tpu.memory_space<vmem>>, vector<1x32x64xbf16>
    %188 = vector.shape_cast %187 : vector<1x32x64xbf16> to vector<32x64xbf16>
    %189 = vector.extract_strided_slice %41 {offsets = [4, 0], sizes = [1, 64], strides = [1, 1]} : vector<8x128xf32> to vector<1x64xf32>
    %190 = arith.truncf %186 : vector<16x32xf32> to vector<16x32xbf16>
    %cst_55 = arith.constant dense<0.000000e+00> : vector<16x64xf32>
    %191 = tpu.matmul %190, %188, %cst_55 {dimension_numbers = #tpu.dot_dimension_numbers<[1], [0], [0], [1], [0, 0, 1, 1], [], []>} : vector<16x32xbf16>, vector<32x64xbf16>, vector<16x64xf32> -> vector<16x64xf32>
    %192 = vector.broadcast %189 : vector<1x64xf32> to vector<16x64xf32>
    %193 = arith.addf %191, %192 : vector<16x64xf32>
    %cst_56 = arith.constant 0.707106769 : f32
    %194 = vector.broadcast %cst_56 : f32 to vector<16x64xf32>
    %195 = arith.mulf %193, %194 : vector<16x64xf32>
    %196 = math.absf %195 : vector<16x64xf32>
    %cst_57 = arith.constant 0.327591091 : f32
    %197 = vector.broadcast %cst_57 : f32 to vector<16x64xf32>
    %198 = arith.mulf %197, %196 : vector<16x64xf32>
    %cst_58 = arith.constant 1.000000e+00 : f32
    %199 = vector.broadcast %cst_58 : f32 to vector<16x64xf32>
    %200 = arith.addf %199, %198 : vector<16x64xf32>
    %201 = tpu.reciprocal %200 {approx = true} : vector<16x64xf32> -> vector<16x64xf32>
    %cst_59 = arith.constant 0.53070271 : f32
    %202 = vector.broadcast %cst_59 : f32 to vector<16x64xf32>
    %203 = arith.mulf %202, %201 : vector<16x64xf32>
    %cst_60 = arith.constant -0.72657603 : f32
    %204 = vector.broadcast %cst_60 : f32 to vector<16x64xf32>
    %205 = arith.addf %203, %204 : vector<16x64xf32>
    %206 = arith.mulf %205, %201 : vector<16x64xf32>
    %cst_61 = arith.constant 0.710706889 : f32
    %207 = vector.broadcast %cst_61 : f32 to vector<16x64xf32>
    %208 = arith.addf %206, %207 : vector<16x64xf32>
    %209 = arith.mulf %208, %201 : vector<16x64xf32>
    %cst_62 = arith.constant -0.142248362 : f32
    %210 = vector.broadcast %cst_62 : f32 to vector<16x64xf32>
    %211 = arith.addf %209, %210 : vector<16x64xf32>
    %212 = arith.mulf %211, %201 : vector<16x64xf32>
    %cst_63 = arith.constant 0.127414793 : f32
    %213 = vector.broadcast %cst_63 : f32 to vector<16x64xf32>
    %214 = arith.addf %212, %213 : vector<16x64xf32>
    %215 = arith.mulf %214, %201 : vector<16x64xf32>
    %cst_64 = arith.constant 0.000000e+00 : f32
    %216 = vector.broadcast %cst_64 : f32 to vector<16x64xf32>
    %217 = arith.subf %216, %196 : vector<16x64xf32>
    %218 = arith.mulf %217, %196 : vector<16x64xf32>
    %219 = math.exp %218 : vector<16x64xf32>
    %220 = arith.mulf %215, %219 : vector<16x64xf32>
    %cst_65 = arith.constant 0.000000e+00 : f32
    %221 = vector.broadcast %cst_65 : f32 to vector<16x64xf32>
    %222 = arith.cmpf oge, %193, %221 : vector<16x64xf32>
    %cst_66 = arith.constant 1.000000e+00 : f32
    %223 = vector.broadcast %cst_66 : f32 to vector<16x64xf32>
    %224 = arith.subf %223, %220 : vector<16x64xf32>
    %225 = arith.select %222, %224, %220 : vector<16x64xi1>, vector<16x64xf32>
    %226 = arith.mulf %193, %225 : vector<16x64xf32>
    %c0_67 = arith.constant 0 : index
    %c0_68 = arith.constant 0 : index
    %c0_69 = arith.constant 0 : index
    %227 = vector.load %arg6[%c0_67, %c0_68, %c0_69] : memref<2x64x32xbf16, #tpu.memory_space<vmem>>, vector<1x64x32xbf16>
    %228 = vector.shape_cast %227 : vector<1x64x32xbf16> to vector<64x32xbf16>
    %229 = vector.extract_strided_slice %41 {offsets = [5, 0], sizes = [1, 32], strides = [1, 1]} : vector<8x128xf32> to vector<1x32xf32>
    %230 = arith.truncf %226 : vector<16x64xf32> to vector<16x64xbf16>
    %cst_70 = arith.constant dense<0.000000e+00> : vector<16x32xf32>
    %231 = tpu.matmul %230, %228, %cst_70 {dimension_numbers = #tpu.dot_dimension_numbers<[1], [0], [0], [1], [0, 0, 1, 1], [], []>} : vector<16x64xbf16>, vector<64x32xbf16>, vector<16x32xf32> -> vector<16x32xf32>
    %232 = vector.broadcast %229 : vector<1x32xf32> to vector<16x32xf32>
    %233 = arith.addf %231, %232 : vector<16x32xf32>
    %234 = arith.addf %186, %233 : vector<16x32xf32>
    %235 = vector.extract_strided_slice %41 {offsets = [6, 0], sizes = [1, 32], strides = [1, 1]} : vector<8x128xf32> to vector<1x32xf32>
    %236 = vector.extract_strided_slice %41 {offsets = [7, 0], sizes = [1, 32], strides = [1, 1]} : vector<8x128xf32> to vector<1x32xf32>
    %cst_71 = arith.constant dense<0.000000e+00> : vector<16xf32>
    %237 = vector.multi_reduction <add>, %234, %cst_71 [1] : vector<16x32xf32> to vector<16xf32>
    %238 = vector.shape_cast %237 : vector<16xf32> to vector<16x1xf32>
    %cst_72 = arith.constant 3.200000e+01 : f32
    %239 = vector.broadcast %cst_72 : f32 to vector<16x1xf32>
    %240 = arith.divf %238, %239 : vector<16x1xf32>
    %241 = vector.broadcast %240 : vector<16x1xf32> to vector<16x32xf32>
    %242 = arith.subf %234, %241 : vector<16x32xf32>
    %243 = arith.mulf %242, %242 : vector<16x32xf32>
    %cst_73 = arith.constant dense<0.000000e+00> : vector<16xf32>
    %244 = vector.multi_reduction <add>, %243, %cst_73 [1] : vector<16x32xf32> to vector<16xf32>
    %245 = vector.shape_cast %244 : vector<16xf32> to vector<16x1xf32>
    %cst_74 = arith.constant 3.200000e+01 : f32
    %246 = vector.broadcast %cst_74 : f32 to vector<16x1xf32>
    %247 = arith.divf %245, %246 : vector<16x1xf32>
    %248 = vector.broadcast %240 : vector<16x1xf32> to vector<16x32xf32>
    %249 = arith.subf %234, %248 : vector<16x32xf32>
    %cst_75 = arith.constant 9.99999974E-6 : f32
    %250 = vector.broadcast %cst_75 : f32 to vector<16x1xf32>
    %251 = arith.addf %247, %250 : vector<16x1xf32>
    %252 = math.rsqrt %251 : vector<16x1xf32>
    %253 = vector.broadcast %252 : vector<16x1xf32> to vector<16x32xf32>
    %254 = arith.mulf %249, %253 : vector<16x32xf32>
    %255 = vector.broadcast %235 : vector<1x32xf32> to vector<16x32xf32>
    %256 = arith.mulf %254, %255 : vector<16x32xf32>
    %257 = vector.broadcast %236 : vector<1x32xf32> to vector<16x32xf32>
    %258 = arith.addf %256, %257 : vector<16x32xf32>
    %c1 = arith.constant 1 : index
    %c0_76 = arith.constant 0 : index
    %c0_77 = arith.constant 0 : index
    %259 = vector.load %arg7[%c1, %c0_76, %c0_77] : memref<2x8x128xf32, #tpu.memory_space<vmem>>, vector<1x8x128xf32>
    %260 = vector.shape_cast %259 : vector<1x8x128xf32> to vector<8x128xf32>
    %c1_78 = arith.constant 1 : index
    %c0_79 = arith.constant 0 : index
    %c0_80 = arith.constant 0 : index
    %261 = vector.load %arg3[%c1_78, %c0_79, %c0_80] : memref<2x32x96xbf16, #tpu.memory_space<vmem>>, vector<1x32x96xbf16>
    %262 = vector.shape_cast %261 : vector<1x32x96xbf16> to vector<32x96xbf16>
    %263 = vector.extract_strided_slice %260 {offsets = [0, 0], sizes = [1, 96], strides = [1, 1]} : vector<8x128xf32> to vector<1x96xf32>
    %264 = arith.truncf %258 : vector<16x32xf32> to vector<16x32xbf16>
    %cst_81 = arith.constant dense<0.000000e+00> : vector<16x96xf32>
    %265 = tpu.matmul %264, %262, %cst_81 {dimension_numbers = #tpu.dot_dimension_numbers<[1], [0], [0], [1], [0, 0, 1, 1], [], []>} : vector<16x32xbf16>, vector<32x96xbf16>, vector<16x96xf32> -> vector<16x96xf32>
    %266 = vector.broadcast %263 : vector<1x96xf32> to vector<16x96xf32>
    %267 = arith.addf %265, %266 : vector<16x96xf32>
    %268 = vector.extract_strided_slice %267 {offsets = [0, 0], sizes = [16, 32], strides = [1, 1]} : vector<16x96xf32> to vector<16x32xf32>
    %cst_82 = arith.constant 0.353553385 : f32
    %269 = vector.broadcast %cst_82 : f32 to vector<16x32xf32>
    %270 = arith.mulf %268, %269 : vector<16x32xf32>
    %271 = arith.truncf %270 : vector<16x32xf32> to vector<16x32xbf16>
    %272 = vector.shape_cast %271 : vector<16x32xbf16> to vector<2x8x32xbf16>
    %273 = vector.extract_strided_slice %267 {offsets = [0, 32], sizes = [16, 32], strides = [1, 1]} : vector<16x96xf32> to vector<16x32xf32>
    %274 = arith.truncf %273 : vector<16x32xf32> to vector<16x32xbf16>
    %275 = vector.shape_cast %274 : vector<16x32xbf16> to vector<2x8x32xbf16>
    %276 = vector.extract_strided_slice %267 {offsets = [0, 64], sizes = [16, 32], strides = [1, 1]} : vector<16x96xf32> to vector<16x32xf32>
    %277 = arith.truncf %276 : vector<16x32xf32> to vector<16x32xbf16>
    %278 = vector.shape_cast %277 : vector<16x32xbf16> to vector<2x8x32xbf16>
    %c1_83 = arith.constant 1 : index
    %c0_84 = arith.constant 0 : index
    %c0_85 = arith.constant 0 : index
    %c0_86 = arith.constant 0 : index
    %279 = vector.load %arg4[%c1_83, %c0_84, %c0_85, %c0_86] : memref<2x4x8x32xbf16, #tpu.memory_space<vmem>>, vector<1x4x8x32xbf16>
    %280 = vector.shape_cast %279 : vector<1x4x8x32xbf16> to vector<4x8x32xbf16>
    %cst_87 = arith.constant 0.000000e+00 : f32
    %281 = vector.broadcast %cst_87 : f32 to vector<16x32xf32>
    %282 = vector.extract_strided_slice %272 {offsets = [0, 0, 0], sizes = [2, 8, 8], strides = [1, 1, 1]} : vector<2x8x32xbf16> to vector<2x8x8xbf16>
    %283 = vector.extract_strided_slice %275 {offsets = [0, 0, 0], sizes = [2, 8, 8], strides = [1, 1, 1]} : vector<2x8x32xbf16> to vector<2x8x8xbf16>
    "tpu.trace_start"() <{level = 10 : i32, message = "bqd,bkd->bqk"}> : () -> ()
    %cst_88 = arith.constant dense<0.000000e+00> : vector<2x8x8xf32>
    %284 = tpu.matmul %282, %283, %cst_88 {dimension_numbers = #tpu.dot_dimension_numbers<[2], [2], [1], [1], [0, 0, 0, 1, 1, 1], [0], [0]>} : vector<2x8x8xbf16>, vector<2x8x8xbf16>, vector<2x8x8xf32> -> vector<2x8x8xf32>
    "tpu.trace_stop"() : () -> ()
    %285 = vector.broadcast %39 : vector<2x1x8xf32> to vector<2x8x8xf32>
    %286 = arith.addf %284, %285 : vector<2x8x8xf32>
    %cst_89 = arith.constant dense<0xFF800000> : vector<2x8xf32>
    %287 = vector.multi_reduction <maximumf>, %286, %cst_89 [2] : vector<2x8x8xf32> to vector<2x8xf32>
    %288 = vector.shape_cast %287 : vector<2x8xf32> to vector<2x8x1xf32>
    %289 = vector.broadcast %288 : vector<2x8x1xf32> to vector<2x8x8xf32>
    %290 = arith.subf %286, %289 : vector<2x8x8xf32>
    %291 = math.exp %290 : vector<2x8x8xf32>
    %cst_90 = arith.constant dense<0.000000e+00> : vector<2x8xf32>
    %292 = vector.multi_reduction <add>, %291, %cst_90 [2] : vector<2x8x8xf32> to vector<2x8xf32>
    %293 = vector.shape_cast %292 : vector<2x8xf32> to vector<2x8x1xf32>
    %294 = tpu.reciprocal %293 {approx = true} : vector<2x8x1xf32> -> vector<2x8x1xf32>
    %295 = vector.broadcast %294 : vector<2x8x1xf32> to vector<2x8x8xf32>
    %296 = arith.mulf %291, %295 : vector<2x8x8xf32>
    %297 = arith.truncf %296 : vector<2x8x8xf32> to vector<2x8x8xbf16>
    %298 = vector.extract_strided_slice %278 {offsets = [0, 0, 0], sizes = [2, 8, 8], strides = [1, 1, 1]} : vector<2x8x32xbf16> to vector<2x8x8xbf16>
    "tpu.trace_start"() <{level = 10 : i32, message = "bqk,bkd->bqd"}> : () -> ()
    %cst_91 = arith.constant dense<0.000000e+00> : vector<2x8x8xf32>
    %299 = tpu.matmul %297, %298, %cst_91 {dimension_numbers = #tpu.dot_dimension_numbers<[2], [1], [1], [2], [0, 0, 0, 1, 1, 2], [0], [0]>} : vector<2x8x8xbf16>, vector<2x8x8xbf16>, vector<2x8x8xf32> -> vector<2x8x8xf32>
    "tpu.trace_stop"() : () -> ()
    %300 = vector.shape_cast %299 : vector<2x8x8xf32> to vector<16x8xf32>
    %301 = arith.truncf %300 : vector<16x8xf32> to vector<16x8xbf16>
    %302 = vector.extract_strided_slice %280 {offsets = [0, 0, 0], sizes = [1, 8, 32], strides = [1, 1, 1]} : vector<4x8x32xbf16> to vector<1x8x32xbf16>
    %303 = vector.shape_cast %302 : vector<1x8x32xbf16> to vector<8x32xbf16>
    %cst_92 = arith.constant dense<0.000000e+00> : vector<16x32xf32>
    %304 = tpu.matmul %301, %303, %cst_92 {dimension_numbers = #tpu.dot_dimension_numbers<[1], [0], [0], [1], [0, 0, 1, 1], [], []>} : vector<16x8xbf16>, vector<8x32xbf16>, vector<16x32xf32> -> vector<16x32xf32>
    %305 = arith.addf %281, %304 : vector<16x32xf32>
    %306 = vector.extract_strided_slice %272 {offsets = [0, 0, 8], sizes = [2, 8, 8], strides = [1, 1, 1]} : vector<2x8x32xbf16> to vector<2x8x8xbf16>
    %307 = vector.extract_strided_slice %275 {offsets = [0, 0, 8], sizes = [2, 8, 8], strides = [1, 1, 1]} : vector<2x8x32xbf16> to vector<2x8x8xbf16>
    "tpu.trace_start"() <{level = 10 : i32, message = "bqd,bkd->bqk"}> : () -> ()
    %cst_93 = arith.constant dense<0.000000e+00> : vector<2x8x8xf32>
    %308 = tpu.matmul %306, %307, %cst_93 {dimension_numbers = #tpu.dot_dimension_numbers<[2], [2], [1], [1], [0, 0, 0, 1, 1, 1], [0], [0]>} : vector<2x8x8xbf16>, vector<2x8x8xbf16>, vector<2x8x8xf32> -> vector<2x8x8xf32>
    "tpu.trace_stop"() : () -> ()
    %309 = vector.broadcast %39 : vector<2x1x8xf32> to vector<2x8x8xf32>
    %310 = arith.addf %308, %309 : vector<2x8x8xf32>
    %cst_94 = arith.constant dense<0xFF800000> : vector<2x8xf32>
    %311 = vector.multi_reduction <maximumf>, %310, %cst_94 [2] : vector<2x8x8xf32> to vector<2x8xf32>
    %312 = vector.shape_cast %311 : vector<2x8xf32> to vector<2x8x1xf32>
    %313 = vector.broadcast %312 : vector<2x8x1xf32> to vector<2x8x8xf32>
    %314 = arith.subf %310, %313 : vector<2x8x8xf32>
    %315 = math.exp %314 : vector<2x8x8xf32>
    %cst_95 = arith.constant dense<0.000000e+00> : vector<2x8xf32>
    %316 = vector.multi_reduction <add>, %315, %cst_95 [2] : vector<2x8x8xf32> to vector<2x8xf32>
    %317 = vector.shape_cast %316 : vector<2x8xf32> to vector<2x8x1xf32>
    %318 = tpu.reciprocal %317 {approx = true} : vector<2x8x1xf32> -> vector<2x8x1xf32>
    %319 = vector.broadcast %318 : vector<2x8x1xf32> to vector<2x8x8xf32>
    %320 = arith.mulf %315, %319 : vector<2x8x8xf32>
    %321 = arith.truncf %320 : vector<2x8x8xf32> to vector<2x8x8xbf16>
    %322 = vector.extract_strided_slice %278 {offsets = [0, 0, 8], sizes = [2, 8, 8], strides = [1, 1, 1]} : vector<2x8x32xbf16> to vector<2x8x8xbf16>
    "tpu.trace_start"() <{level = 10 : i32, message = "bqk,bkd->bqd"}> : () -> ()
    %cst_96 = arith.constant dense<0.000000e+00> : vector<2x8x8xf32>
    %323 = tpu.matmul %321, %322, %cst_96 {dimension_numbers = #tpu.dot_dimension_numbers<[2], [1], [1], [2], [0, 0, 0, 1, 1, 2], [0], [0]>} : vector<2x8x8xbf16>, vector<2x8x8xbf16>, vector<2x8x8xf32> -> vector<2x8x8xf32>
    "tpu.trace_stop"() : () -> ()
    %324 = vector.shape_cast %323 : vector<2x8x8xf32> to vector<16x8xf32>
    %325 = arith.truncf %324 : vector<16x8xf32> to vector<16x8xbf16>
    %326 = vector.extract_strided_slice %280 {offsets = [1, 0, 0], sizes = [1, 8, 32], strides = [1, 1, 1]} : vector<4x8x32xbf16> to vector<1x8x32xbf16>
    %327 = vector.shape_cast %326 : vector<1x8x32xbf16> to vector<8x32xbf16>
    %cst_97 = arith.constant dense<0.000000e+00> : vector<16x32xf32>
    %328 = tpu.matmul %325, %327, %cst_97 {dimension_numbers = #tpu.dot_dimension_numbers<[1], [0], [0], [1], [0, 0, 1, 1], [], []>} : vector<16x8xbf16>, vector<8x32xbf16>, vector<16x32xf32> -> vector<16x32xf32>
    %329 = arith.addf %305, %328 : vector<16x32xf32>
    %330 = vector.extract_strided_slice %272 {offsets = [0, 0, 16], sizes = [2, 8, 8], strides = [1, 1, 1]} : vector<2x8x32xbf16> to vector<2x8x8xbf16>
    %331 = vector.extract_strided_slice %275 {offsets = [0, 0, 16], sizes = [2, 8, 8], strides = [1, 1, 1]} : vector<2x8x32xbf16> to vector<2x8x8xbf16>
    "tpu.trace_start"() <{level = 10 : i32, message = "bqd,bkd->bqk"}> : () -> ()
    %cst_98 = arith.constant dense<0.000000e+00> : vector<2x8x8xf32>
    %332 = tpu.matmul %330, %331, %cst_98 {dimension_numbers = #tpu.dot_dimension_numbers<[2], [2], [1], [1], [0, 0, 0, 1, 1, 1], [0], [0]>} : vector<2x8x8xbf16>, vector<2x8x8xbf16>, vector<2x8x8xf32> -> vector<2x8x8xf32>
    "tpu.trace_stop"() : () -> ()
    %333 = vector.broadcast %39 : vector<2x1x8xf32> to vector<2x8x8xf32>
    %334 = arith.addf %332, %333 : vector<2x8x8xf32>
    %cst_99 = arith.constant dense<0xFF800000> : vector<2x8xf32>
    %335 = vector.multi_reduction <maximumf>, %334, %cst_99 [2] : vector<2x8x8xf32> to vector<2x8xf32>
    %336 = vector.shape_cast %335 : vector<2x8xf32> to vector<2x8x1xf32>
    %337 = vector.broadcast %336 : vector<2x8x1xf32> to vector<2x8x8xf32>
    %338 = arith.subf %334, %337 : vector<2x8x8xf32>
    %339 = math.exp %338 : vector<2x8x8xf32>
    %cst_100 = arith.constant dense<0.000000e+00> : vector<2x8xf32>
    %340 = vector.multi_reduction <add>, %339, %cst_100 [2] : vector<2x8x8xf32> to vector<2x8xf32>
    %341 = vector.shape_cast %340 : vector<2x8xf32> to vector<2x8x1xf32>
    %342 = tpu.reciprocal %341 {approx = true} : vector<2x8x1xf32> -> vector<2x8x1xf32>
    %343 = vector.broadcast %342 : vector<2x8x1xf32> to vector<2x8x8xf32>
    %344 = arith.mulf %339, %343 : vector<2x8x8xf32>
    %345 = arith.truncf %344 : vector<2x8x8xf32> to vector<2x8x8xbf16>
    %346 = vector.extract_strided_slice %278 {offsets = [0, 0, 16], sizes = [2, 8, 8], strides = [1, 1, 1]} : vector<2x8x32xbf16> to vector<2x8x8xbf16>
    "tpu.trace_start"() <{level = 10 : i32, message = "bqk,bkd->bqd"}> : () -> ()
    %cst_101 = arith.constant dense<0.000000e+00> : vector<2x8x8xf32>
    %347 = tpu.matmul %345, %346, %cst_101 {dimension_numbers = #tpu.dot_dimension_numbers<[2], [1], [1], [2], [0, 0, 0, 1, 1, 2], [0], [0]>} : vector<2x8x8xbf16>, vector<2x8x8xbf16>, vector<2x8x8xf32> -> vector<2x8x8xf32>
    "tpu.trace_stop"() : () -> ()
    %348 = vector.shape_cast %347 : vector<2x8x8xf32> to vector<16x8xf32>
    %349 = arith.truncf %348 : vector<16x8xf32> to vector<16x8xbf16>
    %350 = vector.extract_strided_slice %280 {offsets = [2, 0, 0], sizes = [1, 8, 32], strides = [1, 1, 1]} : vector<4x8x32xbf16> to vector<1x8x32xbf16>
    %351 = vector.shape_cast %350 : vector<1x8x32xbf16> to vector<8x32xbf16>
    %cst_102 = arith.constant dense<0.000000e+00> : vector<16x32xf32>
    %352 = tpu.matmul %349, %351, %cst_102 {dimension_numbers = #tpu.dot_dimension_numbers<[1], [0], [0], [1], [0, 0, 1, 1], [], []>} : vector<16x8xbf16>, vector<8x32xbf16>, vector<16x32xf32> -> vector<16x32xf32>
    %353 = arith.addf %329, %352 : vector<16x32xf32>
    %354 = vector.extract_strided_slice %272 {offsets = [0, 0, 24], sizes = [2, 8, 8], strides = [1, 1, 1]} : vector<2x8x32xbf16> to vector<2x8x8xbf16>
    %355 = vector.extract_strided_slice %275 {offsets = [0, 0, 24], sizes = [2, 8, 8], strides = [1, 1, 1]} : vector<2x8x32xbf16> to vector<2x8x8xbf16>
    "tpu.trace_start"() <{level = 10 : i32, message = "bqd,bkd->bqk"}> : () -> ()
    %cst_103 = arith.constant dense<0.000000e+00> : vector<2x8x8xf32>
    %356 = tpu.matmul %354, %355, %cst_103 {dimension_numbers = #tpu.dot_dimension_numbers<[2], [2], [1], [1], [0, 0, 0, 1, 1, 1], [0], [0]>} : vector<2x8x8xbf16>, vector<2x8x8xbf16>, vector<2x8x8xf32> -> vector<2x8x8xf32>
    "tpu.trace_stop"() : () -> ()
    %357 = vector.broadcast %39 : vector<2x1x8xf32> to vector<2x8x8xf32>
    %358 = arith.addf %356, %357 : vector<2x8x8xf32>
    %cst_104 = arith.constant dense<0xFF800000> : vector<2x8xf32>
    %359 = vector.multi_reduction <maximumf>, %358, %cst_104 [2] : vector<2x8x8xf32> to vector<2x8xf32>
    %360 = vector.shape_cast %359 : vector<2x8xf32> to vector<2x8x1xf32>
    %361 = vector.broadcast %360 : vector<2x8x1xf32> to vector<2x8x8xf32>
    %362 = arith.subf %358, %361 : vector<2x8x8xf32>
    %363 = math.exp %362 : vector<2x8x8xf32>
    %cst_105 = arith.constant dense<0.000000e+00> : vector<2x8xf32>
    %364 = vector.multi_reduction <add>, %363, %cst_105 [2] : vector<2x8x8xf32> to vector<2x8xf32>
    %365 = vector.shape_cast %364 : vector<2x8xf32> to vector<2x8x1xf32>
    %366 = tpu.reciprocal %365 {approx = true} : vector<2x8x1xf32> -> vector<2x8x1xf32>
    %367 = vector.broadcast %366 : vector<2x8x1xf32> to vector<2x8x8xf32>
    %368 = arith.mulf %363, %367 : vector<2x8x8xf32>
    %369 = arith.truncf %368 : vector<2x8x8xf32> to vector<2x8x8xbf16>
    %370 = vector.extract_strided_slice %278 {offsets = [0, 0, 24], sizes = [2, 8, 8], strides = [1, 1, 1]} : vector<2x8x32xbf16> to vector<2x8x8xbf16>
    "tpu.trace_start"() <{level = 10 : i32, message = "bqk,bkd->bqd"}> : () -> ()
    %cst_106 = arith.constant dense<0.000000e+00> : vector<2x8x8xf32>
    %371 = tpu.matmul %369, %370, %cst_106 {dimension_numbers = #tpu.dot_dimension_numbers<[2], [1], [1], [2], [0, 0, 0, 1, 1, 2], [0], [0]>} : vector<2x8x8xbf16>, vector<2x8x8xbf16>, vector<2x8x8xf32> -> vector<2x8x8xf32>
    "tpu.trace_stop"() : () -> ()
    %372 = vector.shape_cast %371 : vector<2x8x8xf32> to vector<16x8xf32>
    %373 = arith.truncf %372 : vector<16x8xf32> to vector<16x8xbf16>
    %374 = vector.extract_strided_slice %280 {offsets = [3, 0, 0], sizes = [1, 8, 32], strides = [1, 1, 1]} : vector<4x8x32xbf16> to vector<1x8x32xbf16>
    %375 = vector.shape_cast %374 : vector<1x8x32xbf16> to vector<8x32xbf16>
    %cst_107 = arith.constant dense<0.000000e+00> : vector<16x32xf32>
    %376 = tpu.matmul %373, %375, %cst_107 {dimension_numbers = #tpu.dot_dimension_numbers<[1], [0], [0], [1], [0, 0, 1, 1], [], []>} : vector<16x8xbf16>, vector<8x32xbf16>, vector<16x32xf32> -> vector<16x32xf32>
    %377 = arith.addf %353, %376 : vector<16x32xf32>
    %378 = vector.extract_strided_slice %260 {offsets = [1, 0], sizes = [1, 32], strides = [1, 1]} : vector<8x128xf32> to vector<1x32xf32>
    %379 = vector.broadcast %378 : vector<1x32xf32> to vector<16x32xf32>
    %380 = arith.addf %377, %379 : vector<16x32xf32>
    %381 = arith.addf %258, %380 : vector<16x32xf32>
    %382 = vector.extract_strided_slice %260 {offsets = [2, 0], sizes = [1, 32], strides = [1, 1]} : vector<8x128xf32> to vector<1x32xf32>
    %383 = vector.extract_strided_slice %260 {offsets = [3, 0], sizes = [1, 32], strides = [1, 1]} : vector<8x128xf32> to vector<1x32xf32>
    %cst_108 = arith.constant dense<0.000000e+00> : vector<16xf32>
    %384 = vector.multi_reduction <add>, %381, %cst_108 [1] : vector<16x32xf32> to vector<16xf32>
    %385 = vector.shape_cast %384 : vector<16xf32> to vector<16x1xf32>
    %cst_109 = arith.constant 3.200000e+01 : f32
    %386 = vector.broadcast %cst_109 : f32 to vector<16x1xf32>
    %387 = arith.divf %385, %386 : vector<16x1xf32>
    %388 = vector.broadcast %387 : vector<16x1xf32> to vector<16x32xf32>
    %389 = arith.subf %381, %388 : vector<16x32xf32>
    %390 = arith.mulf %389, %389 : vector<16x32xf32>
    %cst_110 = arith.constant dense<0.000000e+00> : vector<16xf32>
    %391 = vector.multi_reduction <add>, %390, %cst_110 [1] : vector<16x32xf32> to vector<16xf32>
    %392 = vector.shape_cast %391 : vector<16xf32> to vector<16x1xf32>
    %cst_111 = arith.constant 3.200000e+01 : f32
    %393 = vector.broadcast %cst_111 : f32 to vector<16x1xf32>
    %394 = arith.divf %392, %393 : vector<16x1xf32>
    %395 = vector.broadcast %387 : vector<16x1xf32> to vector<16x32xf32>
    %396 = arith.subf %381, %395 : vector<16x32xf32>
    %cst_112 = arith.constant 9.99999974E-6 : f32
    %397 = vector.broadcast %cst_112 : f32 to vector<16x1xf32>
    %398 = arith.addf %394, %397 : vector<16x1xf32>
    %399 = math.rsqrt %398 : vector<16x1xf32>
    %400 = vector.broadcast %399 : vector<16x1xf32> to vector<16x32xf32>
    %401 = arith.mulf %396, %400 : vector<16x32xf32>
    %402 = vector.broadcast %382 : vector<1x32xf32> to vector<16x32xf32>
    %403 = arith.mulf %401, %402 : vector<16x32xf32>
    %404 = vector.broadcast %383 : vector<1x32xf32> to vector<16x32xf32>
    %405 = arith.addf %403, %404 : vector<16x32xf32>
    %c1_113 = arith.constant 1 : index
    %c0_114 = arith.constant 0 : index
    %c0_115 = arith.constant 0 : index
    %406 = vector.load %arg5[%c1_113, %c0_114, %c0_115] : memref<2x32x64xbf16, #tpu.memory_space<vmem>>, vector<1x32x64xbf16>
    %407 = vector.shape_cast %406 : vector<1x32x64xbf16> to vector<32x64xbf16>
    %408 = vector.extract_strided_slice %260 {offsets = [4, 0], sizes = [1, 64], strides = [1, 1]} : vector<8x128xf32> to vector<1x64xf32>
    %409 = arith.truncf %405 : vector<16x32xf32> to vector<16x32xbf16>
    %cst_116 = arith.constant dense<0.000000e+00> : vector<16x64xf32>
    %410 = tpu.matmul %409, %407, %cst_116 {dimension_numbers = #tpu.dot_dimension_numbers<[1], [0], [0], [1], [0, 0, 1, 1], [], []>} : vector<16x32xbf16>, vector<32x64xbf16>, vector<16x64xf32> -> vector<16x64xf32>
    %411 = vector.broadcast %408 : vector<1x64xf32> to vector<16x64xf32>
    %412 = arith.addf %410, %411 : vector<16x64xf32>
    %cst_117 = arith.constant 0.707106769 : f32
    %413 = vector.broadcast %cst_117 : f32 to vector<16x64xf32>
    %414 = arith.mulf %412, %413 : vector<16x64xf32>
    %415 = math.absf %414 : vector<16x64xf32>
    %cst_118 = arith.constant 0.327591091 : f32
    %416 = vector.broadcast %cst_118 : f32 to vector<16x64xf32>
    %417 = arith.mulf %416, %415 : vector<16x64xf32>
    %cst_119 = arith.constant 1.000000e+00 : f32
    %418 = vector.broadcast %cst_119 : f32 to vector<16x64xf32>
    %419 = arith.addf %418, %417 : vector<16x64xf32>
    %420 = tpu.reciprocal %419 {approx = true} : vector<16x64xf32> -> vector<16x64xf32>
    %cst_120 = arith.constant 0.53070271 : f32
    %421 = vector.broadcast %cst_120 : f32 to vector<16x64xf32>
    %422 = arith.mulf %421, %420 : vector<16x64xf32>
    %cst_121 = arith.constant -0.72657603 : f32
    %423 = vector.broadcast %cst_121 : f32 to vector<16x64xf32>
    %424 = arith.addf %422, %423 : vector<16x64xf32>
    %425 = arith.mulf %424, %420 : vector<16x64xf32>
    %cst_122 = arith.constant 0.710706889 : f32
    %426 = vector.broadcast %cst_122 : f32 to vector<16x64xf32>
    %427 = arith.addf %425, %426 : vector<16x64xf32>
    %428 = arith.mulf %427, %420 : vector<16x64xf32>
    %cst_123 = arith.constant -0.142248362 : f32
    %429 = vector.broadcast %cst_123 : f32 to vector<16x64xf32>
    %430 = arith.addf %428, %429 : vector<16x64xf32>
    %431 = arith.mulf %430, %420 : vector<16x64xf32>
    %cst_124 = arith.constant 0.127414793 : f32
    %432 = vector.broadcast %cst_124 : f32 to vector<16x64xf32>
    %433 = arith.addf %431, %432 : vector<16x64xf32>
    %434 = arith.mulf %433, %420 : vector<16x64xf32>
    %cst_125 = arith.constant 0.000000e+00 : f32
    %435 = vector.broadcast %cst_125 : f32 to vector<16x64xf32>
    %436 = arith.subf %435, %415 : vector<16x64xf32>
    %437 = arith.mulf %436, %415 : vector<16x64xf32>
    %438 = math.exp %437 : vector<16x64xf32>
    %439 = arith.mulf %434, %438 : vector<16x64xf32>
    %cst_126 = arith.constant 0.000000e+00 : f32
    %440 = vector.broadcast %cst_126 : f32 to vector<16x64xf32>
    %441 = arith.cmpf oge, %412, %440 : vector<16x64xf32>
    %cst_127 = arith.constant 1.000000e+00 : f32
    %442 = vector.broadcast %cst_127 : f32 to vector<16x64xf32>
    %443 = arith.subf %442, %439 : vector<16x64xf32>
    %444 = arith.select %441, %443, %439 : vector<16x64xi1>, vector<16x64xf32>
    %445 = arith.mulf %412, %444 : vector<16x64xf32>
    %c1_128 = arith.constant 1 : index
    %c0_129 = arith.constant 0 : index
    %c0_130 = arith.constant 0 : index
    %446 = vector.load %arg6[%c1_128, %c0_129, %c0_130] : memref<2x64x32xbf16, #tpu.memory_space<vmem>>, vector<1x64x32xbf16>
    %447 = vector.shape_cast %446 : vector<1x64x32xbf16> to vector<64x32xbf16>
    %448 = vector.extract_strided_slice %260 {offsets = [5, 0], sizes = [1, 32], strides = [1, 1]} : vector<8x128xf32> to vector<1x32xf32>
    %449 = arith.truncf %445 : vector<16x64xf32> to vector<16x64xbf16>
    %cst_131 = arith.constant dense<0.000000e+00> : vector<16x32xf32>
    %450 = tpu.matmul %449, %447, %cst_131 {dimension_numbers = #tpu.dot_dimension_numbers<[1], [0], [0], [1], [0, 0, 1, 1], [], []>} : vector<16x64xbf16>, vector<64x32xbf16>, vector<16x32xf32> -> vector<16x32xf32>
    %451 = vector.broadcast %448 : vector<1x32xf32> to vector<16x32xf32>
    %452 = arith.addf %450, %451 : vector<16x32xf32>
    %453 = arith.addf %405, %452 : vector<16x32xf32>
    %454 = vector.extract_strided_slice %260 {offsets = [6, 0], sizes = [1, 32], strides = [1, 1]} : vector<8x128xf32> to vector<1x32xf32>
    %455 = vector.extract_strided_slice %260 {offsets = [7, 0], sizes = [1, 32], strides = [1, 1]} : vector<8x128xf32> to vector<1x32xf32>
    %cst_132 = arith.constant dense<0.000000e+00> : vector<16xf32>
    %456 = vector.multi_reduction <add>, %453, %cst_132 [1] : vector<16x32xf32> to vector<16xf32>
    %457 = vector.shape_cast %456 : vector<16xf32> to vector<16x1xf32>
    %cst_133 = arith.constant 3.200000e+01 : f32
    %458 = vector.broadcast %cst_133 : f32 to vector<16x1xf32>
    %459 = arith.divf %457, %458 : vector<16x1xf32>
    %460 = vector.broadcast %459 : vector<16x1xf32> to vector<16x32xf32>
    %461 = arith.subf %453, %460 : vector<16x32xf32>
    %462 = arith.mulf %461, %461 : vector<16x32xf32>
    %cst_134 = arith.constant dense<0.000000e+00> : vector<16xf32>
    %463 = vector.multi_reduction <add>, %462, %cst_134 [1] : vector<16x32xf32> to vector<16xf32>
    %464 = vector.shape_cast %463 : vector<16xf32> to vector<16x1xf32>
    %cst_135 = arith.constant 3.200000e+01 : f32
    %465 = vector.broadcast %cst_135 : f32 to vector<16x1xf32>
    %466 = arith.divf %464, %465 : vector<16x1xf32>
    %467 = vector.broadcast %459 : vector<16x1xf32> to vector<16x32xf32>
    %468 = arith.subf %453, %467 : vector<16x32xf32>
    %cst_136 = arith.constant 9.99999974E-6 : f32
    %469 = vector.broadcast %cst_136 : f32 to vector<16x1xf32>
    %470 = arith.addf %466, %469 : vector<16x1xf32>
    %471 = math.rsqrt %470 : vector<16x1xf32>
    %472 = vector.broadcast %471 : vector<16x1xf32> to vector<16x32xf32>
    %473 = arith.mulf %468, %472 : vector<16x32xf32>
    %474 = vector.broadcast %454 : vector<1x32xf32> to vector<16x32xf32>
    %475 = arith.mulf %473, %474 : vector<16x32xf32>
    %476 = vector.broadcast %455 : vector<1x32xf32> to vector<16x32xf32>
    %477 = arith.addf %475, %476 : vector<16x32xf32>
    %478 = vector.shape_cast %477 : vector<16x32xf32> to vector<2x8x32xf32>
    %479 = vector.extract_strided_slice %478 {offsets = [0, 0, 0], sizes = [2, 1, 32], strides = [1, 1, 1]} : vector<2x8x32xf32> to vector<2x1x32xf32>
    %480 = vector.shape_cast %479 : vector<2x1x32xf32> to vector<2x32xf32>
    %c0_137 = arith.constant 0 : index
    %c0_138 = arith.constant 0 : index
    %481 = vector.load %arg9[%c0_137, %c0_138] : memref<32x32xbf16, #tpu.memory_space<vmem>>, vector<32x32xbf16>
    %482 = vector.extract_strided_slice %0 {offsets = [2, 0], sizes = [1, 32], strides = [1, 1]} : vector<8x128xf32> to vector<1x32xf32>
    %483 = arith.truncf %480 : vector<2x32xf32> to vector<2x32xbf16>
    %cst_139 = arith.constant dense<0.000000e+00> : vector<2x32xf32>
    %484 = tpu.matmul %483, %481, %cst_139 {dimension_numbers = #tpu.dot_dimension_numbers<[1], [0], [0], [1], [0, 0, 1, 1], [], []>} : vector<2x32xbf16>, vector<32x32xbf16>, vector<2x32xf32> -> vector<2x32xf32>
    %485 = vector.broadcast %482 : vector<1x32xf32> to vector<2x32xf32>
    %486 = arith.addf %484, %485 : vector<2x32xf32>
    %487 = vector.extract_strided_slice %0 {offsets = [3, 0], sizes = [1, 32], strides = [1, 1]} : vector<8x128xf32> to vector<1x32xf32>
    %488 = vector.extract_strided_slice %0 {offsets = [4, 0], sizes = [1, 32], strides = [1, 1]} : vector<8x128xf32> to vector<1x32xf32>
    %cst_140 = arith.constant dense<0.000000e+00> : vector<2xf32>
    %489 = vector.multi_reduction <add>, %486, %cst_140 [1] : vector<2x32xf32> to vector<2xf32>
    %490 = vector.shape_cast %489 : vector<2xf32> to vector<2x1xf32>
    %cst_141 = arith.constant 3.200000e+01 : f32
    %491 = vector.broadcast %cst_141 : f32 to vector<2x1xf32>
    %492 = arith.divf %490, %491 : vector<2x1xf32>
    %493 = vector.broadcast %492 : vector<2x1xf32> to vector<2x32xf32>
    %494 = arith.subf %486, %493 : vector<2x32xf32>
    %495 = arith.mulf %494, %494 : vector<2x32xf32>
    %cst_142 = arith.constant dense<0.000000e+00> : vector<2xf32>
    %496 = vector.multi_reduction <add>, %495, %cst_142 [1] : vector<2x32xf32> to vector<2xf32>
    %497 = vector.shape_cast %496 : vector<2xf32> to vector<2x1xf32>
    %cst_143 = arith.constant 3.200000e+01 : f32
    %498 = vector.broadcast %cst_143 : f32 to vector<2x1xf32>
    %499 = arith.divf %497, %498 : vector<2x1xf32>
    %500 = vector.broadcast %492 : vector<2x1xf32> to vector<2x32xf32>
    %501 = arith.subf %486, %500 : vector<2x32xf32>
    %cst_144 = arith.constant 9.99999974E-6 : f32
    %502 = vector.broadcast %cst_144 : f32 to vector<2x1xf32>
    %503 = arith.addf %499, %502 : vector<2x1xf32>
    %504 = math.rsqrt %503 : vector<2x1xf32>
    %505 = vector.broadcast %504 : vector<2x1xf32> to vector<2x32xf32>
    %506 = arith.mulf %501, %505 : vector<2x32xf32>
    %507 = vector.broadcast %487 : vector<1x32xf32> to vector<2x32xf32>
    %508 = arith.mulf %506, %507 : vector<2x32xf32>
    %509 = vector.broadcast %488 : vector<1x32xf32> to vector<2x32xf32>
    %510 = arith.addf %508, %509 : vector<2x32xf32>
    %511 = vector.shape_cast %6 : vector<2x8xf32> to vector<2x8x1xf32>
    %512 = vector.broadcast %511 : vector<2x8x1xf32> to vector<2x8x32xf32>
    %513 = arith.mulf %478, %512 : vector<2x8x32xf32>
    %cst_145 = arith.constant dense<0.000000e+00> : vector<2x32xf32>
    %514 = vector.multi_reduction <add>, %513, %cst_145 [1] : vector<2x8x32xf32> to vector<2x32xf32>
    %cst_146 = arith.constant dense<0.000000e+00> : vector<2xf32>
    %515 = vector.multi_reduction <add>, %6, %cst_146 [1] : vector<2x8xf32> to vector<2xf32>
    %516 = vector.shape_cast %515 : vector<2xf32> to vector<2x1xf32>
    %517 = vector.broadcast %516 : vector<2x1xf32> to vector<2x32xf32>
    %518 = arith.divf %514, %517 : vector<2x32xf32>
    %519 = vector.shape_cast %8 : vector<2x8xf32> to vector<2x8x1xf32>
    %520 = vector.broadcast %519 : vector<2x8x1xf32> to vector<2x8x32xf32>
    %521 = arith.mulf %478, %520 : vector<2x8x32xf32>
    %cst_147 = arith.constant dense<0.000000e+00> : vector<2x32xf32>
    %522 = vector.multi_reduction <add>, %521, %cst_147 [1] : vector<2x8x32xf32> to vector<2x32xf32>
    %cst_148 = arith.constant dense<0.000000e+00> : vector<2xf32>
    %523 = vector.multi_reduction <add>, %8, %cst_148 [1] : vector<2x8xf32> to vector<2xf32>
    %524 = vector.shape_cast %523 : vector<2xf32> to vector<2x1xf32>
    %525 = vector.broadcast %524 : vector<2x1xf32> to vector<2x32xf32>
    %526 = arith.divf %522, %525 : vector<2x32xf32>
    %c0_149 = arith.constant 0 : index
    %c0_150 = arith.constant 0 : index
    %c0_151 = arith.constant 0 : index
    %527 = vector.load %arg10[%c0_149, %c0_150, %c0_151] : memref<1x2x128xf32, #tpu.memory_space<vmem>>, vector<1x2x32xf32>
    %528 = vector.shape_cast %527 : vector<1x2x32xf32> to vector<2x32xf32>
    %529 = vector.shape_cast %510 : vector<2x32xf32> to vector<1x2x32xf32>
    tpu.vector_store %arg10[%c0_149, %c0_150, %c0_151], %529 {strides = array<i32>} : memref<1x2x128xf32, #tpu.memory_space<vmem>>, vector<1x2x32xf32>,
    %c0_152 = arith.constant 0 : index
    %c0_153 = arith.constant 0 : index
    %c32 = arith.constant 32 : index
    %530 = vector.load %arg10[%c0_152, %c0_153, %c32] : memref<1x2x128xf32, #tpu.memory_space<vmem>>, vector<1x2x32xf32>
    %531 = vector.shape_cast %530 : vector<1x2x32xf32> to vector<2x32xf32>
    %532 = vector.shape_cast %518 : vector<2x32xf32> to vector<1x2x32xf32>
    tpu.vector_store %arg10[%c0_152, %c0_153, %c32], %532 {strides = array<i32>} : memref<1x2x128xf32, #tpu.memory_space<vmem>>, vector<1x2x32xf32>,
    %c0_154 = arith.constant 0 : index
    %c0_155 = arith.constant 0 : index
    %c64 = arith.constant 64 : index
    %533 = vector.load %arg10[%c0_154, %c0_155, %c64] : memref<1x2x128xf32, #tpu.memory_space<vmem>>, vector<1x2x32xf32>
    %534 = vector.shape_cast %533 : vector<1x2x32xf32> to vector<2x32xf32>
    %535 = vector.shape_cast %526 : vector<2x32xf32> to vector<1x2x32xf32>
    tpu.vector_store %arg10[%c0_154, %c0_155, %c64], %535 {strides = array<i32>} : memref<1x2x128xf32, #tpu.memory_space<vmem>>, vector<1x2x32xf32>,
    %cst_156 = arith.constant 0.000000e+00 : f32
    %536 = vector.broadcast %cst_156 : f32 to vector<2x32xf32>
    %c0_157 = arith.constant 0 : index
    %c0_158 = arith.constant 0 : index
    %c96 = arith.constant 96 : index
    %537 = vector.load %arg10[%c0_157, %c0_158, %c96] : memref<1x2x128xf32, #tpu.memory_space<vmem>>, vector<1x2x32xf32>
    %538 = vector.shape_cast %537 : vector<1x2x32xf32> to vector<2x32xf32>
    %539 = vector.shape_cast %536 : vector<2x32xf32> to vector<1x2x32xf32>
    tpu.vector_store %arg10[%c0_157, %c0_158, %c96], %539 {strides = array<i32>} : memref<1x2x128xf32, #tpu.memory_space<vmem>>, vector<1x2x32xf32>,
    return
  }
  func.func @transform_0(%arg0: i32) -> (i32, i32, i32) {
    %c0_i32 = arith.constant 0 : i32
    %c0_i32_0 = arith.constant 0 : i32
    %c0_i32_1 = arith.constant 0 : i32
    return %arg0, %c0_i32, %c0_i32_0 : i32, i32, i32
  }
  func.func @transform_1(%arg0: i32) -> (i32, i32, i32, i32) {
    %c0_i32 = arith.constant 0 : i32
    %c0_i32_0 = arith.constant 0 : i32
    %c0_i32_1 = arith.constant 0 : i32
    %c0_i32_2 = arith.constant 0 : i32
    return %arg0, %c0_i32, %c0_i32_0, %c0_i32_1 : i32, i32, i32, i32
  }
  func.func @transform_2(%arg0: i32) -> (i32, i32, i32) {
    %c0_i32 = arith.constant 0 : i32
    %c0_i32_0 = arith.constant 0 : i32
    %c0_i32_1 = arith.constant 0 : i32
    %c0_i32_2 = arith.constant 0 : i32
    return %c0_i32, %c0_i32_0, %c0_i32_1 : i32, i32, i32
  }
  func.func @transform_3(%arg0: i32) -> (i32, i32, i32, i32) {
    %c0_i32 = arith.constant 0 : i32
    %c0_i32_0 = arith.constant 0 : i32
    %c0_i32_1 = arith.constant 0 : i32
    %c0_i32_2 = arith.constant 0 : i32
    %c0_i32_3 = arith.constant 0 : i32
    return %c0_i32, %c0_i32_0, %c0_i32_1, %c0_i32_2 : i32, i32, i32, i32
  }
  func.func @transform_4(%arg0: i32) -> (i32, i32, i32) {
    %c0_i32 = arith.constant 0 : i32
    %c0_i32_0 = arith.constant 0 : i32
    %c0_i32_1 = arith.constant 0 : i32
    %c0_i32_2 = arith.constant 0 : i32
    return %c0_i32, %c0_i32_0, %c0_i32_1 : i32, i32, i32
  }
  func.func @transform_5(%arg0: i32) -> (i32, i32, i32) {
    %c0_i32 = arith.constant 0 : i32
    %c0_i32_0 = arith.constant 0 : i32
    %c0_i32_1 = arith.constant 0 : i32
    %c0_i32_2 = arith.constant 0 : i32
    return %c0_i32, %c0_i32_0, %c0_i32_1 : i32, i32, i32
  }
  func.func @transform_6(%arg0: i32) -> (i32, i32, i32) {
    %c0_i32 = arith.constant 0 : i32
    %c0_i32_0 = arith.constant 0 : i32
    %c0_i32_1 = arith.constant 0 : i32
    %c0_i32_2 = arith.constant 0 : i32
    return %c0_i32, %c0_i32_0, %c0_i32_1 : i32, i32, i32
  }
  func.func @transform_7(%arg0: i32) -> (i32, i32) {
    %c0_i32 = arith.constant 0 : i32
    %c0_i32_0 = arith.constant 0 : i32
    %c0_i32_1 = arith.constant 0 : i32
    return %c0_i32, %c0_i32_0 : i32, i32
  }
  func.func @transform_8(%arg0: i32) -> (i32, i32) {
    %c0_i32 = arith.constant 0 : i32
    %c0_i32_0 = arith.constant 0 : i32
    %c0_i32_1 = arith.constant 0 : i32
    return %c0_i32, %c0_i32_0 : i32, i32
  }
  func.func @transform_9(%arg0: i32) -> (i32, i32, i32) {
    %c0_i32 = arith.constant 0 : i32
    %c0_i32_0 = arith.constant 0 : i32
    %c0_i32_1 = arith.constant 0 : i32
    return %arg0, %c0_i32, %c0_i32_0 : i32, i32, i32
  }
}

</mosaic_0001>

<bundles_post_ra>
// kernel: encode_batch.1
= control target key start
LH: loop header
LB: loop body
LE: loop exit
PB: predicated region body
PF: predicated region fallthrough
CT: control target
= control target key end

     0   :  { %s4326_s30 = smov 0   ;;  %s5032_s0 = inlined_call_operand.vmem [shape: f32[3,16,32], index: 0, kind: input, shape index: {}]   ;;  %s5033_s1 = inlined_call_operand.vmem [shape: f32[3,3,2,8], index: 1, kind: input, shape index: {}]   ;;  %s5034_s2 = inlined_call_operand.vmem [shape: bf16[2,32,96], index: 2, kind: input, shape index: {}]   ;;  %s5035_s3 = inlined_call_operand.vmem [shape: bf16[2,4,8,32], index: 3, kind: input, shape index: {}]   ;;  %s5036_s4 = inlined_call_operand.vmem [shape: bf16[2,32,64], index: 4, kind: input, shape index: {}]   ;;  %s5037_s5 = inlined_call_operand.vmem [shape: bf16[2,64,32], index: 5, kind: input, shape index: {}]   ;;  %s5038_s6 = inlined_call_operand.vmem [shape: f32[2,8,128], index: 6, kind: input, shape index: {}]   ;;  %s5039_s7 = inlined_call_operand.vmem [shape: f32[8,128], index: 7, kind: input, shape index: {}]   ;;  %s5040_s8 = inlined_call_operand.vmem [shape: bf16[32,32], index: 8, kind: input, shape index: {}]   ;;  %s5041_s9 = inlined_call_operand.vmem [shape: f32[3,2,128], index: 9, kind: output, shape index: {}]  }
   0x1 LB: > { %s3575_s10 = sadd.s32 4294967295, %s4259_s30   ;;  %p3579_p0 = scmp.ge.s32.totalorder %s4259_s30, 1  ;;  %s4259_s30 = sphi %s4326_s30, %s19_s30  }
   0x2   : > { %p297_p1 = scmp.lt.s32.totalorder %s4259_s30, 4 }
   0x4   : > { %p298_p2 = pnand %p3579_p0, %p297_p1 }
   0x5   : > { %p337_p3 = scmp.lt.s32.totalorder (!%p298_p2), %s3575_s10, 2  ;;  %vm358_vm0 = vcmask (!%p298_p2), 261120   ;;  %v4122_v14 = vld [vmem:[%s5034_s2] sm:$0xff] (!%p298_p2)   ;;  %v4261_v15 = vmov (!%p298_p2), 0.0   ;;  %vm4262_vm1 = vmmov (!%p298_p2), 0   ;;  %v4123_v16 = vld [vmem:[%s5034_s2 + $0x8] sm:$0xff] (!%p298_p2)   ;;  %v386_v20 = vlaneseq (!%p298_p2) }
   0x6   : > { %301 = sbr.rel (%p298_p2) target bundleno = 9792 (0x2640), region = 56  ;;  %3794 = vmatprep.subr.bf16.mxu0 (!%p298_p2), %v4261_v15  ;;  %3798 = vmatprep.mubr.msk.bf16.mxu0 (!%p298_p2), %vm4262_vm1, %v4261_v15  ;;  %v352_v26 = vld [vmem:[%s5039_s7] sm:$0xff] (!%p298_p2)  ;;  %s4263_s23 = smov (!%p298_p2), 96   ;;  %vm518_vm2 = vcmask (!%p298_p2), 64512   ;;  %v4264_v57 = vmov (!%p298_p2), 1966171168  }
   0x7   : > { %3795 = vmatpush3.bf16.msra.mxu0 (!%p298_p2), %v4122_v14  ;;  %3802 = vmatprep.subr.bf16.mxu1 (!%p298_p2), %v4261_v15  ;;  %v4358_v24 = vshrl.u32 (!%p298_p2), %v386_v20, 7  ;;  %v4383_v39 = vld [vmem:[%s5038_s6] sm:$0xff] (!%p298_p2)  ;;  %v402_v58 = vunpack.c.l.s4 (!%p298_p2), %v4264_v57  ;;  %s4265_s28 = smov (!%p298_p2), 64   ;;  %s4266_s29 = smov (!%p298_p2), 88   ;;  %vm643_vm3 = vcmask (!%p298_p2), 1043456   ;;  %vm1785_vm6 = vcmask (!%p298_p2), 523264  }
   0x8   : > { %3796 = vmatprep.subr.bf16.mxu0 (!%p298_p2), %v4261_v15  ;;  %3804 = vmatprep.mubr.msk.bf16.mxu1 (!%p298_p2), %vm4262_vm1, %v4261_v15  ;;  %s4268_s12 = smov (!%p298_p2), 56   ;;  %s4269_s13 = smov (!%p298_p2), 80   ;;  %vm3436_vm9 = vcmask (!%p298_p2), 58368   ;;  %vm3324_vm10 = vcmask (!%p298_p2), 1041409   ;;  %vm3382_vm11 = vcmask (!%p298_p2), 254976   ;;  %vm3497_vm12 = vcmask (!%p298_p2), 517376  }
   0x9   : > { %v4361_v25 = vsub.s32 (!%p298_p2), 0, %v4358_v24  ;;  %v4368_v30 = vsub.s32 (!%p298_p2), 1, %v4358_v24  ;;  %v403_v61 = vunpack.c.0.s8 (!%p298_p2), %v402_v58  ;;  %s4271_s19 = smov (!%p298_p2), 48   ;;  %s4272_s20 = smov (!%p298_p2), 72   ;;  %vm3506_vm13 = vcmask (!%p298_p2), 779776  }
   0xa   : > { %s4273_s21 = smov (!%p298_p2), 104   ;;  %s4274_s25 = smov (!%p298_p2), 40   ;;  %vm3508_vm14 = vcmask (!%p298_p2), 1042176  }
   0xb   : > { %3797 = vmatpush3.bf16.msra.mxu0 (!%p298_p2), %v4123_v16  ;;  %v389_v29 = vrot.slane (!%p298_p2), %v352_v26, %v4361_v25  ;;  %v395_v34 = vrot.slane (!%p298_p2), %v352_v26, %v4368_v30  ;;  %v432_v40 = vrot.slane (!%p298_p2), %v4383_v39, %v4361_v25  ;;  %v406_v63 = vsub.s32 (!%p298_p2), %v403_v61, %v4358_v24  ;;  %s4275_s15 = smov (!%p298_p2), 32  }
   0xc   : > { %3808 = vmatprep.subr.bf16.mxu0 (!%p298_p2), %v4261_v15 }
   0xd   : > { %s5043_s10 = smov (!%p337_p3, %s3575_s10), 2 }
   0xe   : > { %s3680_s11 = sshll.u32 %s5043_s10, 4  ;;  %s4098_s24 = smul.u32 6, %s5043_s10 }
   0xf   : > { %s341_s14 = scalar_lea.vmem %s5032_s0, %s3680_s11  ;;  %s4267_s11 = smov 120  }
  0x10   : > { %v356_v0 = vld [vmem:[%s341_s14] sm:$0xff]  ;;  %v357_v1 = vld [vmem:[%s341_s14 + $0x8] sm:$0xff]  ;;  %s4415_s27 = scalar_lea.vmem %s5033_s1, %s4098_s24  ;;  %s4270_s14 = smov 112  }
  0x11   : > { %v359_v2 = vsel %vm358_vm0, %v356_v0, 0.0  ;;  %v362_v3 = vsel %vm358_vm0, %v357_v1, 0.0  ;;  %v353_v59 = vld [vmem:[%s4415_s27] sm:$0x3]  ;;  %s3583_s16 = sshll.u32 %s5043_s10, 1 }
  0x12   : > { %360 = vadd.xlane.f32.xlu0 %v359_v2  ;;  %v398_v60 = vsub.f32 1.0, %v353_v59  ;;  %s350_s22 = scalar_lea.vmem %s5041_s9, %s3583_s16 }
  0x14   : > { %v399_v62 = vmul.f32 -1e+09, %v398_v60 }
  0x16   : > { %363 = vadd.xlane.f32.xlu0 %v362_v3 }
  0x9f   : > { %v361_v4 = vpop.xlane.xlu0 %360 }
  0xa0   : > { %v366_v5 = vmul.f32 0.03125, %v361_v4 }
  0xa2   : > { %v368_v6 = vsub.f32 %v356_v0, %v366_v5  ;;  %v407_v0 = vrot.slane %v399_v62, %v406_v63 }
  0xa3   : > { %v364_v7 = vpop.xlane.xlu0 %363 }
  0xa4   : > { %v367_v8 = vmul.f32 0.03125, %v364_v7  ;;  %v370_v9 = vmul.f32 %v368_v6, %v368_v6  ;;  %v415_v2 = vrot.slane %v407_v0, %v406_v63 }
  0xa6   : > { %v369_v10 = vsub.f32 %v357_v1, %v367_v8  ;;  %v372_v11 = vsel %vm358_vm0, %v370_v9, 0.0  ;;  %v408_v1 = vcombine.high %v407_v0, %v407_v0  ;;  %v4420_v4 = vrot.slane %v415_v2, %v4361_v25 }
  0xa7   : > { %373 = vadd.xlane.f32.xlu1 %v372_v11 }
  0xa8   : > { %v371_v12 = vmul.f32 %v369_v10, %v369_v10  ;;  %v422_v3 = vrot.slane %v408_v1, %v406_v63 }
  0xaa   : > { %v375_v13 = vsel %vm358_vm0, %v371_v12, 0.0  ;;  %v4423_v5 = vrot.slane %v422_v3, %v4361_v25 }
  0xab   : > { %376 = vadd.xlane.f32.xlu1 %v375_v13 }
 0x134   : > { %v374_v17 = vpop.xlane.xlu1 %373 }
 0x135   : > { %v378_v18 = vmul.f32 0.03125, %v374_v17 }
 0x137   : > { %v380_v19 = vadd.f32 1e-05, %v378_v18 }
 0x138   : > { %v377_v21 = vpop.xlane.xlu1 %376 }
 0x139   : > { %4140 = vrsqrt.f32 %v380_v19  ;;  %v379_v22 = vmul.f32 0.03125, %v377_v21 }
 0x13b   : > { %v381_v23 = vadd.f32 1e-05, %v379_v22 }
 0x13d   : > { %4142 = vrsqrt.f32 %v381_v23 }
 0x143   : > { %v4141_v27 = vpop.eup %4140 }
 0x144   : > { %v384_v28 = vmul.f32 %v4141_v27, %v368_v6 }
 0x146   : > { %v390_v33 = vmul.f32 %v389_v29, %v384_v28 }
 0x147   : > { %v4143_v31 = vpop.eup %4142 }
 0x148   : > { %v385_v32 = vmul.f32 %v4143_v31, %v369_v10  ;;  %v4371_v36 = vadd.f32 %v395_v34, %v390_v33 }
 0x14a   : > { %v391_v35 = vmul.f32 %v389_v29, %v385_v32 }
 0x14c   : > { %v4373_v37 = vadd.f32 %v395_v34, %v391_v35 }
 0x14e   : > { %v428_v38 = vpack.c.bf16 %v4373_v37, %v4371_v36 }
 0x150   : > { %3799 = vmatmul.mubr.msk.bf16.vlgmr.msra.gmra.mrb[0].mxu0 %vm358_vm0, %v428_v38 }
 0x151   : > { %3810 = vmatprep.mubr.msk.bf16.mxu0 %vm4262_vm1, %v4261_v15 }
 0x223   : > { %v482_v41 = vpop.f32.mrb[0].mxu0 }
 0x224   : > { %v483_v42 = vadd.f32 %v482_v41, %v432_v40  ;;  %v3800_v43 = vpop.f32.mrb[1].mxu0 }
 0x225   : > { %v485_v44 = vpop.f32.mrb[2].mxu0 }
 0x226   : > { %v4387_v45 = vpack.c.bf16 %v483_v42, %v483_v42  ;;  %v486_v46 = vadd.f32 %v485_v44, %v432_v40  ;;  %v3801_v47 = vpop.f32.mrb[3].mxu0  ;;  %v489_v52 = vmul.f32 0.35355338, %v483_v42 }
 0x228   : > { %v4389_v48 = vpack.c.bf16 %v486_v46, %v486_v46  ;;  %516 = vrot.lane.b32.xlu0 %v4387_v45, %s4263_s23  ;;  %v490_v54 = vmul.f32 0.35355338, %v486_v46  ;;  %v4399_v55 = vpack.c.bf16 %v489_v52, %v489_v52 }
 0x22a   : > { %566 = vrot.lane.b32.xlu1 %v4389_v48, %s4263_s23  ;;  %v4401_v56 = vpack.c.bf16 %v490_v54, %v490_v54 }
 0x29a   : > { %v517_v49 = vpop.permute.xlu0 %516 }
 0x29b   : > { %v523_v50 = vsel %vm518_vm2, %v517_v49, 0 }
 0x29c   : > { %3803 = vmatpush3.bf16.xpose.msra.mxu1 %v523_v50  ;;  %v567_v51 = vpop.permute.xlu1 %566 }
 0x29d   : > { %v572_v53 = vsel %vm518_vm2, %v567_v51, 0  ;;  %3814 = vmatprep.subr.bf16.mxu1 %v4261_v15 }
 0x29e   : > { %3809 = vmatpush3.bf16.xpose.msra.mxu0 %v572_v53 }
 0x29f   : > { %3820 = vmatprep.subr.bf16.mxu0 %v4261_v15 }
 0x2a3   : > { %3805 = vmatmul.mubr.msk.bf16.vlgmr.msra.gmra.mrb[0].mxu1 %vm518_vm2, %v4399_v55 }
 0x2a4   : > { %3816 = vmatprep.mubr.msk.bf16.mxu1 %vm4262_vm1, %v4261_v15 }
 0x2a5   : > { %3811 = vmatmul.mubr.msk.bf16.vlgmr.msra.gmra.mrb[4].mxu0 %vm518_vm2, %v4401_v56 }
 0x2a6   : > { %3822 = vmatprep.mubr.msk.bf16.mxu0 %vm4262_vm1, %v4261_v15 }
 0x376   : > { %v559_v6 = vpop.f32.mrb[0].mxu1 }
 0x377   : > { %v560_v7 = vadd.f32 %v559_v6, %v4420_v4  ;;  %v3806_v8 = vpop.f32.mrb[1].mxu1 }
 0x378   : > { %v562_v9 = vpop.f32.mrb[2].mxu1  ;;  %v608_v10 = vpop.f32.mrb[4].mxu0 }
 0x379   : > { %v609_v11 = vadd.f32 %v608_v10, %v4423_v5  ;;  %v3807_v12 = vpop.f32.mrb[3].mxu1  ;;  %v3812_v13 = vpop.f32.mrb[5].mxu0  ;;  %v614_v14 = vsel %vm518_vm2, %v560_v7, -inf }
 0x37a   : > { %615 = vmax.xlane.f32.xlu1 %v614_v14  ;;  %v611_v16 = vpop.f32.mrb[6].mxu0 }
 0x37b   : > { %v3813_v17 = vpop.f32.mrb[7].mxu0  ;;  %v617_v18 = vsel %vm518_vm2, %v609_v11, -inf }
 0x37c   : > { %618 = vmax.xlane.f32.xlu0 %v617_v18 }
 0x38b   : > { %687 = vrot.lane.b32.xlu1 %v4389_v48, %s4265_s28 }
 0x38f   : > { %738 = vrot.lane.b32.xlu1 %v4387_v45, %s4266_s29 }
 0x407   : > { %v616_v19 = vpop.xlane.xlu1 %615 }
 0x408   : > { %v620_v20 = vsub.f32 %v560_v7, %v616_v19 }
 0x409   : > { %v619_v21 = vpop.xlane.xlu0 %618 }
 0x40a   : > { %v622_v22 = vmul.f32 1.442695, %v620_v20  ;;  %v621_v23 = vsub.f32 %v609_v11, %v619_v21 }
 0x40b   : > { %v688_v26 = vpop.permute.xlu1 %687 }
 0x40c   : > { %4144 = vpow2.f32 %v622_v22  ;;  %v624_v27 = vmul.f32 1.442695, %v621_v23  ;;  %v693_v28 = vsel %vm643_vm3, %v688_v26, 0 }
 0x40d   : > { %3821 = vmatpush3.bf16.msra.mxu0 %v693_v28 }
 0x40e   : > { %4146 = vpow2.f32 %v624_v27  ;;  %3832 = vmatprep.subr.bf16.mxu0 %v4261_v15 }
 0x40f   : > { %v739_v34 = vpop.permute.xlu1 %738 }
 0x410   : > { %v744_v50 = vsel %vm518_vm2, %v739_v34, 0 }
 0x416   : > { %v4145_v29 = vpop.eup %4144 }
 0x417   : > { %v626_v31 = vsel %vm518_vm2, %v4145_v29, 0.0 }
 0x418   : > { %v4147_v32 = vpop.eup %4146  ;;  %627 = vadd.xlane.f32.xlu0 %v626_v31 }
 0x419   : > { %v629_v33 = vsel %vm518_vm2, %v4147_v32, 0.0 }
 0x41a   : > { %630 = vadd.xlane.f32.xlu1 %v629_v33 }
 0x42b   : > { %788 = vrot.lane.b32.xlu1 %v4389_v48, %s4266_s29 }
 0x42e   : > { %638 = vrot.lane.b32.xlu0 %v4387_v45, %s4265_s28 }
 0x42f   : > { %786 = vrot.lane.b32.xlu1 %v4401_v56, %s4267_s11 }
 0x432   : > { %736 = vrot.lane.b32.xlu0 %v4399_v55, %s4267_s11 }
 0x4a5   : > { %v628_v35 = vpop.xlane.xlu0 %627 }
 0x4a6   : > { %4148 = vrcp.f32 %v628_v35 }
 0x4a7   : > { %v631_v38 = vpop.xlane.xlu1 %630 }
 0x4a8   : > { %4150 = vrcp.f32 %v631_v38 }
 0x4a9   : > { %v639_v40 = vpop.permute.xlu0 %638 }
 0x4aa   : > { %v645_v41 = vsel %vm643_vm3, %v639_v40, 0  ;;  %v502_v40 = vld [vmem:[%s5035_s3 + $0x4] sm:$0xf] }
 0x4ab   : > { %3815 = vmatpush3.bf16.msra.mxu1 %v645_v41  ;;  %v789_v49 = vpop.permute.xlu1 %788 }
 0x4ac   : > { %3826 = vmatprep.subr.bf16.mxu1 %v4261_v15  ;;  %v794_v52 = vsel %vm518_vm2, %v789_v49, 0 }
 0x4ad   : > { %v737_v53 = vpop.permute.xlu0 %736 }
 0x4af   : > { %v787_v54 = vpop.permute.xlu1 %786 }
 0x4b0   : > { %v4149_v42 = vpop.eup %4148 }
 0x4b1   : > { %v634_v43 = vmul.f32 %v4149_v42, %v4145_v29 }
 0x4b2   : > { %v4151_v44 = vpop.eup %4150 }
 0x4b3   : > { %v635_v46 = vmul.f32 %v4151_v44, %v4147_v32  ;;  %v636_v47 = vpack.c.bf16 %v634_v43, %v634_v43  ;;  %v961_v43 = vsel %vm643_vm3, %v502_v40, 0 }
 0x4b5   : > { %3817 = vmatmul.mubr.msk.bf16.vlgmr.msra.gmra.mrb[4].mxu1 %vm518_vm2, %v636_v47  ;;  %v637_v51 = vpack.c.bf16 %v635_v46, %v635_v46  ;;  %v501_v46 = vld [vmem:[%s5035_s3] sm:$0xf] }
 0x4b6   : > { %3827 = vmatpush3.bf16.xpose.msra.mxu1 %v744_v50  ;;  %3828 = vmatprep.mubr.msk.bf16.mxu1 %vm4262_vm1, %v4261_v15  ;;  %v1008_v50 = vsel %vm643_vm3, %v501_v46, 0 }
 0x4b7   : > { %3823 = vmatmul.mubr.msk.bf16.vlgmr.msra.gmra.mrb[8].mxu0 %vm518_vm2, %v637_v51  ;;  %3838 = vmatprep.subr.bf16.mxu1 %v4261_v15 }
 0x4b8   : > { %3833 = vmatpush3.bf16.xpose.msra.mxu0 %v794_v52  ;;  %3834 = vmatprep.mubr.msk.bf16.mxu0 %vm4262_vm1, %v4261_v15 }
 0x4b9   : > { %3844 = vmatprep.subr.bf16.mxu0 %v4261_v15 }
 0x4bd   : > { %3829 = vmatmul.mubr.msk.bf16.vlgmr.msra.gmra.mrb[8].mxu1 %vm518_vm2, %v737_v53 }
 0x4be   : > { %3840 = vmatprep.mubr.msk.bf16.mxu1 %vm4262_vm1, %v4261_v15 }
 0x4bf   : > { %3835 = vmatmul.mubr.msk.bf16.vlgmr.msra.gmra.mrb[12].mxu0 %vm518_vm2, %v787_v54 }
 0x4c0   : > { %3846 = vmatprep.mubr.msk.bf16.mxu0 %vm4262_vm1, %v4261_v15 }
 0x588   : > { %v4463_v57 = vpop.f32.mrb[4].mxu1 }
 0x589   : > { %v3818_v58 = vpop.f32.mrb[5].mxu1 }
 0x58a   : > { %v684_v59 = vpop.f32.mrb[6].mxu1  ;;  %v4465_v60 = vpop.f32.mrb[8].mxu0 }
 0x58b   : > { %v735_v61 = vpack.c.bf16 %v4465_v60, %v4463_v57  ;;  %v3819_v62 = vpop.f32.mrb[7].mxu1  ;;  %v3824_v63 = vpop.f32.mrb[9].mxu0 }
 0x58c   : > { %v732_v0 = vpop.f32.mrb[10].mxu0 }
 0x58d   : > { %v3825_v1 = vpop.f32.mrb[11].mxu0 }
 0x590   : > { %v780_v2 = vpop.f32.mrb[8].mxu1 }
 0x591   : > { %v781_v3 = vadd.f32 %v780_v2, %v4420_v4  ;;  %v3830_v6 = vpop.f32.mrb[9].mxu1 }
 0x592   : > { %v783_v7 = vpop.f32.mrb[10].mxu1  ;;  %v830_v8 = vpop.f32.mrb[12].mxu0 }
 0x593   : > { %v831_v9 = vadd.f32 %v830_v8, %v4423_v5  ;;  %v3831_v10 = vpop.f32.mrb[11].mxu1  ;;  %v3836_v11 = vpop.f32.mrb[13].mxu0  ;;  %v836_v12 = vsel %vm518_vm2, %v781_v3, -inf }
 0x594   : > { %837 = vmax.xlane.f32.xlu0 %v836_v12  ;;  %v833_v13 = vpop.f32.mrb[14].mxu0 }
 0x595   : > { %v3837_v14 = vpop.f32.mrb[15].mxu0  ;;  %v839_v16 = vsel %vm518_vm2, %v831_v9, -inf }
 0x596   : > { %840 = vmax.xlane.f32.xlu1 %v839_v16 }
 0x5a7   : > { %908 = vrot.lane.b32.xlu1 %v4389_v48, %s4268_s12 }
 0x5ab   : > { %1053 = vrot.lane.b32.xlu1 %v4387_v45, %s4269_s13 }
 0x5af   : > { %1103 = vrot.lane.b32.xlu1 %v4389_v48, %s4269_s13 }
 0x5b3   : > { %1101 = vrot.lane.b32.xlu1 %v4401_v56, %s4270_s14 }
 0x621   : > { %v838_v17 = vpop.xlane.xlu0 %837 }
 0x622   : > { %v842_v18 = vsub.f32 %v781_v3, %v838_v17 }
 0x623   : > { %v841_v19 = vpop.xlane.xlu1 %840 }
 0x624   : > { %v844_v20 = vmul.f32 1.442695, %v842_v18  ;;  %v843_v21 = vsub.f32 %v831_v9, %v841_v19 }
 0x626   : > { %4152 = vpow2.f32 %v844_v20  ;;  %v846_v22 = vmul.f32 1.442695, %v843_v21 }
 0x627   : > { %v909_v23 = vpop.permute.xlu1 %908 }
 0x628   : > { %4154 = vpow2.f32 %v846_v22  ;;  %v914_v26 = vsel %vm643_vm3, %v909_v23, 0 }
 0x629   : > { %3845 = vmatpush3.bf16.msra.mxu0 %v914_v26 }
 0x62a   : > { %3856 = vmatprep.subr.bf16.mxu0 %v4261_v15 }
 0x62b   : > { %v1054_v51 = vpop.permute.xlu1 %1053 }
 0x62c   : > { %v1059_v1 = vsel %vm518_vm2, %v1054_v51, 0 }
 0x62f   : > { %v1104_v52 = vpop.permute.xlu1 %1103 }
 0x630   : > { %v4153_v27 = vpop.eup %4152  ;;  %v1109_v53 = vsel %vm518_vm2, %v1104_v52, 0 }
 0x631   : > { %v848_v28 = vsel %vm518_vm2, %v4153_v27, 0.0 }
 0x632   : > { %v4155_v29 = vpop.eup %4154  ;;  %849 = vadd.xlane.f32.xlu0 %v848_v28 }
 0x633   : > { %v851_v31 = vsel %vm518_vm2, %v4155_v29, 0.0  ;;  %v1102_v54 = vpop.permute.xlu1 %1101 }
 0x636   : > { %852 = vadd.xlane.f32.xlu0 %v851_v31 }
 0x64c   : > { %860 = vrot.lane.b32.xlu0 %v4387_v45, %s4268_s12 }
 0x650   : > { %1051 = vrot.lane.b32.xlu0 %v4399_v55, %s4270_s14 }
 0x6bf   : > { %v850_v32 = vpop.xlane.xlu0 %849 }
 0x6c0   : > { %4156 = vrcp.f32 %v850_v32 }
 0x6c3   : > { %v853_v33 = vpop.xlane.xlu0 %852 }
 0x6c4   : > { %4158 = vrcp.f32 %v853_v33 }
 0x6c7   : > { %v861_v34 = vpop.permute.xlu0 %860 }
 0x6c8   : > { %v866_v35 = vsel %vm643_vm3, %v861_v34, 0 }
 0x6c9   : > { %3839 = vmatpush3.bf16.msra.mxu1 %v866_v35 }
 0x6ca   : > { %v4157_v38 = vpop.eup %4156  ;;  %3850 = vmatprep.subr.bf16.mxu1 %v4261_v15 }
 0x6cb   : > { %v856_v41 = vmul.f32 %v4157_v38, %v4153_v27  ;;  %v1052_v7 = vpop.permute.xlu0 %1051 }
 0x6cd   : > { %v858_v42 = vpack.c.bf16 %v856_v41, %v856_v41 }
 0x6ce   : > { %v4159_v44 = vpop.eup %4158 }
 0x6cf   : > { %v857_v47 = vmul.f32 %v4159_v44, %v4155_v29  ;;  %3841 = vmatmul.mubr.msk.bf16.vlgmr.msra.gmra.mrb[12].mxu1 %vm518_vm2, %v858_v42 }
 0x6d0   : > { %3851 = vmatpush3.bf16.msra.mxu1 %v961_v43  ;;  %3852 = vmatprep.mubr.msk.bf16.mxu1 %vm4262_vm1, %v4261_v15 }
 0x6d1   : > { %v859_v49 = vpack.c.bf16 %v857_v47, %v857_v47  ;;  %3862 = vmatprep.subr.bf16.mxu1 %v4261_v15 }
 0x6d3   : > { %3847 = vmatmul.mubr.msk.bf16.vlgmr.msra.gmra.mrb[16].mxu0 %vm518_vm2, %v859_v49 }
 0x6d4   : > { %3857 = vmatpush3.bf16.msra.mxu0 %v1008_v50  ;;  %3858 = vmatprep.mubr.msk.bf16.mxu0 %vm4262_vm1, %v4261_v15 }
 0x6d5   : > { %3868 = vmatprep.subr.bf16.mxu0 %v4261_v15 }
 0x6db   : > { %3859 = vmatmul.mubr.msk.bf16.vlgmr.msra.gmra.mrb[20].mxu0 %vm518_vm2, %v735_v61 }
 0x6dc   : > { %3870 = vmatprep.mubr.msk.bf16.mxu0 %vm4262_vm1, %v4261_v15 }
 0x6dd   : > { %3869 = vmatpush3.bf16.xpose.msra.mxu0 %v1109_v53 }
 0x6de   : > { %3880 = vmatprep.subr.bf16.mxu0 %v4261_v15 }
 0x6e4   : > { %3871 = vmatmul.mubr.msk.bf16.vlgmr.msra.gmra.mrb[24].mxu0 %vm518_vm2, %v1102_v54 }
 0x6e5   : > { %3882 = vmatprep.mubr.msk.bf16.mxu0 %vm4262_vm1, %v4261_v15 }
 0x7a2   : > { %v902_v58 = vpop.f32.mrb[12].mxu1 }
 0x7a3   : > { %v3842_v59 = vpop.f32.mrb[13].mxu1 }
 0x7a4   : > { %v905_v62 = vpop.f32.mrb[14].mxu1 }
 0x7a5   : > { %v3843_v57 = vpop.f32.mrb[15].mxu1 }
 0x7a6   : > { %v950_v60 = vpop.f32.mrb[16].mxu0 }
 0x7a7   : > { %v956_v61 = vpack.c.bf16 %v950_v60, %v902_v58  ;;  %v3848_v63 = vpop.f32.mrb[17].mxu0 }
 0x7a8   : > { %v953_v0 = vpop.f32.mrb[18].mxu0 }
 0x7a9   : > { %v3849_v2 = vpop.f32.mrb[19].mxu0  ;;  %3853 = vmatmul.mubr.msk.bf16.vlgmr.msra.gmra.mrb[16].mxu1 %vm518_vm2, %v956_v61 }
 0x7aa   : > { %3863 = vmatpush3.bf16.xpose.msra.mxu1 %v1059_v1  ;;  %3864 = vmatprep.mubr.msk.bf16.mxu1 %vm4262_vm1, %v4261_v15  ;;  %v503_v2 = vld [vmem:[%s5035_s3 + $0x8] sm:$0xf] }
 0x7ab   : > { %3874 = vmatprep.subr.bf16.mxu1 %v4261_v15 }
 0x7ae   : > { %v1044_v3 = vpop.f32.mrb[20].mxu0 }
 0x7af   : > { %v3860_v6 = vpop.f32.mrb[21].mxu0 }
 0x7b0   : > { %v1047_v8 = vpop.f32.mrb[22].mxu0 }
 0x7b1   : > { %v3861_v9 = vpop.f32.mrb[23].mxu0  ;;  %3865 = vmatmul.mubr.msk.bf16.vlgmr.msra.gmra.mrb[20].mxu1 %vm518_vm2, %v1052_v7 }
 0x7b2   : > { %3876 = vmatprep.mubr.msk.bf16.mxu1 %vm4262_vm1, %v4261_v15 }
 0x7b7   : > { %v1145_v10 = vpop.f32.mrb[24].mxu0 }
 0x7b8   : > { %v1146_v11 = vadd.f32 %v1145_v10, %v4423_v5  ;;  %v3872_v12 = vpop.f32.mrb[25].mxu0 }
 0x7b9   : > { %v1148_v13 = vpop.f32.mrb[26].mxu0 }
 0x7ba   : > { %v3873_v14 = vpop.f32.mrb[27].mxu0  ;;  %v1154_v16 = vsel %vm518_vm2, %v1146_v11, -inf }
 0x7bb   : > { %1155 = vmax.xlane.f32.xlu1 %v1154_v16 }
 0x7cc   : > { %1223 = vrot.lane.b32.xlu1 %v4389_v48, %s4271_s19 }
 0x7d0   : > { %1323 = vrot.lane.b32.xlu1 %v4387_v45, %s4272_s20 }
 0x7d4   : > { %1373 = vrot.lane.b32.xlu1 %v4389_v48, %s4272_s20 }
 0x7d8   : > { %1371 = vrot.lane.b32.xlu1 %v4401_v56, %s4273_s21 }
 0x848   : > { %v1156_v17 = vpop.xlane.xlu1 %1155 }
 0x849   : > { %v1158_v20 = vsub.f32 %v1146_v11, %v1156_v17 }
 0x84b   : > { %v1161_v21 = vmul.f32 1.442695, %v1158_v20 }
 0x84c   : > { %v1224_v18 = vpop.permute.xlu1 %1223 }
 0x84d   : > { %v1229_v19 = vsel %vm643_vm3, %v1224_v18, 0  ;;  %4160 = vpow2.f32 %v1161_v21 }
 0x84e   : > { %3881 = vmatpush3.bf16.msra.mxu0 %v1229_v19 }
 0x84f   : > { %3892 = vmatprep.subr.bf16.mxu0 %v4261_v15 }
 0x850   : > { %v1324_v51 = vpop.permute.xlu1 %1323 }
 0x851   : > { %v1329_v53 = vsel %vm518_vm2, %v1324_v51, 0 }
 0x854   : > { %v1374_v12 = vpop.permute.xlu1 %1373 }
 0x855   : > { %v1379_v18 = vsel %vm518_vm2, %v1374_v12, 0 }
 0x857   : > { %v4161_v38 = vpop.eup %4160 }
 0x858   : > { %v1166_v40 = vsel %vm518_vm2, %v4161_v38, 0.0  ;;  %v1372_v20 = vpop.permute.xlu1 %1371 }
 0x87c   : > { %v997_v22 = vpop.f32.mrb[16].mxu1 }
 0x87d   : > { %v4538_v23 = vadd.f32 %v1044_v3, %v997_v22  ;;  %v3854_v26 = vpop.f32.mrb[17].mxu1  ;;  %v1276_v3 = vsel %vm643_vm3, %v503_v2, 0 }
 0x87e   : > { %v1000_v27 = vpop.f32.mrb[18].mxu1 }
 0x87f   : > { %v4540_v28 = vadd.f32 %v1047_v8, %v1000_v27  ;;  %v3855_v29 = vpop.f32.mrb[19].mxu1 }
 0x884   : > { %v1095_v31 = vpop.f32.mrb[20].mxu1 }
 0x885   : > { %v1096_v56 = vadd.f32 %v1095_v31, %v4420_v4  ;;  %v3866_v32 = vpop.f32.mrb[21].mxu1 }
 0x886   : > { %v1098_v33 = vpop.f32.mrb[22].mxu1 }
 0x887   : > { %v3867_v34 = vpop.f32.mrb[23].mxu1  ;;  %v1151_v35 = vsel %vm518_vm2, %v1096_v56, -inf }
 0x888   : > { %1152 = vmax.xlane.f32.xlu0 %v1151_v35 }
 0x88c   : > { %1167 = vadd.xlane.f32.xlu0 %v1166_v40 }
 0x915   : > { %v1153_v41 = vpop.xlane.xlu0 %1152 }
 0x916   : > { %v1157_v42 = vsub.f32 %v1096_v56, %v1153_v41 }
 0x918   : > { %v1159_v43 = vmul.f32 1.442695, %v1157_v42 }
 0x919   : > { %v1168_v44 = vpop.xlane.xlu0 %1167 }
 0x91a   : > { %4162 = vpow2.f32 %v1159_v43 }
 0x91b   : > { %4164 = vrcp.f32 %v1168_v44 }
 0x924   : > { %v4163_v46 = vpop.eup %4162 }
 0x925   : > { %v4165_v47 = vpop.eup %4164  ;;  %v1163_v49 = vsel %vm518_vm2, %v4163_v46, 0.0 }
 0x926   : > { %v1172_v50 = vmul.f32 %v4165_v47, %v4161_v38  ;;  %1164 = vadd.xlane.f32.xlu0 %v1163_v49 }
 0x928   : > { %v1174_v52 = vpack.c.bf16 %v1172_v50, %v1172_v50 }
 0x92a   : > { %3883 = vmatmul.mubr.msk.bf16.vlgmr.msra.gmra.mrb[28].mxu0 %vm518_vm2, %v1174_v52 }
 0x92b   : > { %3893 = vmatpush3.bf16.xpose.msra.mxu0 %v1329_v53  ;;  %3894 = vmatprep.mubr.msk.bf16.mxu0 %vm4262_vm1, %v4261_v15 }
 0x92c   : > { %3904 = vmatprep.subr.bf16.mxu0 %v4261_v15 }
 0x93c   : > { %1175 = vrot.lane.b32.xlu0 %v4387_v45, %s4271_s19 }
 0x940   : > { %1321 = vrot.lane.b32.xlu0 %v4399_v55, %s4273_s21 }
 0x9b3   : > { %v1165_v54 = vpop.xlane.xlu0 %1164 }
 0x9b4   : > { %4166 = vrcp.f32 %v1165_v54 }
 0x9b7   : > { %v1176_v58 = vpop.permute.xlu0 %1175 }
 0x9b8   : > { %v1181_v59 = vsel %vm643_vm3, %v1176_v58, 0 }
 0x9b9   : > { %3875 = vmatpush3.bf16.msra.mxu1 %v1181_v59 }
 0x9ba   : > { %3886 = vmatprep.subr.bf16.mxu1 %v4261_v15 }
 0x9bb   : > { %v1322_v62 = vpop.permute.xlu0 %1321 }
 0x9bc   : > { %3895 = vmatmul.mubr.msk.bf16.vlgmr.msra.gmra.mrb[32].mxu0 %vm518_vm2, %v1322_v62 }
 0x9bd   : > { %3906 = vmatprep.mubr.msk.bf16.mxu0 %vm4262_vm1, %v4261_v15 }
 0x9be   : > { %v4167_v57 = vpop.eup %4166 }
 0x9bf   : > { %v1171_v60 = vmul.f32 %v4167_v57, %v4163_v46 }
 0x9c1   : > { %v1173_v61 = vpack.c.bf16 %v1171_v60, %v1171_v60 }
 0x9c3   : > { %3877 = vmatmul.mubr.msk.bf16.vlgmr.msra.gmra.mrb[24].mxu1 %vm518_vm2, %v1173_v61  ;;  %v504_v61 = vld [vmem:[%s5035_s3 + $0xc] sm:$0xf] }
 0x9c4   : > { %3888 = vmatprep.mubr.msk.bf16.mxu1 %vm4262_vm1, %v4261_v15  ;;  %3887 = vmatpush3.bf16.msra.mxu1 %v1276_v3 }
 0x9c5   : > { %3898 = vmatprep.subr.bf16.mxu1 %v4261_v15 }
 0x9fd   : > { %v1265_v55 = vpop.f32.mrb[28].mxu0 }
 0x9fe   : > { %v3884_v63 = vpop.f32.mrb[29].mxu0 }
 0x9ff   : > { %v1268_v0 = vpop.f32.mrb[30].mxu0 }
 0xa00   : > { %v3885_v1 = vpop.f32.mrb[31].mxu0 }
 0xa8f   : > { %v1365_v6 = vpop.f32.mrb[32].mxu0 }
 0xa90   : > { %v1366_v7 = vadd.f32 %v1365_v6, %v4420_v4  ;;  %v3896_v8 = vpop.f32.mrb[33].mxu0 }
 0xa91   : > { %v1368_v9 = vpop.f32.mrb[34].mxu0 }
 0xa92   : > { %v3897_v10 = vpop.f32.mrb[35].mxu0  ;;  %v1421_v11 = vsel %vm518_vm2, %v1366_v7, -inf }
 0xa93   : > { %1422 = vmax.xlane.f32.xlu0 %v1421_v11  ;;  %v1594_v10 = vrot.slane %v4383_v39, %v4368_v30 }
 0xa96   : > { %v1217_v13 = vpop.f32.mrb[24].mxu1 }
 0xa97   : > { %v1271_v14 = vpack.c.bf16 %v1265_v55, %v1217_v13  ;;  %v3878_v16 = vpop.f32.mrb[25].mxu1  ;;  %v1546_v55 = vsel %vm643_vm3, %v504_v61, 0  ;;  %v4128_v61 = vld [vmem:[%s5037_s5 + $0x10] sm:$0xff]  }
 0xa98   : > { %v1220_v17 = vpop.f32.mrb[26].mxu1 }
 0xa99   : > { %v3879_v19 = vpop.f32.mrb[27].mxu1  ;;  %3889 = vmatmul.mubr.msk.bf16.vlgmr.msra.gmra.mrb[28].mxu1 %vm518_vm2, %v1271_v14 }
 0xa9a   : > { %3899 = vmatpush3.bf16.xpose.msra.mxu1 %v1379_v18  ;;  %3900 = vmatprep.mubr.msk.bf16.mxu1 %vm4262_vm1, %v4261_v15 }
 0xa9b   : > { %3910 = vmatprep.subr.bf16.mxu1 %v4261_v15 }
 0xaa1   : > { %3901 = vmatmul.mubr.msk.bf16.vlgmr.msra.gmra.mrb[32].mxu1 %vm518_vm2, %v1372_v20 }
 0xaa2   : > { %3912 = vmatprep.mubr.msk.bf16.mxu1 %vm4262_vm1, %v4261_v15 }
 0xb20   : > { %v1423_v21 = vpop.xlane.xlu0 %1422 }
 0xb21   : > { %v1427_v22 = vsub.f32 %v1366_v7, %v1423_v21 }
 0xb23   : > { %v1429_v26 = vmul.f32 1.442695, %v1427_v22 }
 0xb25   : > { %4168 = vpow2.f32 %v1429_v26 }
 0xb2f   : > { %v4169_v27 = vpop.eup %4168 }
 0xb30   : > { %v1433_v29 = vsel %vm518_vm2, %v4169_v27, 0.0 }
 0xb31   : > { %1434 = vadd.xlane.f32.xlu0 %v1433_v29 }
 0xb6c   : > { %v1312_v31 = vpop.f32.mrb[28].mxu1 }
 0xb6d   : > { %v1319_v56 = vadd.f32 %v1312_v31, %v4538_v23  ;;  %v3890_v32 = vpop.f32.mrb[29].mxu1 }
 0xb6e   : > { %v1315_v33 = vpop.f32.mrb[30].mxu1 }
 0xb6f   : > { %v1320_v34 = vadd.f32 %v1315_v33, %v4540_v28  ;;  %v3891_v35 = vpop.f32.mrb[31].mxu1 }
 0xb74   : > { %v1415_v38 = vpop.f32.mrb[32].mxu1 }
 0xb75   : > { %v1416_v40 = vadd.f32 %v1415_v38, %v4423_v5  ;;  %v3902_v41 = vpop.f32.mrb[33].mxu1 }
 0xb76   : > { %v1418_v42 = vpop.f32.mrb[34].mxu1 }
 0xb77   : > { %v3903_v43 = vpop.f32.mrb[35].mxu1  ;;  %v1424_v44 = vsel %vm518_vm2, %v1416_v40, -inf }
 0xb78   : > { %1425 = vmax.xlane.f32.xlu1 %v1424_v44 }
 0xb89   : > { %1493 = vrot.lane.b32.xlu1 %v4389_v48, %s4274_s25 }
 0xbbe   : > { %v1435_v52 = vpop.xlane.xlu0 %1434 }
 0xc05   : > { %v1426_v46 = vpop.xlane.xlu1 %1425 }
 0xc06   : > { %v1428_v23 = vsub.f32 %v1416_v40, %v1426_v46  ;;  %v4125_v40 = vld [vmem:[%s5036_s4 + $0x8] sm:$0xff]  }
 0xc08   : > { %v1431_v47 = vmul.f32 1.442695, %v1428_v23 }
 0xc09   : > { %v1494_v49 = vpop.permute.xlu1 %1493 }
 0xc0a   : > { %4170 = vpow2.f32 %v1431_v47  ;;  %v1499_v28 = vsel %vm643_vm3, %v1494_v49, 0  ;;  %v4623_v47 = vsub.s32 2, %v4358_v24 }
 0xc0b   : > { %3911 = vmatpush3.bf16.msra.mxu1 %v1499_v28  ;;  %4172 = vrcp.f32 %v1435_v52  ;;  %v4628_v28 = vsub.s32 3, %v4358_v24 }
 0xc0c   : > { %3922 = vmatprep.subr.bf16.mxu1 %v4261_v15  ;;  %v1628_v49 = vrot.slane %v4383_v39, %v4623_v47 }
 0xc14   : > { %v4171_v50 = vpop.eup %4170 }
 0xc15   : > { %v1436_v51 = vsel %vm518_vm2, %v4171_v50, 0.0  ;;  %v4173_v48 = vpop.eup %4172 }
 0xc16   : > { %1437 = vadd.xlane.f32.xlu0 %v1436_v51  ;;  %v1441_v54 = vmul.f32 %v4173_v48, %v4169_v27 }
 0xc18   : > { %v1443_v62 = vpack.c.bf16 %v1441_v54, %v1441_v54  ;;  %v1634_v54 = vrot.slane %v4383_v39, %v4628_v28 }
 0xc2c   : > { %1445 = vrot.lane.b32.xlu0 %v4387_v45, %s4274_s25 }
 0xca3   : > { %v1438_v53 = vpop.xlane.xlu0 %1437 }
 0xca4   : > { %4174 = vrcp.f32 %v1438_v53 }
 0xca7   : > { %v1446_v58 = vpop.permute.xlu0 %1445 }
 0xca8   : > { %v1451_v59 = vsel %vm643_vm3, %v1446_v58, 0 }
 0xca9   : > { %3905 = vmatpush3.bf16.msra.mxu0 %v1451_v59 }
 0xcaa   : > { %3916 = vmatprep.subr.bf16.mxu0 %v4261_v15 }
 0xcac   : > { %3907 = vmatmul.mubr.msk.bf16.vlgmr.msra.gmra.mrb[36].mxu0 %vm518_vm2, %v1443_v62 }
 0xcad   : > { %3918 = vmatprep.mubr.msk.bf16.mxu0 %vm4262_vm1, %v4261_v15  ;;  %3917 = vmatpush3.bf16.msra.mxu0 %v1546_v55  ;;  %v4129_v55 = vld [vmem:[%s5037_s5 + $0x18] sm:$0xff]  }
 0xcae   : > { %v4175_v57 = vpop.eup %4174  ;;  %3930 = vmatprep.subr.bf16.mxu0 %v4261_v15 }
 0xcaf   : > { %v1442_v45 = vmul.f32 %v4175_v57, %v4171_v50 }
 0xcb1   : > { %v1444_v60 = vpack.c.bf16 %v1442_v45, %v1442_v45  ;;  %v4126_v45 = vld [vmem:[%s5037_s5] sm:$0xff]  }
 0xcb3   : > { %3913 = vmatmul.mubr.msk.bf16.vlgmr.msra.gmra.mrb[36].mxu1 %vm518_vm2, %v1444_v60  ;;  %v4127_v60 = vld [vmem:[%s5037_s5 + $0x8] sm:$0xff]  }
 0xcb4   : > { %3926 = vmatprep.mubr.msk.bf16.mxu1 %vm4262_vm1, %v4261_v15 }
 0xd7f   : > { %v1487_v63 = vpop.f32.mrb[36].mxu0 }
 0xd80   : > { %v3908_v0 = vpop.f32.mrb[37].mxu0 }
 0xd81   : > { %v1490_v1 = vpop.f32.mrb[38].mxu0 }
 0xd82   : > { %v3909_v2 = vpop.f32.mrb[39].mxu0 }
 0xd86   : > { %v1535_v3 = vpop.f32.mrb[36].mxu1 }
 0xd87   : > { %v1541_v6 = vpack.c.bf16 %v1535_v3, %v1487_v63  ;;  %v3914_v7 = vpop.f32.mrb[37].mxu1  ;;  %v4658_v63 = vsub.s32 4, %v4358_v24 }
 0xd88   : > { %v1538_v8 = vpop.f32.mrb[38].mxu1 }
 0xd89   : > { %v3915_v9 = vpop.f32.mrb[39].mxu1  ;;  %3919 = vmatmul.mubr.msk.bf16.vlgmr.msra.gmra.mrb[40].mxu0 %vm518_vm2, %v1541_v6  ;;  %v1645_v0 = vrot.slane %v4383_v39, %v4658_v63 }
 0xd8a   : > { %3938 = vmatprep.mubr.msk.bf16.mxu0 %vm4262_vm1, %v4261_v15  ;;  %3931 = vmatpush3.bf16.msra.mxu0 %v4126_v45 }
 0xd8b   : > { %3932 = vmatprep.subr.bf16.mxu0 %v4261_v15 }
 0xd8e   : > { %3933 = vmatpush3.bf16.msra.mxu0 %v4127_v60 }
 0xd8f   : > { %3934 = vmatprep.subr.bf16.mxu0 %v4261_v15 }
 0xd92   : > { %3935 = vmatpush3.bf16.msra.mxu0 %v4128_v61 }
 0xd93   : > { %3936 = vmatprep.subr.bf16.mxu0 %v4261_v15 }
 0xd96   : > { %3937 = vmatpush3.bf16.msra.mxu0 %v4129_v55  ;;  %v1759_v55 = vsub.s32 5, %v4358_v24 }
 0xd97   : > { %3956 = vmatprep.subr.bf16.mxu0 %v4261_v15 }
 0xe5c   : > { %v1582_v11 = vpop.f32.mrb[40].mxu0 }
 0xe5d   : > { %v1589_v12 = vadd.f32 %v1582_v11, %v1319_v56  ;;  %v3920_v13 = vpop.f32.mrb[41].mxu0 }
 0xe5e   : > { %v1585_v14 = vpop.f32.mrb[42].mxu0 }
 0xe5f   : > { %v1595_v16 = vadd.f32 %v1594_v10, %v1589_v12  ;;  %v1590_v17 = vadd.f32 %v1585_v14, %v1320_v34  ;;  %v3921_v18 = vpop.f32.mrb[43].mxu0 }
 0xe61   : > { %v1596_v19 = vadd.f32 %v1594_v10, %v1590_v17  ;;  %v1597_v20 = vadd.f32 %v1595_v16, %v4371_v36 }
 0xe63   : > { %v1599_v21 = vsel %vm358_vm0, %v1597_v20, 0.0  ;;  %v1598_v22 = vadd.f32 %v1596_v19, %v4373_v37  ;;  %v4124_v37 = vld [vmem:[%s5036_s4] sm:$0xff]  }
 0xe64   : > { %1600 = vadd.xlane.f32.xlu1 %v1599_v21  ;;  %3923 = vmatpush3.bf16.msra.mxu1 %v4124_v37 }
 0xe65   : > { %v1602_v26 = vsel %vm358_vm0, %v1598_v22, 0.0  ;;  %3924 = vmatprep.subr.bf16.mxu1 %v4261_v15 }
 0xe66   : > { %1603 = vadd.xlane.f32.xlu0 %v1602_v26 }
 0xe68   : > { %3925 = vmatpush3.bf16.msra.mxu1 %v4125_v40 }
 0xe69   : > { %3942 = vmatprep.subr.bf16.mxu1 %v4261_v15 }
 0xef1   : > { %v1601_v27 = vpop.xlane.xlu1 %1600 }
 0xef2   : > { %v1605_v29 = vmul.f32 0.03125, %v1601_v27 }
 0xef3   : > { %v1604_v31 = vpop.xlane.xlu0 %1603 }
 0xef4   : > { %v1607_v56 = vsub.f32 %v1597_v20, %v1605_v29  ;;  %v1606_v32 = vmul.f32 0.03125, %v1604_v31 }
 0xef6   : > { %v1608_v33 = vsub.f32 %v1598_v22, %v1606_v32  ;;  %v1609_v35 = vmul.f32 %v1607_v56, %v1607_v56 }
 0xef8   : > { %v1611_v34 = vsel %vm358_vm0, %v1609_v35, 0.0  ;;  %v1610_v38 = vmul.f32 %v1608_v33, %v1608_v33 }
 0xef9   : > { %1612 = vadd.xlane.f32.xlu0 %v1611_v34 }
 0xefa   : > { %v1614_v36 = vsel %vm358_vm0, %v1610_v38, 0.0 }
 0xefb   : > { %1615 = vadd.xlane.f32.xlu1 %v1614_v36 }
 0xf86   : > { %v1613_v41 = vpop.xlane.xlu0 %1612 }
 0xf87   : > { %v1617_v42 = vmul.f32 0.03125, %v1613_v41 }
 0xf88   : > { %v1616_v43 = vpop.xlane.xlu1 %1615 }
 0xf89   : > { %v1619_v44 = vadd.f32 1e-05, %v1617_v42  ;;  %v1618_v46 = vmul.f32 0.03125, %v1616_v43 }
 0xf8b   : > { %4176 = vrsqrt.f32 %v1619_v44  ;;  %v1620_v23 = vadd.f32 1e-05, %v1618_v46 }
 0xf8d   : > { %4178 = vrsqrt.f32 %v1620_v23 }
 0xf95   : > { %v4177_v50 = vpop.eup %4176 }
 0xf96   : > { %v1623_v51 = vmul.f32 %v4177_v50, %v1607_v56 }
 0xf97   : > { %v4179_v52 = vpop.eup %4178 }
 0xf98   : > { %v1629_v48 = vmul.f32 %v1628_v49, %v1623_v51  ;;  %v1624_v53 = vmul.f32 %v4179_v52, %v1608_v33 }
 0xf9a   : > { %v1630_v58 = vmul.f32 %v1628_v49, %v1624_v53  ;;  %v4632_v59 = vadd.f32 %v1634_v54, %v1629_v48 }
 0xf9c   : > { %v4634_v62 = vadd.f32 %v1634_v54, %v1630_v58 }
 0xf9e   : > { %v1641_v57 = vpack.c.bf16 %v4634_v62, %v4632_v59 }
 0xfa0   : > { %3927 = vmatmul.mubr.msk.bf16.vlgmr.msra.gmra.mrb[40].mxu1 %vm358_vm0, %v1641_v57 }
 0xfa1   : > { %3946 = vmatprep.mubr.msk.bf16.mxu1 %vm4262_vm1, %v4261_v15 }
0x1073   : > { %v1695_v1 = vpop.f32.mrb[40].mxu1 }
0x1074   : > { %v1696_v2 = vadd.f32 %v1695_v1, %v1645_v0  ;;  %v3928_v3 = vpop.f32.mrb[41].mxu1 }
0x1075   : > { %v1698_v6 = vpop.f32.mrb[42].mxu1 }
0x1076   : > { %v1702_v7 = vmul.f32 0.70710677, %v1696_v2  ;;  %v1699_v8 = vadd.f32 %v1698_v6, %v1645_v0  ;;  %v3929_v9 = vpop.f32.mrb[43].mxu1  ;;  %vm1740_vm4 = vcmp.ge.f32.partialorder %v1696_v2, 0.0  ;;  %v4250_v0 = vld [vmem:[%s5038_s6] sm:$0xff] }
0x1077   : > { %v1760_v1 = vrot.slane %v4250_v0, %v1759_v55 }
0x1078   : > { %v1704_v10 = vand.u32 2147483647, %v1702_v7  ;;  %v1703_v11 = vmul.f32 0.70710677, %v1699_v8  ;;  %vm1741_vm5 = vcmp.ge.f32.partialorder %v1699_v8, 0.0 }
0x107a   : > { %v1706_v12 = vmul.f32 0.3275911, %v1704_v10  ;;  %v1705_v13 = vand.u32 2147483647, %v1703_v11  ;;  %v1730_v18 = vsub.f32 0.0, %v1704_v10 }
0x107c   : > { %v1708_v14 = vadd.f32 1.0, %v1706_v12  ;;  %v1707_v16 = vmul.f32 0.3275911, %v1705_v13  ;;  %v1731_v19 = vsub.f32 0.0, %v1705_v13  ;;  %v1732_v39 = vmul.f32 %v1730_v18, %v1704_v10 }
0x107e   : > { %4180 = vrcp.f32 %v1708_v14  ;;  %v1709_v17 = vadd.f32 1.0, %v1707_v16  ;;  %v1733_v27 = vmul.f32 %v1731_v19, %v1705_v13  ;;  %v1734_v29 = vmul.f32 1.442695, %v1732_v39 }
0x1080   : > { %4182 = vrcp.f32 %v1709_v17  ;;  %v1736_v35 = vmul.f32 1.442695, %v1733_v27 }
0x1081   : > { %4184 = vpow2.f32 %v1734_v29 }
0x1082   : > { %4186 = vpow2.f32 %v1736_v35  ;;  %v1860_v35 = vsub.s32 6, %v4358_v24 }
0x1088   : > { %v4181_v20 = vpop.eup %4180 }
0x1089   : > { %v1712_v21 = vmul.f32 0.5307027, %v4181_v20 }
0x108a   : > { %v4183_v22 = vpop.eup %4182 }
0x108b   : > { %v1714_v26 = vadd.f32 -0.72657603, %v1712_v21  ;;  %v1713_v31 = vmul.f32 0.5307027, %v4183_v22  ;;  %v4185_v23 = vpop.eup %4184 }
0x108c   : > { %v4187_v52 = vpop.eup %4186 }
0x108d   : > { %v1716_v56 = vmul.f32 %v4181_v20, %v1714_v26  ;;  %v1715_v32 = vadd.f32 -0.72657603, %v1713_v31  ;;  %v4131_v26 = vld [vmem:[%s5034_s2 + $0x18] sm:$0xff]  }
0x108f   : > { %v1718_v33 = vadd.f32 0.7107069, %v1716_v56  ;;  %v1717_v34 = vmul.f32 %v4183_v22, %v1715_v32 }
0x1091   : > { %v1720_v38 = vmul.f32 %v4181_v20, %v1718_v33  ;;  %v1719_v36 = vadd.f32 0.7107069, %v1717_v34  ;;  %v1861_v34 = vrot.slane %v4250_v0, %v1860_v35 }
0x1093   : > { %v1722_v37 = vadd.f32 -0.14224836, %v1720_v38  ;;  %v1721_v40 = vmul.f32 %v4183_v22, %v1719_v36  ;;  %v1866_v38 = vsub.s32 7, %v4358_v24 }
0x1095   : > { %v1724_v41 = vmul.f32 %v4181_v20, %v1722_v37  ;;  %v1723_v42 = vadd.f32 -0.14224836, %v1721_v40 }
0x1097   : > { %v1726_v43 = vadd.f32 0.1274148, %v1724_v41  ;;  %v1725_v44 = vmul.f32 %v4183_v22, %v1723_v42 }
0x1099   : > { %v1728_v46 = vmul.f32 %v4181_v20, %v1726_v43  ;;  %v1727_v49 = vadd.f32 0.1274148, %v1725_v44  ;;  %v1867_v43 = vrot.slane %v4250_v0, %v1866_v38 }
0x109b   : > { %v1738_v50 = vmul.f32 %v4185_v23, %v1728_v46  ;;  %v1729_v51 = vmul.f32 %v4183_v22, %v1727_v49 }
0x109d   : > { %v1742_v48 = vsub.f32 1.0, %v1738_v50  ;;  %v1739_v53 = vmul.f32 %v4187_v52, %v1729_v51 }
0x109f   : > { %v1744_v54 = vsel %vm1740_vm4, %v1742_v48, %v1738_v50  ;;  %v1743_v58 = vsub.f32 1.0, %v1739_v53  ;;  %v4703_v50 = vld [vmem:[%s5038_s6 + $0x8] sm:$0xff] }
0x10a0   : > { %v1746_v45 = vmul.f32 %v1744_v54, %v1696_v2  ;;  %v1881_v51 = vrot.slane %v4703_v50, %v4361_v25 }
0x10a1   : > { %v1745_v57 = vsel %vm1741_vm5, %v1743_v58, %v1739_v53 }
0x10a2   : > { %v1747_v60 = vmul.f32 %v1745_v57, %v1699_v8 }
0x10a4   : > { %v1756_v61 = vpack.c.bf16 %v1747_v60, %v1746_v45 }
0x10a6   : > { %3939 = vmatmul.mubr.msk.bf16.vlgmr.msra.gmra.mrb[44].mxu0 %vm1785_vm6, %v1756_v61 }
0x10a7   : > { %3958 = vmatprep.mubr.msk.bf16.mxu0 %vm4262_vm1, %v4261_v15 }
0x1179   : > { %v1823_v3 = vpop.f32.mrb[44].mxu0 }
0x117a   : > { %v1824_v6 = vadd.f32 %v1823_v3, %v1760_v1  ;;  %v3940_v2 = vpop.f32.mrb[45].mxu0 }
0x117b   : > { %v1826_v7 = vpop.f32.mrb[46].mxu0 }
0x117c   : > { %v1827_v8 = vadd.f32 %v1826_v7, %v1760_v1  ;;  %v3941_v9 = vpop.f32.mrb[47].mxu0  ;;  %v1830_v10 = vadd.f32 %v1824_v6, %v4632_v59 }
0x117e   : > { %v1832_v11 = vsel %vm358_vm0, %v1830_v10, 0.0  ;;  %v1831_v12 = vadd.f32 %v1827_v8, %v4634_v62  ;;  %v4130_v62 = vld [vmem:[%s5034_s2 + $0x10] sm:$0xff]  }
0x117f   : > { %1833 = vadd.xlane.f32.xlu0 %v1832_v11  ;;  %3943 = vmatpush3.bf16.msra.mxu1 %v4130_v62 }
0x1180   : > { %v1835_v13 = vsel %vm358_vm0, %v1831_v12, 0.0  ;;  %3944 = vmatprep.subr.bf16.mxu1 %v4261_v15 }
0x1181   : > { %1836 = vadd.xlane.f32.xlu1 %v1835_v13 }
0x1183   : > { %3945 = vmatpush3.bf16.msra.mxu1 %v4131_v26 }
0x1184   : > { %3950 = vmatprep.subr.bf16.mxu1 %v4261_v15 }
0x120c   : > { %v1834_v14 = vpop.xlane.xlu0 %1833 }
0x120d   : > { %v1838_v16 = vmul.f32 0.03125, %v1834_v14 }
0x120e   : > { %v1837_v17 = vpop.xlane.xlu1 %1836 }
0x120f   : > { %v1840_v18 = vsub.f32 %v1830_v10, %v1838_v16  ;;  %v1839_v19 = vmul.f32 0.03125, %v1837_v17 }
0x1211   : > { %v1841_v20 = vsub.f32 %v1831_v12, %v1839_v19  ;;  %v1842_v39 = vmul.f32 %v1840_v18, %v1840_v18 }
0x1213   : > { %v1844_v21 = vsel %vm358_vm0, %v1842_v39, 0.0  ;;  %v1843_v22 = vmul.f32 %v1841_v20, %v1841_v20 }
0x1214   : > { %1845 = vadd.xlane.f32.xlu0 %v1844_v21 }
0x1215   : > { %v1847_v59 = vsel %vm358_vm0, %v1843_v22, 0.0 }
0x1216   : > { %1848 = vadd.xlane.f32.xlu1 %v1847_v59 }
0x12a1   : > { %v1846_v27 = vpop.xlane.xlu0 %1845 }
0x12a2   : > { %v1850_v29 = vmul.f32 0.03125, %v1846_v27 }
0x12a3   : > { %v1849_v31 = vpop.xlane.xlu1 %1848 }
0x12a4   : > { %v1852_v56 = vadd.f32 1e-05, %v1850_v29  ;;  %v1851_v32 = vmul.f32 0.03125, %v1849_v31 }
0x12a6   : > { %4188 = vrsqrt.f32 %v1852_v56  ;;  %v1853_v33 = vadd.f32 1e-05, %v1851_v32 }
0x12a8   : > { %4190 = vrsqrt.f32 %v1853_v33 }
0x12b0   : > { %v4189_v36 = vpop.eup %4188 }
0x12b1   : > { %v1856_v37 = vmul.f32 %v4189_v36, %v1840_v18 }
0x12b2   : > { %v4191_v40 = vpop.eup %4190 }
0x12b3   : > { %v1862_v41 = vmul.f32 %v1861_v34, %v1856_v37  ;;  %v1857_v42 = vmul.f32 %v4191_v40, %v1841_v20 }
0x12b5   : > { %v1863_v44 = vmul.f32 %v1861_v34, %v1857_v42  ;;  %v4691_v46 = vadd.f32 %v1867_v43, %v1862_v41 }
0x12b7   : > { %v4693_v23 = vadd.f32 %v1867_v43, %v1863_v44 }
0x12b9   : > { %v1877_v49 = vpack.c.bf16 %v4693_v23, %v4691_v46 }
0x12bb   : > { %3947 = vmatmul.mubr.msk.bf16.vlgmr.msra.gmra.mrb[44].mxu1 %vm358_vm0, %v1877_v49 }
0x12bc   : > { %3952 = vmatprep.mubr.msk.bf16.mxu1 %vm4262_vm1, %v4261_v15 }
0x138e   : > { %v1931_v52 = vpop.f32.mrb[44].mxu1 }
0x138f   : > { %v1932_v48 = vadd.f32 %v1931_v52, %v1881_v51  ;;  %v3948_v53 = vpop.f32.mrb[45].mxu1 }
0x1390   : > { %v1934_v54 = vpop.f32.mrb[46].mxu1 }
0x1391   : > { %v4707_v58 = vpack.c.bf16 %v1932_v48, %v1932_v48  ;;  %v1935_v57 = vadd.f32 %v1934_v54, %v1881_v51  ;;  %v3949_v45 = vpop.f32.mrb[47].mxu1  ;;  %v1938_v3 = vmul.f32 0.35355338, %v1932_v48 }
0x1393   : > { %v4709_v60 = vpack.c.bf16 %v1935_v57, %v1935_v57  ;;  %1956 = vrot.lane.b32.xlu0 %v4707_v58, %s4263_s23  ;;  %v1939_v2 = vmul.f32 0.35355338, %v1935_v57  ;;  %v4719_v7 = vpack.c.bf16 %v1938_v3, %v1938_v3 }
0x1395   : > { %2005 = vrot.lane.b32.xlu1 %v4709_v60, %s4263_s23  ;;  %v4721_v8 = vpack.c.bf16 %v1939_v2, %v1939_v2 }
0x1405   : > { %v1957_v61 = vpop.permute.xlu0 %1956 }
0x1406   : > { %v1962_v0 = vsel %vm518_vm2, %v1957_v61, 0 }
0x1407   : > { %3951 = vmatpush3.bf16.xpose.msra.mxu1 %v1962_v0  ;;  %v2006_v1 = vpop.permute.xlu1 %2005 }
0x1408   : > { %v2011_v6 = vsel %vm518_vm2, %v2006_v1, 0  ;;  %3962 = vmatprep.subr.bf16.mxu1 %v4261_v15 }
0x1409   : > { %3957 = vmatpush3.bf16.xpose.msra.mxu0 %v2011_v6 }
0x140a   : > { %3968 = vmatprep.subr.bf16.mxu0 %v4261_v15 }
0x140e   : > { %3953 = vmatmul.mubr.msk.bf16.vlgmr.msra.gmra.mrb[48].mxu1 %vm518_vm2, %v4719_v7 }
0x140f   : > { %3964 = vmatprep.mubr.msk.bf16.mxu1 %vm4262_vm1, %v4261_v15 }
0x1410   : > { %3959 = vmatmul.mubr.msk.bf16.vlgmr.msra.gmra.mrb[48].mxu0 %vm518_vm2, %v4721_v8 }
0x1411   : > { %3970 = vmatprep.mubr.msk.bf16.mxu0 %vm4262_vm1, %v4261_v15 }
0x14e1   : > { %v1998_v9 = vpop.f32.mrb[48].mxu1 }
0x14e2   : > { %v1999_v10 = vadd.f32 %v1998_v9, %v4420_v4  ;;  %v3954_v11 = vpop.f32.mrb[49].mxu1 }
0x14e3   : > { %v2001_v12 = vpop.f32.mrb[50].mxu1  ;;  %v2047_v13 = vpop.f32.mrb[48].mxu0 }
0x14e4   : > { %v2048_v14 = vadd.f32 %v2047_v13, %v4423_v5  ;;  %v3955_v16 = vpop.f32.mrb[51].mxu1  ;;  %v3960_v17 = vpop.f32.mrb[49].mxu0  ;;  %v2053_v18 = vsel %vm518_vm2, %v1999_v10, -inf }
0x14e5   : > { %2054 = vmax.xlane.f32.xlu1 %v2053_v18  ;;  %v2050_v19 = vpop.f32.mrb[50].mxu0 }
0x14e6   : > { %v3961_v20 = vpop.f32.mrb[51].mxu0  ;;  %v2056_v39 = vsel %vm518_vm2, %v2048_v14, -inf }
0x14e7   : > { %2057 = vmax.xlane.f32.xlu0 %v2056_v39 }
0x14f6   : > { %2125 = vrot.lane.b32.xlu1 %v4709_v60, %s4265_s28 }
0x14fa   : > { %2176 = vrot.lane.b32.xlu1 %v4707_v58, %s4266_s29 }
0x1572   : > { %v2055_v21 = vpop.xlane.xlu1 %2054 }
0x1573   : > { %v2059_v22 = vsub.f32 %v1999_v10, %v2055_v21 }
0x1574   : > { %v2058_v59 = vpop.xlane.xlu0 %2057 }
0x1575   : > { %v2061_v62 = vmul.f32 1.442695, %v2059_v22  ;;  %v2060_v26 = vsub.f32 %v2048_v14, %v2058_v59 }
0x1576   : > { %v2126_v27 = vpop.permute.xlu1 %2125 }
0x1577   : > { %4192 = vpow2.f32 %v2061_v62  ;;  %v2063_v29 = vmul.f32 1.442695, %v2060_v26  ;;  %v2131_v31 = vsel %vm643_vm3, %v2126_v27, 0 }
0x1578   : > { %3969 = vmatpush3.bf16.msra.mxu0 %v2131_v31 }
0x1579   : > { %4194 = vpow2.f32 %v2063_v29  ;;  %3980 = vmatprep.subr.bf16.mxu0 %v4261_v15 }
0x157a   : > { %v2177_v36 = vpop.permute.xlu1 %2176 }
0x157b   : > { %v2182_v53 = vsel %vm518_vm2, %v2177_v36, 0 }
0x1581   : > { %v4193_v56 = vpop.eup %4192 }
0x1582   : > { %v2065_v32 = vsel %vm518_vm2, %v4193_v56, 0.0 }
0x1583   : > { %v4195_v33 = vpop.eup %4194  ;;  %2066 = vadd.xlane.f32.xlu0 %v2065_v32 }
0x1584   : > { %v2068_v34 = vsel %vm518_vm2, %v4195_v33, 0.0 }
0x1585   : > { %2069 = vadd.xlane.f32.xlu1 %v2068_v34 }
0x1596   : > { %2226 = vrot.lane.b32.xlu1 %v4709_v60, %s4266_s29 }
0x1599   : > { %2077 = vrot.lane.b32.xlu0 %v4707_v58, %s4265_s28 }
0x159a   : > { %2224 = vrot.lane.b32.xlu1 %v4721_v8, %s4267_s11 }
0x159d   : > { %2174 = vrot.lane.b32.xlu0 %v4719_v7, %s4267_s11 }
0x1610   : > { %v2067_v37 = vpop.xlane.xlu0 %2066 }
0x1611   : > { %4196 = vrcp.f32 %v2067_v37 }
0x1612   : > { %v2070_v40 = vpop.xlane.xlu1 %2069 }
0x1613   : > { %4198 = vrcp.f32 %v2070_v40 }
0x1614   : > { %v2078_v41 = vpop.permute.xlu0 %2077 }
0x1615   : > { %v2083_v42 = vsel %vm643_vm3, %v2078_v41, 0 }
0x1616   : > { %3963 = vmatpush3.bf16.msra.mxu1 %v2083_v42  ;;  %v2227_v48 = vpop.permute.xlu1 %2226 }
0x1617   : > { %3974 = vmatprep.subr.bf16.mxu1 %v4261_v15  ;;  %v2232_v57 = vsel %vm518_vm2, %v2227_v48, 0 }
0x1618   : > { %v2175_v45 = vpop.permute.xlu0 %2174 }
0x161a   : > { %v2225_v61 = vpop.permute.xlu1 %2224 }
0x161b   : > { %v4197_v43 = vpop.eup %4196 }
0x161c   : > { %v2073_v44 = vmul.f32 %v4197_v43, %v4193_v56 }
0x161d   : > { %v4199_v49 = vpop.eup %4198 }
0x161e   : > { %v2074_v51 = vmul.f32 %v4199_v49, %v4195_v33  ;;  %v2075_v52 = vpack.c.bf16 %v2073_v44, %v2073_v44 }
0x1620   : > { %3965 = vmatmul.mubr.msk.bf16.vlgmr.msra.gmra.mrb[52].mxu1 %vm518_vm2, %v2075_v52  ;;  %v2076_v54 = vpack.c.bf16 %v2074_v51, %v2074_v51  ;;  %v3630_v52 = vld [vmem:[%s5035_s3 + $0x14] sm:$0xf] }
0x1621   : > { %3975 = vmatpush3.bf16.xpose.msra.mxu1 %v2182_v53  ;;  %3976 = vmatprep.mubr.msk.bf16.mxu1 %vm4262_vm1, %v4261_v15 }
0x1622   : > { %3971 = vmatmul.mubr.msk.bf16.vlgmr.msra.gmra.mrb[52].mxu0 %vm518_vm2, %v2076_v54  ;;  %3986 = vmatprep.subr.bf16.mxu1 %v4261_v15  ;;  %v2399_v54 = vsel %vm643_vm3, %v3630_v52, 0 }
0x1623   : > { %3981 = vmatpush3.bf16.xpose.msra.mxu0 %v2232_v57  ;;  %3982 = vmatprep.mubr.msk.bf16.mxu0 %vm4262_vm1, %v4261_v15 }
0x1624   : > { %3992 = vmatprep.subr.bf16.mxu0 %v4261_v15 }
0x1628   : > { %3977 = vmatmul.mubr.msk.bf16.vlgmr.msra.gmra.mrb[56].mxu1 %vm518_vm2, %v2175_v45  ;;  %v3629_v45 = vld [vmem:[%s5035_s3 + $0x10] sm:$0xf] }
0x1629   : > { %3988 = vmatprep.mubr.msk.bf16.mxu1 %vm4262_vm1, %v4261_v15 }
0x162a   : > { %3983 = vmatmul.mubr.msk.bf16.vlgmr.msra.gmra.mrb[56].mxu0 %vm518_vm2, %v2225_v61 }
0x162b   : > { %3994 = vmatprep.mubr.msk.bf16.mxu0 %vm4262_vm1, %v4261_v15 }
0x16f3   : > { %v4769_v0 = vpop.f32.mrb[52].mxu1 }
0x16f4   : > { %v3966_v1 = vpop.f32.mrb[53].mxu1 }
0x16f5   : > { %v2122_v3 = vpop.f32.mrb[54].mxu1  ;;  %v4771_v6 = vpop.f32.mrb[52].mxu0 }
0x16f6   : > { %v2173_v2 = vpack.c.bf16 %v4771_v6, %v4769_v0  ;;  %v3967_v9 = vpop.f32.mrb[55].mxu1  ;;  %v3972_v10 = vpop.f32.mrb[53].mxu0  ;;  %v2446_v3 = vsel %vm643_vm3, %v3629_v45, 0 }
0x16f7   : > { %v2170_v11 = vpop.f32.mrb[54].mxu0 }
0x16f8   : > { %v3973_v12 = vpop.f32.mrb[55].mxu0 }
0x16fb   : > { %v2218_v13 = vpop.f32.mrb[56].mxu1 }
0x16fc   : > { %v2219_v14 = vadd.f32 %v2218_v13, %v4420_v4  ;;  %v3978_v16 = vpop.f32.mrb[57].mxu1 }
0x16fd   : > { %v2221_v17 = vpop.f32.mrb[58].mxu1  ;;  %v2268_v18 = vpop.f32.mrb[56].mxu0 }
0x16fe   : > { %v2269_v19 = vadd.f32 %v2268_v18, %v4423_v5  ;;  %v3979_v20 = vpop.f32.mrb[59].mxu1  ;;  %v3984_v39 = vpop.f32.mrb[57].mxu0  ;;  %v2274_v21 = vsel %vm518_vm2, %v2219_v14, -inf }
0x16ff   : > { %2275 = vmax.xlane.f32.xlu0 %v2274_v21  ;;  %v2271_v22 = vpop.f32.mrb[58].mxu0 }
0x1700   : > { %v3985_v59 = vpop.f32.mrb[59].mxu0  ;;  %v2277_v62 = vsel %vm518_vm2, %v2269_v19, -inf }
0x1701   : > { %2278 = vmax.xlane.f32.xlu1 %v2277_v62 }
0x1712   : > { %2346 = vrot.lane.b32.xlu1 %v4709_v60, %s4268_s12 }
0x1716   : > { %2491 = vrot.lane.b32.xlu1 %v4707_v58, %s4269_s13 }
0x171a   : > { %2541 = vrot.lane.b32.xlu1 %v4709_v60, %s4269_s13 }
0x171e   : > { %2539 = vrot.lane.b32.xlu1 %v4721_v8, %s4270_s14 }
0x178c   : > { %v2276_v26 = vpop.xlane.xlu0 %2275 }
0x178d   : > { %v2280_v27 = vsub.f32 %v2219_v14, %v2276_v26 }
0x178e   : > { %v2279_v29 = vpop.xlane.xlu1 %2278 }
0x178f   : > { %v2282_v31 = vmul.f32 1.442695, %v2280_v27  ;;  %v2281_v56 = vsub.f32 %v2269_v19, %v2279_v29 }
0x1791   : > { %4200 = vpow2.f32 %v2282_v31  ;;  %v2284_v32 = vmul.f32 1.442695, %v2281_v56 }
0x1792   : > { %v2347_v33 = vpop.permute.xlu1 %2346 }
0x1793   : > { %4202 = vpow2.f32 %v2284_v32  ;;  %v2352_v34 = vsel %vm643_vm3, %v2347_v33, 0 }
0x1794   : > { %3993 = vmatpush3.bf16.msra.mxu0 %v2352_v34 }
0x1795   : > { %4004 = vmatprep.subr.bf16.mxu0 %v4261_v15 }
0x1796   : > { %v2492_v9 = vpop.permute.xlu1 %2491 }
0x1797   : > { %v2497_v19 = vsel %vm518_vm2, %v2492_v9, 0 }
0x179a   : > { %v2542_v10 = vpop.permute.xlu1 %2541 }
0x179b   : > { %v4201_v36 = vpop.eup %4200  ;;  %v2547_v11 = vsel %vm518_vm2, %v2542_v10, 0 }
0x179c   : > { %v2286_v37 = vsel %vm518_vm2, %v4201_v36, 0.0 }
0x179d   : > { %v4203_v40 = vpop.eup %4202  ;;  %2287 = vadd.xlane.f32.xlu0 %v2286_v37 }
0x179e   : > { %v2289_v41 = vsel %vm518_vm2, %v4203_v40, 0.0  ;;  %v2540_v12 = vpop.permute.xlu1 %2539 }
0x17a1   : > { %2290 = vadd.xlane.f32.xlu0 %v2289_v41 }
0x17b7   : > { %2298 = vrot.lane.b32.xlu0 %v4707_v58, %s4268_s12 }
0x17bb   : > { %2489 = vrot.lane.b32.xlu0 %v4719_v7, %s4270_s14 }
0x182a   : > { %v2288_v42 = vpop.xlane.xlu0 %2287 }
0x182b   : > { %4204 = vrcp.f32 %v2288_v42 }
0x182e   : > { %v2291_v43 = vpop.xlane.xlu0 %2290 }
0x182f   : > { %4206 = vrcp.f32 %v2291_v43 }
0x1832   : > { %v2299_v44 = vpop.permute.xlu0 %2298 }
0x1833   : > { %v2304_v49 = vsel %vm643_vm3, %v2299_v44, 0 }
0x1834   : > { %3987 = vmatpush3.bf16.msra.mxu1 %v2304_v49 }
0x1835   : > { %v4205_v51 = vpop.eup %4204  ;;  %3998 = vmatprep.subr.bf16.mxu1 %v4261_v15 }
0x1836   : > { %v2294_v48 = vmul.f32 %v4205_v51, %v4201_v36  ;;  %v2490_v22 = vpop.permute.xlu0 %2489 }
0x1838   : > { %v2296_v53 = vpack.c.bf16 %v2294_v48, %v2294_v48 }
0x1839   : > { %v4207_v57 = vpop.eup %4206 }
0x183a   : > { %v2295_v61 = vmul.f32 %v4207_v57, %v4203_v40  ;;  %3989 = vmatmul.mubr.msk.bf16.vlgmr.msra.gmra.mrb[60].mxu1 %vm518_vm2, %v2296_v53 }
0x183b   : > { %3999 = vmatpush3.bf16.msra.mxu1 %v2399_v54  ;;  %4000 = vmatprep.mubr.msk.bf16.mxu1 %vm4262_vm1, %v4261_v15 }
0x183c   : > { %v2297_v1 = vpack.c.bf16 %v2295_v61, %v2295_v61  ;;  %4010 = vmatprep.subr.bf16.mxu1 %v4261_v15 }
0x183e   : > { %3995 = vmatmul.mubr.msk.bf16.vlgmr.msra.gmra.mrb[60].mxu0 %vm518_vm2, %v2297_v1 }
0x183f   : > { %4005 = vmatpush3.bf16.msra.mxu0 %v2446_v3  ;;  %4006 = vmatprep.mubr.msk.bf16.mxu0 %vm4262_vm1, %v4261_v15 }
0x1840   : > { %4016 = vmatprep.subr.bf16.mxu0 %v4261_v15 }
0x1846   : > { %4007 = vmatmul.mubr.msk.bf16.vlgmr.msra.gmra.mrb[64].mxu0 %vm518_vm2, %v2173_v2 }
0x1847   : > { %4018 = vmatprep.mubr.msk.bf16.mxu0 %vm4262_vm1, %v4261_v15 }
0x1848   : > { %4017 = vmatpush3.bf16.xpose.msra.mxu0 %v2547_v11 }
0x1849   : > { %4028 = vmatprep.subr.bf16.mxu0 %v4261_v15 }
0x184f   : > { %4019 = vmatmul.mubr.msk.bf16.vlgmr.msra.gmra.mrb[68].mxu0 %vm518_vm2, %v2540_v12 }
0x1850   : > { %4030 = vmatprep.mubr.msk.bf16.mxu0 %vm4262_vm1, %v4261_v15 }
0x190d   : > { %v2340_v13 = vpop.f32.mrb[60].mxu1 }
0x190e   : > { %v3990_v14 = vpop.f32.mrb[61].mxu1 }
0x190f   : > { %v2343_v16 = vpop.f32.mrb[62].mxu1 }
0x1910   : > { %v3991_v0 = vpop.f32.mrb[63].mxu1 }
0x1911   : > { %v2388_v6 = vpop.f32.mrb[60].mxu0 }
0x1912   : > { %v2394_v2 = vpack.c.bf16 %v2388_v6, %v2340_v13  ;;  %v3996_v17 = vpop.f32.mrb[61].mxu0 }
0x1913   : > { %v2391_v18 = vpop.f32.mrb[62].mxu0 }
0x1914   : > { %v3997_v20 = vpop.f32.mrb[63].mxu0  ;;  %4001 = vmatmul.mubr.msk.bf16.vlgmr.msra.gmra.mrb[64].mxu1 %vm518_vm2, %v2394_v2 }
0x1915   : > { %4011 = vmatpush3.bf16.xpose.msra.mxu1 %v2497_v19  ;;  %4012 = vmatprep.mubr.msk.bf16.mxu1 %vm4262_vm1, %v4261_v15 }
0x1916   : > { %4022 = vmatprep.subr.bf16.mxu1 %v4261_v15 }
0x1919   : > { %v2482_v39 = vpop.f32.mrb[64].mxu0 }
0x191a   : > { %v4008_v21 = vpop.f32.mrb[65].mxu0 }
0x191b   : > { %v2485_v59 = vpop.f32.mrb[66].mxu0 }
0x191c   : > { %v4009_v62 = vpop.f32.mrb[67].mxu0  ;;  %4013 = vmatmul.mubr.msk.bf16.vlgmr.msra.gmra.mrb[68].mxu1 %vm518_vm2, %v2490_v22 }
0x191d   : > { %4024 = vmatprep.mubr.msk.bf16.mxu1 %vm4262_vm1, %v4261_v15 }
0x1922   : > { %v2583_v26 = vpop.f32.mrb[68].mxu0 }
0x1923   : > { %v2584_v27 = vadd.f32 %v2583_v26, %v4423_v5  ;;  %v4020_v29 = vpop.f32.mrb[69].mxu0  ;;  %v3631_v26 = vld [vmem:[%s5035_s3 + $0x18] sm:$0xf] }
0x1924   : > { %v2586_v31 = vpop.f32.mrb[70].mxu0 }
0x1925   : > { %v4021_v56 = vpop.f32.mrb[71].mxu0  ;;  %v2592_v32 = vsel %vm518_vm2, %v2584_v27, -inf }
0x1926   : > { %2593 = vmax.xlane.f32.xlu1 %v2592_v32 }
0x1937   : > { %2661 = vrot.lane.b32.xlu1 %v4709_v60, %s4271_s19 }
0x193b   : > { %2761 = vrot.lane.b32.xlu1 %v4707_v58, %s4272_s20 }
0x193f   : > { %2811 = vrot.lane.b32.xlu1 %v4709_v60, %s4272_s20 }
0x1943   : > { %2809 = vrot.lane.b32.xlu1 %v4721_v8, %s4273_s21 }
0x19b3   : > { %v2594_v33 = vpop.xlane.xlu1 %2593 }
0x19b4   : > { %v2596_v37 = vsub.f32 %v2584_v27, %v2594_v33  ;;  %v2714_v27 = vsel %vm643_vm3, %v3631_v26, 0 }
0x19b6   : > { %v2599_v40 = vmul.f32 1.442695, %v2596_v37 }
0x19b7   : > { %v2662_v34 = vpop.permute.xlu1 %2661 }
0x19b8   : > { %v2667_v36 = vsel %vm643_vm3, %v2662_v34, 0  ;;  %4208 = vpow2.f32 %v2599_v40 }
0x19b9   : > { %4029 = vmatpush3.bf16.msra.mxu0 %v2667_v36 }
0x19ba   : > { %4040 = vmatprep.subr.bf16.mxu0 %v4261_v15 }
0x19bb   : > { %v2762_v16 = vpop.permute.xlu1 %2761 }
0x19bc   : > { %v2767_v6 = vsel %vm518_vm2, %v2762_v16, 0 }
0x19bf   : > { %v2812_v36 = vpop.permute.xlu1 %2811 }
0x19c2   : > { %v4209_v45 = vpop.eup %4208 }
0x19c3   : > { %v2604_v61 = vsel %vm518_vm2, %v4209_v45, 0.0 }
0x19e7   : > { %v2435_v41 = vpop.f32.mrb[64].mxu1 }
0x19e8   : > { %v4844_v42 = vadd.f32 %v2482_v39, %v2435_v41  ;;  %v4002_v43 = vpop.f32.mrb[65].mxu1 }
0x19e9   : > { %v2438_v44 = vpop.f32.mrb[66].mxu1 }
0x19ea   : > { %v4846_v49 = vadd.f32 %v2485_v59, %v2438_v44  ;;  %v4003_v51 = vpop.f32.mrb[67].mxu1  ;;  %v2817_v44 = vsel %vm518_vm2, %v2812_v36, 0 }
0x19ef   : > { %v2533_v52 = vpop.f32.mrb[68].mxu1 }
0x19f0   : > { %v2534_v8 = vadd.f32 %v2533_v52, %v4420_v4  ;;  %v4014_v48 = vpop.f32.mrb[69].mxu1 }
0x19f1   : > { %v2536_v53 = vpop.f32.mrb[70].mxu1 }
0x19f2   : > { %v4015_v54 = vpop.f32.mrb[71].mxu1  ;;  %v2589_v57 = vsel %vm518_vm2, %v2534_v8, -inf }
0x19f3   : > { %2590 = vmax.xlane.f32.xlu0 %v2589_v57 }
0x19f7   : > { %2605 = vadd.xlane.f32.xlu0 %v2604_v61 }
0x1a80   : > { %v2591_v1 = vpop.xlane.xlu0 %2590 }
0x1a81   : > { %v2595_v3 = vsub.f32 %v2534_v8, %v2591_v1 }
0x1a83   : > { %v2597_v9 = vmul.f32 1.442695, %v2595_v3 }
0x1a84   : > { %v2606_v10 = vpop.xlane.xlu0 %2605 }
0x1a85   : > { %4210 = vpow2.f32 %v2597_v9 }
0x1a86   : > { %4212 = vrcp.f32 %v2606_v10 }
0x1a8f   : > { %v4211_v11 = vpop.eup %4210 }
0x1a90   : > { %v4213_v12 = vpop.eup %4212  ;;  %v2601_v13 = vsel %vm518_vm2, %v4211_v11, 0.0 }
0x1a91   : > { %v2610_v14 = vmul.f32 %v4213_v12, %v4209_v45  ;;  %2602 = vadd.xlane.f32.xlu0 %v2601_v13 }
0x1a93   : > { %v2612_v0 = vpack.c.bf16 %v2610_v14, %v2610_v14 }
0x1a95   : > { %4031 = vmatmul.mubr.msk.bf16.vlgmr.msra.gmra.mrb[72].mxu0 %vm518_vm2, %v2612_v0 }
0x1a96   : > { %4041 = vmatpush3.bf16.xpose.msra.mxu0 %v2767_v6  ;;  %4042 = vmatprep.mubr.msk.bf16.mxu0 %vm4262_vm1, %v4261_v15 }
0x1a97   : > { %4052 = vmatprep.subr.bf16.mxu0 %v4261_v15 }
0x1aa7   : > { %2613 = vrot.lane.b32.xlu0 %v4707_v58, %s4271_s19 }
0x1aab   : > { %2759 = vrot.lane.b32.xlu0 %v4719_v7, %s4273_s21 }
0x1b1e   : > { %v2603_v2 = vpop.xlane.xlu0 %2602 }
0x1b1f   : > { %4214 = vrcp.f32 %v2603_v2 }
0x1b22   : > { %v2614_v17 = vpop.permute.xlu0 %2613 }
0x1b23   : > { %v2619_v18 = vsel %vm643_vm3, %v2614_v17, 0 }
0x1b24   : > { %4023 = vmatpush3.bf16.msra.mxu1 %v2619_v18 }
0x1b25   : > { %4034 = vmatprep.subr.bf16.mxu1 %v4261_v15 }
0x1b26   : > { %v2760_v19 = vpop.permute.xlu0 %2759 }
0x1b27   : > { %4043 = vmatmul.mubr.msk.bf16.vlgmr.msra.gmra.mrb[76].mxu0 %vm518_vm2, %v2760_v19 }
0x1b28   : > { %4054 = vmatprep.mubr.msk.bf16.mxu0 %vm4262_vm1, %v4261_v15 }
0x1b29   : > { %v4215_v20 = vpop.eup %4214 }
0x1b2a   : > { %v2609_v39 = vmul.f32 %v4215_v20, %v4211_v11 }
0x1b2c   : > { %v2611_v21 = vpack.c.bf16 %v2609_v39, %v2609_v39 }
0x1b2e   : > { %4025 = vmatmul.mubr.msk.bf16.vlgmr.msra.gmra.mrb[72].mxu1 %vm518_vm2, %v2611_v21 }
0x1b2f   : > { %4036 = vmatprep.mubr.msk.bf16.mxu1 %vm4262_vm1, %v4261_v15  ;;  %4035 = vmatpush3.bf16.msra.mxu1 %v2714_v27 }
0x1b30   : > { %4046 = vmatprep.subr.bf16.mxu1 %v4261_v15 }
0x1b68   : > { %v2703_v7 = vpop.f32.mrb[72].mxu0 }
0x1b69   : > { %v4032_v22 = vpop.f32.mrb[73].mxu0 }
0x1b6a   : > { %v2706_v59 = vpop.f32.mrb[74].mxu0 }
0x1b6b   : > { %v4033_v62 = vpop.f32.mrb[75].mxu0 }
0x1b6c   : > { %v3632_v62 = vld [vmem:[%s5035_s3 + $0x1c] sm:$0xf] }
0x1b6d   : > { %v2984_v26 = vsel %vm643_vm3, %v3632_v62, 0  ;;  %v4134_v62 = vld [vmem:[%s5037_s5 + $0x20] sm:$0xff]  }
0x1bfa   : > { %v2803_v29 = vpop.f32.mrb[76].mxu0 }
0x1bfb   : > { %v2804_v31 = vadd.f32 %v2803_v29, %v4420_v4  ;;  %v4044_v56 = vpop.f32.mrb[77].mxu0  ;;  %v2810_v4 = vpop.permute.xlu1 %2809 }
0x1bfc   : > { %v2806_v32 = vpop.f32.mrb[78].mxu0 }
0x1bfd   : > { %v4045_v33 = vpop.f32.mrb[79].mxu0  ;;  %v2859_v34 = vsel %vm518_vm2, %v2804_v31, -inf }
0x1bfe   : > { %2860 = vmax.xlane.f32.xlu0 %v2859_v34 }
0x1c01   : > { %v2655_v37 = vpop.f32.mrb[72].mxu1 }
0x1c02   : > { %v2709_v40 = vpack.c.bf16 %v2703_v7, %v2655_v37  ;;  %v4026_v41 = vpop.f32.mrb[73].mxu1 }
0x1c03   : > { %v2658_v43 = vpop.f32.mrb[74].mxu1 }
0x1c04   : > { %v4027_v51 = vpop.f32.mrb[75].mxu1  ;;  %4037 = vmatmul.mubr.msk.bf16.vlgmr.msra.gmra.mrb[76].mxu1 %vm518_vm2, %v2709_v40  ;;  %v3032_v40 = vrot.slane %v4703_v50, %v4368_v30 }
0x1c05   : > { %4047 = vmatpush3.bf16.xpose.msra.mxu1 %v2817_v44  ;;  %4048 = vmatprep.mubr.msk.bf16.mxu1 %vm4262_vm1, %v4261_v15 }
0x1c06   : > { %4058 = vmatprep.subr.bf16.mxu1 %v4261_v15 }
0x1c0c   : > { %4049 = vmatmul.mubr.msk.bf16.vlgmr.msra.gmra.mrb[80].mxu1 %vm518_vm2, %v2810_v4 }
0x1c0d   : > { %4060 = vmatprep.mubr.msk.bf16.mxu1 %vm4262_vm1, %v4261_v15 }
0x1c8b   : > { %v2861_v52 = vpop.xlane.xlu0 %2860 }
0x1c8c   : > { %v2865_v8 = vsub.f32 %v2804_v31, %v2861_v52 }
0x1c8e   : > { %v2867_v48 = vmul.f32 1.442695, %v2865_v8 }
0x1c90   : > { %4216 = vpow2.f32 %v2867_v48 }
0x1c9a   : > { %v4217_v53 = vpop.eup %4216 }
0x1c9b   : > { %v2871_v54 = vsel %vm518_vm2, %v4217_v53, 0.0 }
0x1c9c   : > { %2872 = vadd.xlane.f32.xlu0 %v2871_v54 }
0x1cd7   : > { %v2750_v57 = vpop.f32.mrb[76].mxu1 }
0x1cd8   : > { %v2757_v45 = vadd.f32 %v2750_v57, %v4844_v42  ;;  %v4038_v61 = vpop.f32.mrb[77].mxu1 }
0x1cd9   : > { %v2753_v1 = vpop.f32.mrb[78].mxu1 }
0x1cda   : > { %v2758_v3 = vadd.f32 %v2753_v1, %v4846_v49  ;;  %v4039_v9 = vpop.f32.mrb[79].mxu1 }
0x1cdf   : > { %v2853_v10 = vpop.f32.mrb[80].mxu1 }
0x1ce0   : > { %v2854_v11 = vadd.f32 %v2853_v10, %v4423_v5  ;;  %v4050_v12 = vpop.f32.mrb[81].mxu1 }
0x1ce1   : > { %v2856_v13 = vpop.f32.mrb[82].mxu1 }
0x1ce2   : > { %v4051_v14 = vpop.f32.mrb[83].mxu1  ;;  %v2862_v16 = vsel %vm518_vm2, %v2854_v11, -inf }
0x1ce3   : > { %2863 = vmax.xlane.f32.xlu1 %v2862_v16  ;;  %v4133_v16 = vld [vmem:[%s5036_s4 + $0x18] sm:$0xff]  }
0x1cf4   : > { %2931 = vrot.lane.b32.xlu1 %v4709_v60, %s4274_s25 }
0x1d29   : > { %v2873_v18 = vpop.xlane.xlu0 %2872 }
0x1d70   : > { %v2864_v0 = vpop.xlane.xlu1 %2863 }
0x1d71   : > { %v2866_v6 = vsub.f32 %v2854_v11, %v2864_v0 }
0x1d73   : > { %v2869_v42 = vmul.f32 1.442695, %v2866_v6 }
0x1d74   : > { %v2932_v2 = vpop.permute.xlu1 %2931 }
0x1d75   : > { %4218 = vpow2.f32 %v2869_v42  ;;  %v2937_v49 = vsel %vm643_vm3, %v2932_v2, 0 }
0x1d76   : > { %4059 = vmatpush3.bf16.msra.mxu1 %v2937_v49  ;;  %4220 = vrcp.f32 %v2873_v18 }
0x1d77   : > { %4070 = vmatprep.subr.bf16.mxu1 %v4261_v15 }
0x1d7f   : > { %v4219_v5 = vpop.eup %4218 }
0x1d80   : > { %v2874_v17 = vsel %vm518_vm2, %v4219_v5, 0.0  ;;  %v4221_v60 = vpop.eup %4220 }
0x1d81   : > { %2875 = vadd.xlane.f32.xlu0 %v2874_v17  ;;  %v2879_v20 = vmul.f32 %v4221_v60, %v4217_v53  ;;  %v3066_v17 = vrot.slane %v4703_v50, %v4623_v47 }
0x1d83   : > { %v2881_v7 = vpack.c.bf16 %v2879_v20, %v2879_v20 }
0x1d97   : > { %2883 = vrot.lane.b32.xlu0 %v4707_v58, %s4274_s25 }
0x1e0e   : > { %v2876_v19 = vpop.xlane.xlu0 %2875 }
0x1e0f   : > { %4222 = vrcp.f32 %v2876_v19 }
0x1e12   : > { %v2884_v39 = vpop.permute.xlu0 %2883 }
0x1e13   : > { %v2889_v21 = vsel %vm643_vm3, %v2884_v39, 0 }
0x1e14   : > { %4053 = vmatpush3.bf16.msra.mxu0 %v2889_v21  ;;  %v3072_v21 = vrot.slane %v4703_v50, %v4628_v28 }
0x1e15   : > { %4064 = vmatprep.subr.bf16.mxu0 %v4261_v15 }
0x1e17   : > { %4055 = vmatmul.mubr.msk.bf16.vlgmr.msra.gmra.mrb[80].mxu0 %vm518_vm2, %v2881_v7 }
0x1e18   : > { %4066 = vmatprep.mubr.msk.bf16.mxu0 %vm4262_vm1, %v4261_v15  ;;  %4065 = vmatpush3.bf16.msra.mxu0 %v2984_v26  ;;  %v4135_v26 = vld [vmem:[%s5037_s5 + $0x28] sm:$0xff]  }
0x1e19   : > { %v4223_v22 = vpop.eup %4222  ;;  %4078 = vmatprep.subr.bf16.mxu0 %v4261_v15 }
0x1e1a   : > { %v2880_v58 = vmul.f32 %v4223_v22, %v4219_v5 }
0x1e1c   : > { %v2882_v59 = vpack.c.bf16 %v2880_v58, %v2880_v58 }
0x1e1e   : > { %4061 = vmatmul.mubr.msk.bf16.vlgmr.msra.gmra.mrb[84].mxu1 %vm518_vm2, %v2882_v59 }
0x1e1f   : > { %4074 = vmatprep.mubr.msk.bf16.mxu1 %vm4262_vm1, %v4261_v15 }
0x1eea   : > { %v2925_v27 = vpop.f32.mrb[80].mxu0 }
0x1eeb   : > { %v4056_v29 = vpop.f32.mrb[81].mxu0 }
0x1eec   : > { %v2928_v31 = vpop.f32.mrb[82].mxu0  ;;  %v4137_v29 = vld [vmem:[%s5037_s5 + $0x38] sm:$0xff]  }
0x1eed   : > { %v4057_v56 = vpop.f32.mrb[83].mxu0  ;;  %v3084_v31 = vrot.slane %v4703_v50, %v4658_v63 }
0x1ef1   : > { %v2973_v32 = vpop.f32.mrb[84].mxu1 }
0x1ef2   : > { %v2979_v33 = vpack.c.bf16 %v2973_v32, %v2925_v27  ;;  %v4062_v34 = vpop.f32.mrb[85].mxu1  ;;  %v4136_v27 = vld [vmem:[%s5037_s5 + $0x30] sm:$0xff]  }
0x1ef3   : > { %v2976_v36 = vpop.f32.mrb[86].mxu1 }
0x1ef4   : > { %v4063_v37 = vpop.f32.mrb[87].mxu1  ;;  %4067 = vmatmul.mubr.msk.bf16.vlgmr.msra.gmra.mrb[84].mxu0 %vm518_vm2, %v2979_v33 }
0x1ef5   : > { %4086 = vmatprep.mubr.msk.bf16.mxu0 %vm4262_vm1, %v4261_v15  ;;  %4079 = vmatpush3.bf16.msra.mxu0 %v4134_v62 }
0x1ef6   : > { %4080 = vmatprep.subr.bf16.mxu0 %v4261_v15 }
0x1ef9   : > { %4081 = vmatpush3.bf16.msra.mxu0 %v4135_v26 }
0x1efa   : > { %4082 = vmatprep.subr.bf16.mxu0 %v4261_v15 }
0x1efd   : > { %4083 = vmatpush3.bf16.msra.mxu0 %v4136_v27 }
0x1efe   : > { %4084 = vmatprep.subr.bf16.mxu0 %v4261_v15 }
0x1f01   : > { %4085 = vmatpush3.bf16.msra.mxu0 %v4137_v29 }
0x1fc7   : > { %v3020_v41 = vpop.f32.mrb[84].mxu0 }
0x1fc8   : > { %v3027_v43 = vadd.f32 %v3020_v41, %v2757_v45  ;;  %v4068_v44 = vpop.f32.mrb[85].mxu0 }
0x1fc9   : > { %v3023_v51 = vpop.f32.mrb[86].mxu0 }
0x1fca   : > { %v3033_v4 = vadd.f32 %v3032_v40, %v3027_v43  ;;  %v3028_v52 = vadd.f32 %v3023_v51, %v2758_v3  ;;  %v4069_v8 = vpop.f32.mrb[87].mxu0 }
0x1fcc   : > { %v3034_v48 = vadd.f32 %v3032_v40, %v3028_v52  ;;  %v3035_v53 = vadd.f32 %v3033_v4, %v4691_v46 }
0x1fce   : > { %v3037_v54 = vsel %vm358_vm0, %v3035_v53, 0.0  ;;  %v3036_v57 = vadd.f32 %v3034_v48, %v4693_v23  ;;  %v4132_v23 = vld [vmem:[%s5036_s4 + $0x10] sm:$0xff]  }
0x1fcf   : > { %3038 = vadd.xlane.f32.xlu1 %v3037_v54  ;;  %4071 = vmatpush3.bf16.msra.mxu1 %v4132_v23 }
0x1fd0   : > { %v3040_v61 = vsel %vm358_vm0, %v3036_v57, 0.0  ;;  %4072 = vmatprep.subr.bf16.mxu1 %v4261_v15 }
0x1fd1   : > { %3041 = vadd.xlane.f32.xlu0 %v3040_v61 }
0x1fd3   : > { %4073 = vmatpush3.bf16.msra.mxu1 %v4133_v16 }
0x1fd4   : > { %4090 = vmatprep.subr.bf16.mxu1 %v4261_v15 }
0x205c   : > { %v3039_v1 = vpop.xlane.xlu1 %3038 }
0x205d   : > { %v3043_v9 = vmul.f32 0.03125, %v3039_v1 }
0x205e   : > { %v3042_v10 = vpop.xlane.xlu0 %3041 }
0x205f   : > { %v3045_v45 = vsub.f32 %v3035_v53, %v3043_v9  ;;  %v3044_v11 = vmul.f32 0.03125, %v3042_v10 }
0x2061   : > { %v3046_v12 = vsub.f32 %v3036_v57, %v3044_v11  ;;  %v3047_v13 = vmul.f32 %v3045_v45, %v3045_v45 }
0x2063   : > { %v3049_v3 = vsel %vm358_vm0, %v3047_v13, 0.0  ;;  %v3048_v14 = vmul.f32 %v3046_v12, %v3046_v12 }
0x2064   : > { %3050 = vadd.xlane.f32.xlu0 %v3049_v3 }
0x2065   : > { %v3052_v46 = vsel %vm358_vm0, %v3048_v14, 0.0 }
0x2066   : > { %3053 = vadd.xlane.f32.xlu1 %v3052_v46 }
0x20f1   : > { %v3051_v0 = vpop.xlane.xlu0 %3050 }
0x20f2   : > { %v3055_v6 = vmul.f32 0.03125, %v3051_v0 }
0x20f3   : > { %v3054_v42 = vpop.xlane.xlu1 %3053 }
0x20f4   : > { %v3057_v2 = vadd.f32 1e-05, %v3055_v6  ;;  %v3056_v49 = vmul.f32 0.03125, %v3054_v42 }
0x20f6   : > { %4224 = vrsqrt.f32 %v3057_v2  ;;  %v3058_v5 = vadd.f32 1e-05, %v3056_v49 }
0x20f8   : > { %4226 = vrsqrt.f32 %v3058_v5 }
0x2100   : > { %v4225_v18 = vpop.eup %4224 }
0x2101   : > { %v3061_v60 = vmul.f32 %v4225_v18, %v3045_v45 }
0x2102   : > { %v4227_v19 = vpop.eup %4226 }
0x2103   : > { %v3067_v20 = vmul.f32 %v3066_v17, %v3061_v60  ;;  %v3062_v39 = vmul.f32 %v4227_v19, %v3046_v12 }
0x2105   : > { %v3068_v7 = vmul.f32 %v3066_v17, %v3062_v39  ;;  %v4932_v22 = vadd.f32 %v3072_v21, %v3067_v20 }
0x2107   : > { %v4934_v58 = vadd.f32 %v3072_v21, %v3068_v7 }
0x2109   : > { %v3080_v59 = vpack.c.bf16 %v4934_v58, %v4932_v22 }
0x210b   : > { %4075 = vmatmul.mubr.msk.bf16.vlgmr.msra.gmra.mrb[88].mxu1 %vm358_vm0, %v3080_v59 }
0x210c   : > { %4094 = vmatprep.mubr.msk.bf16.mxu1 %vm4262_vm1, %v4261_v15 }
0x21de   : > { %v3134_v56 = vpop.f32.mrb[88].mxu1 }
0x21df   : > { %v3135_v32 = vadd.f32 %v3134_v56, %v3084_v31  ;;  %v4076_v33 = vpop.f32.mrb[89].mxu1  ;;  %v3200_v56 = vrot.slane %v4703_v50, %v1759_v55 }
0x21e0   : > { %v3137_v34 = vpop.f32.mrb[90].mxu1 }
0x21e1   : > { %v3141_v36 = vmul.f32 0.70710677, %v3135_v32  ;;  %v3138_v37 = vadd.f32 %v3137_v34, %v3084_v31  ;;  %v4077_v40 = vpop.f32.mrb[91].mxu1  ;;  %vm3179_vm7 = vcmp.ge.f32.partialorder %v3135_v32, 0.0 }
0x21e3   : > { %v3143_v41 = vand.u32 2147483647, %v3141_v36  ;;  %v3142_v43 = vmul.f32 0.70710677, %v3138_v37  ;;  %vm3180_vm8 = vcmp.ge.f32.partialorder %v3138_v37, 0.0 }
0x21e5   : > { %v3145_v44 = vmul.f32 0.3275911, %v3143_v41  ;;  %v3144_v51 = vand.u32 2147483647, %v3142_v43  ;;  %v3169_v48 = vsub.f32 0.0, %v3143_v41 }
0x21e7   : > { %v3147_v4 = vadd.f32 1.0, %v3145_v44  ;;  %v3146_v52 = vmul.f32 0.3275911, %v3144_v51  ;;  %v3170_v53 = vsub.f32 0.0, %v3144_v51  ;;  %v3171_v57 = vmul.f32 %v3169_v48, %v3143_v41 }
0x21e9   : > { %4228 = vrcp.f32 %v3147_v4  ;;  %v3148_v8 = vadd.f32 1.0, %v3146_v52  ;;  %v3172_v10 = vmul.f32 %v3170_v53, %v3144_v51  ;;  %v3173_v45 = vmul.f32 1.442695, %v3171_v57 }
0x21eb   : > { %4230 = vrcp.f32 %v3148_v8  ;;  %v3175_v14 = vmul.f32 1.442695, %v3172_v10  ;;  %v4973_v10 = vld [vmem:[%s4415_s27 + $0x4] sm:$0x3] }
0x21ec   : > { %4232 = vpow2.f32 %v3173_v45  ;;  %v3451_v45 = vrot.slane %v4973_v10, %v4361_v25 }
0x21ed   : > { %4234 = vpow2.f32 %v3175_v14 }
0x21f3   : > { %v4229_v54 = vpop.eup %4228 }
0x21f4   : > { %v3151_v61 = vmul.f32 0.5307027, %v4229_v54 }
0x21f5   : > { %v4231_v1 = vpop.eup %4230 }
0x21f6   : > { %v3153_v9 = vadd.f32 -0.72657603, %v3151_v61  ;;  %v3152_v11 = vmul.f32 0.5307027, %v4231_v1  ;;  %v4233_v18 = vpop.eup %4232 }
0x21f7   : > { %v4235_v39 = vpop.eup %4234 }
0x21f8   : > { %v3155_v12 = vmul.f32 %v4229_v54, %v3153_v9  ;;  %v3154_v13 = vadd.f32 -0.72657603, %v3152_v11  ;;  %v4138_v11 = vld [vmem:[%s5040_s8] sm:$0xff]  }
0x21f9   : > { %4091 = vmatpush3.bf16.msra.mxu1 %v4138_v11 }
0x21fa   : > { %v3157_v3 = vadd.f32 0.7107069, %v3155_v12  ;;  %v3156_v46 = vmul.f32 %v4231_v1, %v3154_v13  ;;  %4092 = vmatprep.subr.bf16.mxu1 %v4261_v15  ;;  %v4139_v12 = vld [vmem:[%s5040_s8 + $0x8] sm:$0xff]  }
0x21fc   : > { %v3159_v23 = vmul.f32 %v4229_v54, %v3157_v3  ;;  %v3158_v16 = vadd.f32 0.7107069, %v3156_v46 }
0x21fd   : > { %4093 = vmatpush3.bf16.msra.mxu1 %v4139_v12 }
0x21fe   : > { %v3161_v0 = vadd.f32 -0.14224836, %v3159_v23  ;;  %v3160_v6 = vmul.f32 %v4231_v1, %v3158_v16  ;;  %v4251_v16 = vld [vmem:[%s5038_s6 + $0x8] sm:$0xff] }
0x2200   : > { %v3163_v42 = vmul.f32 %v4229_v54, %v3161_v0  ;;  %v3162_v2 = vadd.f32 -0.14224836, %v3160_v6  ;;  %v3300_v0 = vrot.slane %v4251_v16, %v1860_v35 }
0x2202   : > { %v3165_v49 = vadd.f32 0.1274148, %v3163_v42  ;;  %v3164_v5 = vmul.f32 %v4231_v1, %v3162_v2  ;;  %v3306_v42 = vrot.slane %v4251_v16, %v1866_v38 }
0x2204   : > { %v3167_v17 = vmul.f32 %v4229_v54, %v3165_v49  ;;  %v3166_v60 = vadd.f32 0.1274148, %v3164_v5  ;;  %v354_v54 = vld [vmem:[%s4415_s27 + $0x2] sm:$0x3] }
0x2205   : > { %v3437_v61 = vsel %vm3436_vm9, %v354_v54, 0.0  ;;  %v3409_v9 = vrot.slane %v354_v54, %v4361_v25 }
0x2206   : > { %v3177_v19 = vmul.f32 %v4233_v18, %v3167_v17  ;;  %v3168_v20 = vmul.f32 %v4231_v1, %v3166_v60  ;;  %v3416_v1 = vrot.slane %v354_v54, %v4368_v30 }
0x2208   : > { %v3181_v21 = vsub.f32 1.0, %v3177_v19  ;;  %v3178_v7 = vmul.f32 %v4235_v39, %v3168_v20 }
0x220a   : > { %v3183_v59 = vsel %vm3179_vm7, %v3181_v21, %v3177_v19  ;;  %v3182_v62 = vsub.f32 1.0, %v3178_v7 }
0x220b   : > { %v3185_v27 = vmul.f32 %v3183_v59, %v3135_v32 }
0x220c   : > { %v3184_v26 = vsel %vm3180_vm8, %v3182_v62, %v3178_v7 }
0x220d   : > { %v3186_v29 = vmul.f32 %v3184_v26, %v3138_v37 }
0x220f   : > { %v3196_v31 = vpack.c.bf16 %v3186_v29, %v3185_v27  ;;  %v5001_v27 = vld [vmem:[%s5039_s7] sm:$0xff] }
0x2210   : > { %v3318_v29 = vrot.slane %v5001_v27, %v4623_v47  ;;  %v3478_v47 = vsel %vm3436_vm9, %v4973_v10, 0.0 }
0x2211   : > { %4087 = vmatmul.mubr.msk.bf16.vlgmr.msra.gmra.mrb[88].mxu0 %vm1785_vm6, %v3196_v31 }
0x22e4   : > { %v3262_v33 = vpop.f32.mrb[88].mxu0 }
0x22e5   : > { %v3263_v34 = vadd.f32 %v3262_v33, %v3200_v56  ;;  %v4088_v36 = vpop.f32.mrb[89].mxu0 }
0x22e6   : > { %v3265_v40 = vpop.f32.mrb[90].mxu0 }
0x22e7   : > { %v3266_v41 = vadd.f32 %v3265_v40, %v3200_v56  ;;  %v4089_v43 = vpop.f32.mrb[91].mxu0  ;;  %v3269_v44 = vadd.f32 %v3263_v34, %v4932_v22 }
0x22e9   : > { %v3271_v51 = vsel %vm358_vm0, %v3269_v44, 0.0  ;;  %v3270_v32 = vadd.f32 %v3266_v41, %v4934_v58 }
0x22ea   : > { %3272 = vadd.xlane.f32.xlu1 %v3271_v51 }
0x22eb   : > { %v3274_v37 = vsel %vm358_vm0, %v3270_v32, 0.0 }
0x22ec   : > { %3275 = vadd.xlane.f32.xlu0 %v3274_v37 }
0x2377   : > { %v3273_v4 = vpop.xlane.xlu1 %3272 }
0x2378   : > { %v3277_v52 = vmul.f32 0.03125, %v3273_v4 }
0x2379   : > { %v3276_v55 = vpop.xlane.xlu0 %3275 }
0x237a   : > { %v3279_v50 = vsub.f32 %v3269_v44, %v3277_v52  ;;  %v3278_v8 = vmul.f32 0.03125, %v3276_v55 }
0x237c   : > { %v3280_v48 = vsub.f32 %v3270_v32, %v3278_v8  ;;  %v3281_v53 = vmul.f32 %v3279_v50, %v3279_v50 }
0x237e   : > { %v3283_v22 = vsel %vm358_vm0, %v3281_v53, 0.0  ;;  %v3282_v57 = vmul.f32 %v3280_v48, %v3280_v48 }
0x237f   : > { %3284 = vadd.xlane.f32.xlu1 %v3283_v22 }
0x2380   : > { %v3286_v58 = vsel %vm358_vm0, %v3282_v57, 0.0 }
0x2381   : > { %3287 = vadd.xlane.f32.xlu0 %v3286_v58 }
0x2383   : > { %3438 = vadd.xlane.f32.xlu1 %v3437_v61 }
0x2394   : > { %3418 = vbcast.lane.b32.xlu1 %v3416_v1, 256  ;;  %v3458_v1 = vrot.slane %v4973_v10, %v4368_v30 }
0x2398   : > { %3411 = vbcast.lane.b32.xlu1 %v3409_v9, 256 }
0x239c   : > { %3453 = vbcast.lane.b32.xlu1 %v3451_v45, 256 }
0x240c   : > { %v3285_v13 = vpop.xlane.xlu1 %3284 }
0x240d   : > { %v3289_v3 = vmul.f32 0.03125, %v3285_v13 }
0x240e   : > { %v3288_v14 = vpop.xlane.xlu0 %3287 }
0x240f   : > { %v3291_v46 = vadd.f32 1e-05, %v3289_v3  ;;  %v3290_v23 = vmul.f32 0.03125, %v3288_v14 }
0x2410   : > { %v3439_v38 = vpop.xlane.xlu1 %3438 }
0x2411   : > { %4236 = vrsqrt.f32 %v3291_v46  ;;  %v3292_v25 = vadd.f32 1e-05, %v3290_v23  ;;  %v3441_v52 = vrot.slane %v3439_v38, 1 }
0x2413   : > { %4238 = vrsqrt.f32 %v3292_v25 }
0x2414   : > { %v3419_v62 = vpop.permute.xlu1 %3418  ;;  %4240 = vrcp.f32 %v3441_v52 }
0x2415   : > { %4242 = vrcp.f32 %v3439_v38 }
0x2418   : > { %v3412_v56 = vpop.permute.xlu1 %3411 }
0x241b   : > { %v4237_v6 = vpop.eup %4236 }
0x241c   : > { %v3295_v2 = vmul.f32 %v4237_v6, %v3279_v50  ;;  %v3454_v3 = vpop.permute.xlu1 %3453 }
0x241d   : > { %v4239_v49 = vpop.eup %4238 }
0x241e   : > { %v3296_v5 = vmul.f32 %v4239_v49, %v3280_v48  ;;  %v3301_v17 = vmul.f32 %v3300_v0, %v3295_v2  ;;  %v4241_v57 = vpop.eup %4240 }
0x241f   : > { %v4243_v45 = vpop.eup %4242 }
0x2420   : > { %v3302_v18 = vmul.f32 %v3300_v0, %v3296_v5  ;;  %v3307_v60 = vadd.f32 %v3306_v42, %v3301_v17 }
0x2422   : > { %v4991_v19 = vadd.f32 %v3306_v42, %v3302_v18  ;;  %v3313_v39 = vpack.c.bf16 %v3307_v60, %v3307_v60  ;;  %v3420_v33 = vmul.f32 %v3412_v56, %v3307_v60  ;;  %v3462_v14 = vmul.f32 %v3454_v3, %v3307_v60 }
0x2424   : > { %v3314_v20 = vpack.c.bf16 %v4991_v19, %v4991_v19  ;;  %v3321_v35 = vunpack.c.l.b16 %v3313_v39  ;;  %v3421_v26 = vmul.f32 %v3419_v62, %v4991_v19  ;;  %v3422_v32 = vsel %vm358_vm0, %v3420_v33, 0.0 }
0x2425   : > { %v3423_v4 = vrot.slane %v3422_v32, 4  ;;  %v3464_v23 = vsel %vm358_vm0, %v3462_v14, 0.0 }
0x2426   : > { %v3322_v21 = vunpack.c.l.b16 %v3314_v20  ;;  %v3429_v31 = vsel %vm358_vm0, %v3421_v26, 0.0  ;;  %v3465_v0 = vrot.slane %v3464_v23, 4 }
0x2427   : > { %v3430_v36 = vrot.slane %v3429_v31, 4  ;;  %v3424_v50 = vadd.f32 %v3423_v4, %v3422_v32 }
0x2428   : > { %v3323_v7 = vrot.slane %v3322_v21, 7  ;;  %v3466_v2 = vadd.f32 %v3465_v0, %v3464_v23 }
0x2429   : > { %v3431_v37 = vadd.f32 %v3430_v36, %v3429_v31  ;;  %v3425_v48 = vrot.slane %v3424_v50, 2 }
0x242a   : > { %v3325_v59 = vsel %vm3324_vm10, %v3323_v7, %v3321_v35  ;;  %v3467_v18 = vrot.slane %v3466_v2, 2 }
0x242b   : > { %v3326_v24 = vpack.c.b16 %v3325_v59, %v3325_v59  ;;  %v3432_v55 = vrot.slane %v3431_v37, 2  ;;  %v3426_v54 = vadd.f32 %v3425_v48, %v3424_v50 }
0x242c   : > { %v3468_v39 = vadd.f32 %v3467_v18, %v3466_v2 }
0x242d   : > { %4095 = vmatmul.mubr.msk.bf16.vlgmr.msra.gmra.mrb[92].mxu1 %vm358_vm0, %v3326_v24  ;;  %v3433_v8 = vadd.f32 %v3432_v55, %v3431_v37  ;;  %v3427_v58 = vrot.slane %v3426_v54, 1 }
0x242e   : > { %v3469_v35 = vrot.slane %v3468_v39, 1 }
0x242f   : > { %v3434_v53 = vrot.slane %v3433_v8, 1  ;;  %v3428_v9 = vadd.f32 %v3427_v58, %v3426_v54 }
0x2430   : > { %v3470_v26 = vadd.f32 %v3469_v35, %v3468_v39 }
0x2431   : > { %v3435_v22 = vadd.f32 %v3434_v53, %v3433_v8  ;;  %v3445_v12 = vmul.f32 %v4243_v45, %v3428_v9 }
0x2433   : > { %v3447_v61 = vmul.f32 %v4241_v57, %v3435_v22 }
0x2435   : > { %v3492_v11 = vrot.slane %v3447_v61, 7 }
0x2437   : > { %v3493_v13 = vsel %vm3324_vm10, %v3492_v11, %v3445_v12 }
0x2500   : > { %v3376_v34 = vpop.f32.mrb[92].mxu1 }
0x2501   : > { %v3377_v40 = vadd.f32 %v3376_v34, %v3318_v29  ;;  %v4096_v41 = vpop.f32.mrb[93].mxu1 }
0x2502   : > { %v3379_v43 = vpop.f32.mrb[94].mxu1 }
0x2503   : > { %v4097_v44 = vpop.f32.mrb[95].mxu1  ;;  %v3383_v51 = vsel %vm3382_vm11, %v3377_v40, 0.0  ;;  %v3404_v43 = vrot.slane %v5001_v27, %v4658_v63 }
0x2504   : > { %3384 = vadd.xlane.f32.xlu0 %v3383_v51 }
0x2508   : > { %3479 = vadd.xlane.f32.xlu0 %v3478_v47 }
0x251e   : > { %3460 = vbcast.lane.b32.xlu0 %v3458_v1, 256 }
0x2522   : > { %3494 = vrot.lane.b32.xlu0 %v3493_v13, %s4275_s15 }
0x2591   : > { %v3385_v46 = vpop.xlane.xlu0 %3384 }
0x2592   : > { %v3386_v25 = vmul.f32 0.03125, %v3385_v46 }
0x2594   : > { %v3387_v16 = vsub.f32 %v3377_v40, %v3386_v25  ;;  %v3399_v40 = vrot.slane %v5001_v27, %v4628_v28 }
0x2595   : > { %v3480_v6 = vpop.xlane.xlu0 %3479 }
0x2596   : > { %v3388_v42 = vmul.f32 %v3387_v16, %v3387_v16  ;;  %v3482_v30 = vrot.slane %v3480_v6, 1 }
0x2598   : > { %v3389_v10 = vsel %vm3382_vm11, %v3388_v42, 0.0  ;;  %4244 = vrcp.f32 %v3482_v30 }
0x2599   : > { %3390 = vadd.xlane.f32.xlu1 %v3389_v10  ;;  %v3461_v49 = vpop.permute.xlu0 %3460  ;;  %4246 = vrcp.f32 %v3480_v6 }
0x259a   : > { %v3463_v5 = vmul.f32 %v3461_v49, %v4991_v19 }
0x259c   : > { %v3471_v17 = vsel %vm358_vm0, %v3463_v5, 0.0 }
0x259d   : > { %v3472_v60 = vrot.slane %v3471_v17, 4  ;;  %v3495_v32 = vpop.permute.xlu0 %3494 }
0x259f   : > { %v3473_v20 = vadd.f32 %v3472_v60, %v3471_v17 }
0x25a1   : > { %v3474_v21 = vrot.slane %v3473_v20, 2 }
0x25a2   : > { %v4245_v24 = vpop.eup %4244 }
0x25a3   : > { %v3475_v7 = vadd.f32 %v3474_v21, %v3473_v20  ;;  %v4247_v62 = vpop.eup %4246 }
0x25a4   : > { %v3486_v31 = vmul.f32 %v4247_v62, %v3470_v26 }
0x25a5   : > { %v3476_v59 = vrot.slane %v3475_v7, 1 }
0x25a7   : > { %v3477_v38 = vadd.f32 %v3476_v59, %v3475_v7 }
0x25a9   : > { %v3488_v29 = vmul.f32 %v4245_v24, %v3477_v38 }
0x25ab   : > { %v3501_v19 = vrot.slane %v3488_v29, 7 }
0x25ad   : > { %v3502_v56 = vsel %vm3324_vm10, %v3501_v19, %v3486_v31 }
0x25ae   : > { %3503 = vrot.lane.b32.xlu0 %v3502_v56, %s4265_s28 }
0x2620   : > { %v3504_v47 = vpop.permute.xlu0 %3503 }
0x2626   : > { %v3391_v33 = vpop.xlane.xlu1 %3390 }
0x2627   : > { %v3392_v34 = vmul.f32 0.03125, %v3391_v33 }
0x2629   : > { %v3393_v36 = vadd.f32 1e-05, %v3392_v34 }
0x262b   : > { %4248 = vrsqrt.f32 %v3393_v36 }
0x2635   : > { %v4249_v41 = vpop.eup %4248 }
0x2636   : > { %v3395_v44 = vmul.f32 %v4249_v41, %v3387_v16 }
0x2638   : > { %v3400_v51 = vmul.f32 %v3399_v40, %v3395_v44 }
0x263a   : > { %v3405_v37 = vadd.f32 %v3404_v43, %v3400_v51 }
0x263c   : > { %3489 = vst.msk [vmem:[%s350_s22] sm:$0x3] %vm3382_vm11, %v3405_v37 }
0x263d   : > { %3498 = vst.msk [vmem:[%s350_s22] sm:$0x3] %vm3497_vm12, %v3495_v32 }
0x263e   : > { %3507 = vst.msk [vmem:[%s350_s22] sm:$0x3] %vm3506_vm13, %v3504_v47 }
0x263f   : > { %3509 = vst.msk [vmem:[%s350_s22] sm:$0x3] %vm3508_vm14, %v4261_v15 }
0x2640 PF: > { %s19_s30 = sadd.s32 1, %s4259_s30  }
0x2641   : > { %p16_p4 = scmp.ge.s32.totalorder %s19_s30, 5  }
0x2643   :  { %18 = sbr.rel (!%p16_p4) target bundleno = 1 (0x1), region = 94 }

</bundles_post_ra>
